<compile_context>
chip_gen: v7x
topology: tpu7x:2x2x1
jax: 0.10.0
libtpu: 0.0.40
codegen_flags: <defaults>
</compile_context>

<pallas_src>
import functools

import jax
import jax.numpy as jnp
from jax.experimental import pallas as pl
from jax.experimental.pallas import tpu as pltpu

IN_FEATURES = 12288   # 64 * 64 * 3
H1 = 128
H2 = 64
N_CLASSES = 10
OUT_PAD = 128         # lane-dense widths; logits live in the first 10 lanes


def _mlp_kernel(x_ref, w1_ref, b1_ref, w2_ref, b2_ref, w3_ref, b3_ref, o_ref):
    """One batch tile: full-K layer-1 matmul + small lane-dense epilogue.

    Grid = (batch tiles,). W1 has a constant index_map, so Pallas keeps it
    resident in VMEM across all batch tiles.
    """
    # Layer 1: cast the f32 x tile to bf16 on the VPU (hidden under the DMA),
    # bf16 MXU matmul with f32 accumulation, bias + ReLU.
    x = x_ref[...].astype(jnp.bfloat16)
    h1 = jnp.dot(x, w1_ref[...], preferred_element_type=jnp.float32)
    h1 = jnp.maximum(h1 + b1_ref[...], 0.0)

    # Layer 2 (padded 128->128: cols 64..127 of W2/b2 are zero -> h2 cols are 0).
    h2 = jnp.dot(h1, w2_ref[...], preferred_element_type=jnp.float32)
    h2 = jnp.maximum(h2 + b2_ref[...], 0.0)

    # Output layer (padded 128->128: rows 64..127 and cols 10..127 of W3 are zero).
    out = jnp.dot(h2, w3_ref[...], preferred_element_type=jnp.float32)
    o_ref[...] = (out + b3_ref[...]).astype(o_ref.dtype)


def _round_up(n, m):
    return -(-n // m) * m


@functools.partial(jax.jit, static_argnames=("bm_cap",))
def dog_classifier_fc(x, params, *, bm_cap=256):
    """Forward pass of Dog_Classifier_FC.

    x: (B, 64, 64, 3) (or any shape whose trailing dims flatten to 12288), f32
    params: dict with w1 (12288,128), b1 (128,), w2 (128,64), b2 (64,),
            w3 (64,10), b3 (10,)
    returns: (B, 10) float32 logits
    """
    x2d = x.reshape(-1, IN_FEATURES)
    B = x2d.shape[0]

    # Round the batch up only to the f32 sublane multiple (8); a ragged last
    # batch tile is handled by a partial input block (no full-batch pad copy).
    B8 = _round_up(max(B, 1), 8)
    if B8 != B:
        x2d = jnp.pad(x2d, ((0, B8 - B), (0, 0)))

    # Batch tile: multiple of 8, capped at bm_cap, and >= 2 tiles whenever
    # B >= 16 so the parallel grid axis can use both v7x TensorCores.
    if B8 <= 8:
        BM = 8
    else:
        BM = min(bm_cap, _round_up(-(-B8 // 2), 8))
    n_b = -(-B8 // BM)          # cdiv
    B_out = n_b * BM            # only the (small) output is tile-padded

    # Parameters: W1 in bf16 (one-time 3 MiB cast; it is the resident operand),
    # everything else f32 and zero-padded to lane-dense 128-wide blocks.
    w1 = params["w1"].astype(jnp.bfloat16)
    b1 = params["b1"].reshape(1, H1).astype(jnp.float32)
    w2 = jnp.pad(params["w2"].astype(jnp.float32), ((0, 0), (0, H1 - H2)))
    b2 = jnp.pad(params["b2"].reshape(1, H2).astype(jnp.float32),
                 ((0, 0), (0, H1 - H2)))
    w3 = jnp.pad(params["w3"].astype(jnp.float32),
                 ((0, H1 - H2), (0, OUT_PAD - N_CLASSES)))
    b3 = jnp.pad(params["b3"].reshape(1, N_CLASSES).astype(jnp.float32),
                 ((0, 0), (0, OUT_PAD - N_CLASSES)))

    x_bytes = int(x2d.dtype.itemsize)

    # VMEM budget: double-buffered x tile + in-kernel bf16 copy of the tile
    # + ~10 MiB for resident W1 / small params / outputs / compiler scratch.
    # Capped at 46 MiB so the limit stays valid on v7x (64 MiB per TensorCore).
    vmem_bytes = 2 * BM * IN_FEATURES * x_bytes + BM * IN_FEATURES * 2 + (10 << 20)
    vmem_bytes = min(vmem_bytes, 46 << 20)

    cost = pl.CostEstimate(
        flops=2 * B_out * (IN_FEATURES * H1 + H1 * H1 + H1 * OUT_PAD),
        transcendentals=0,
        bytes_accessed=(B8 * IN_FEATURES * x_bytes      # x: the dominant stream
                        + IN_FEATURES * H1 * 2          # W1: read once
                        + B_out * OUT_PAD * 4),         # output
    )

    grid_spec = pltpu.PrefetchScalarGridSpec(
        num_scalar_prefetch=0,
        grid=(n_b,),                                    # batch tiles (parallel)
        in_specs=[
            # x tile: marches over the batch axis; last tile may be partial.
            pl.BlockSpec((BM, IN_FEATURES), lambda b: (b, 0)),
            # W1: constant block index -> DMA'd once, stays VMEM-resident.
            pl.BlockSpec((IN_FEATURES, H1), lambda b: (0, 0)),
            pl.BlockSpec((1, H1), lambda b: (0, 0)),
            pl.BlockSpec((H1, H1), lambda b: (0, 0)),
            pl.BlockSpec((1, H1), lambda b: (0, 0)),
            pl.BlockSpec((H1, OUT_PAD), lambda b: (0, 0)),
            pl.BlockSpec((1, OUT_PAD), lambda b: (0, 0)),
        ],
        out_specs=pl.BlockSpec((BM, OUT_PAD), lambda b: (b, 0)),
    )

    out = pl.pallas_call(
        _mlp_kernel,
        out_shape=jax.ShapeDtypeStruct((B_out, OUT_PAD), jnp.float32),
        grid_spec=grid_spec,
        compiler_params=pltpu.CompilerParams(
            dimension_semantics=("parallel",),
            vmem_limit_bytes=vmem_bytes),
        cost_estimate=cost,
    )(x2d, w1, b1, w2, b2, w3, b3)

    return out[:B, :N_CLASSES]


def init_params(key):
    """Deterministic init mimicking nn.Linear defaults (U(-1/sqrt(fan_in), +))."""
    ks = jax.random.split(key, 6)

    def linear(kw, kb, fan_in, fan_out):
        bound = 1.0 / jnp.sqrt(fan_in)
        w = jax.random.uniform(kw, (fan_in, fan_out), jnp.float32, -bound, bound)
        b = jax.random.uniform(kb, (fan_out,), jnp.float32, -bound, bound)
        return w, b

    w1, b1 = linear(ks[0], ks[1], IN_FEATURES, H1)
    w2, b2 = linear(ks[2], ks[3], H1, H2)
    w3, b3 = linear(ks[4], ks[5], H2, N_CLASSES)
    return {"w1": w1, "b1": b1, "w2": w2, "b2": b2, "w3": w3, "b3": b3}


def _reference(x, p, *, bf16_layer1):
    """Plain-JAX reference of the PyTorch forward."""
    h = x.reshape(-1, IN_FEATURES)
    w1 = p["w1"]
    if bf16_layer1:
        h = h.astype(jnp.bfloat16)
        w1 = w1.astype(jnp.bfloat16)
    h = jnp.dot(h, w1, preferred_element_type=jnp.float32) + p["b1"]
    h = jnp.maximum(h, 0.0)
    h = jnp.maximum(h @ p["w2"] + p["b2"], 0.0)
    return h @ p["w3"] + p["b3"]


if __name__ == "__main__":
    key = jax.random.PRNGKey(0)
    k_param, k_x1, k_x2 = jax.random.split(key, 3)

    params = init_params(k_param)

    # Small DogSet-shaped batch: (B, 64, 64, 3) -> 12288 features.
    x_small = jax.random.normal(k_x1, (4, 64, 64, 3), jnp.float32)
    out_small = jax.block_until_ready(dog_classifier_fc(x_small, params))
    assert out_small.shape == (4, N_CLASSES)

    # Matches a reference with the same bf16-layer-1 semantics.
    ref_bf16 = _reference(x_small, params, bf16_layer1=True)
    assert jnp.allclose(out_small, ref_bf16, atol=2e-3, rtol=2e-3)
    # Sanity vs. full-f32 PyTorch semantics (bf16 layer-1 ~0.5% rel error).
    ref_f32 = _reference(x_small, params, bf16_layer1=False)
    assert jnp.allclose(out_small, ref_f32, atol=3e-2, rtol=3e-2)

    # Ragged batch: exercises >=2 batch tiles and a partial last input block.
    x_rag = jax.random.normal(k_x2, (20, 64, 64, 3), jnp.float32)
    out_rag = jax.block_until_ready(dog_classifier_fc(x_rag, params))
    assert out_rag.shape == (20, N_CLASSES)
    ref_rag = _reference(x_rag, params, bf16_layer1=True)
    assert jnp.allclose(out_rag, ref_rag, atol=2e-3, rtol=2e-3)

    print("KERNEL_OK")
</pallas_src>

<mosaic_0001>
module attributes {stable_mosaic.version = 11 : i64} {
  func.func @_mlp_kernel(%arg0: i32, %arg1: memref<8x12288xf32, #tpu.memory_space<vmem>>, %arg2: memref<12288x128xbf16, #tpu.memory_space<vmem>>, %arg3: memref<1x128xf32, #tpu.memory_space<vmem>>, %arg4: memref<128x128xf32, #tpu.memory_space<vmem>>, %arg5: memref<1x128xf32, #tpu.memory_space<vmem>>, %arg6: memref<128x128xf32, #tpu.memory_space<vmem>>, %arg7: memref<1x128xf32, #tpu.memory_space<vmem>>, %arg8: memref<8x128xf32, #tpu.memory_space<vmem>>) attributes {dimension_semantics = [#tpu.dimension_semantics<parallel>], iteration_bounds = array<i64: 1>, scalar_prefetch = 0 : i64, scratch_operands = 0 : i64, tpu.core_type = #tpu.core_type<tc>, window_params = [{transform_indices = @transform_0, window_bounds = array<i64: 8, 12288>}, {pipeline_mode = #tpu.pipeline_mode<synchronous>, transform_indices = @transform_1, window_bounds = array<i64: 12288, 128>}, {pipeline_mode = #tpu.pipeline_mode<synchronous>, transform_indices = @transform_2, window_bounds = array<i64: 1, 128>}, {pipeline_mode = #tpu.pipeline_mode<synchronous>, transform_indices = @transform_3, window_bounds = array<i64: 128, 128>}, {pipeline_mode = #tpu.pipeline_mode<synchronous>, transform_indices = @transform_4, window_bounds = array<i64: 1, 128>}, {pipeline_mode = #tpu.pipeline_mode<synchronous>, transform_indices = @transform_5, window_bounds = array<i64: 128, 128>}, {pipeline_mode = #tpu.pipeline_mode<synchronous>, transform_indices = @transform_6, window_bounds = array<i64: 1, 128>}, {transform_indices = @transform_7, window_bounds = array<i64: 8, 128>}]} {
    %c0 = arith.constant 0 : index
    %c0_0 = arith.constant 0 : index
    %0 = vector.load %arg1[%c0, %c0_0] : memref<8x12288xf32, #tpu.memory_space<vmem>>, vector<8x12288xf32>
    %1 = arith.truncf %0 : vector<8x12288xf32> to vector<8x12288xbf16>
    %c0_1 = arith.constant 0 : index
    %c0_2 = arith.constant 0 : index
    %2 = vector.load %arg2[%c0_1, %c0_2] : memref<12288x128xbf16, #tpu.memory_space<vmem>>, vector<12288x128xbf16>
    %cst = arith.constant dense<0.000000e+00> : vector<8x128xf32>
    %3 = tpu.matmul %1, %2, %cst {dimension_numbers = #tpu.dot_dimension_numbers<[1], [0], [0], [1], [0, 0, 1, 1], [], []>} : vector<8x12288xbf16>, vector<12288x128xbf16>, vector<8x128xf32> -> vector<8x128xf32>
    %c0_3 = arith.constant 0 : index
    %c0_4 = arith.constant 0 : index
    %4 = vector.load %arg3[%c0_3, %c0_4] : memref<1x128xf32, #tpu.memory_space<vmem>>, vector<1x128xf32>
    %5 = vector.broadcast %4 : vector<1x128xf32> to vector<8x128xf32>
    %6 = arith.addf %3, %5 : vector<8x128xf32>
    %cst_5 = arith.constant 0.000000e+00 : f32
    %7 = vector.broadcast %cst_5 : f32 to vector<8x128xf32>
    %8 = arith.maximumf %6, %7 : vector<8x128xf32>
    %c0_6 = arith.constant 0 : index
    %c0_7 = arith.constant 0 : index
    %9 = vector.load %arg4[%c0_6, %c0_7] : memref<128x128xf32, #tpu.memory_space<vmem>>, vector<128x128xf32>
    %cst_8 = arith.constant dense<0.000000e+00> : vector<8x128xf32>
    %10 = tpu.matmul %8, %9, %cst_8 {dimension_numbers = #tpu.dot_dimension_numbers<[1], [0], [0], [1], [0, 0, 1, 1], [], []>} : vector<8x128xf32>, vector<128x128xf32>, vector<8x128xf32> -> vector<8x128xf32>
    %c0_9 = arith.constant 0 : index
    %c0_10 = arith.constant 0 : index
    %11 = vector.load %arg5[%c0_9, %c0_10] : memref<1x128xf32, #tpu.memory_space<vmem>>, vector<1x128xf32>
    %12 = vector.broadcast %11 : vector<1x128xf32> to vector<8x128xf32>
    %13 = arith.addf %10, %12 : vector<8x128xf32>
    %cst_11 = arith.constant 0.000000e+00 : f32
    %14 = vector.broadcast %cst_11 : f32 to vector<8x128xf32>
    %15 = arith.maximumf %13, %14 : vector<8x128xf32>
    %c0_12 = arith.constant 0 : index
    %c0_13 = arith.constant 0 : index
    %16 = vector.load %arg6[%c0_12, %c0_13] : memref<128x128xf32, #tpu.memory_space<vmem>>, vector<128x128xf32>
    %cst_14 = arith.constant dense<0.000000e+00> : vector<8x128xf32>
    %17 = tpu.matmul %15, %16, %cst_14 {dimension_numbers = #tpu.dot_dimension_numbers<[1], [0], [0], [1], [0, 0, 1, 1], [], []>} : vector<8x128xf32>, vector<128x128xf32>, vector<8x128xf32> -> vector<8x128xf32>
    %c0_15 = arith.constant 0 : index
    %c0_16 = arith.constant 0 : index
    %18 = vector.load %arg7[%c0_15, %c0_16] : memref<1x128xf32, #tpu.memory_space<vmem>>, vector<1x128xf32>
    %19 = vector.broadcast %18 : vector<1x128xf32> to vector<8x128xf32>
    %20 = arith.addf %17, %19 : vector<8x128xf32>
    %c0_17 = arith.constant 0 : index
    %c0_18 = arith.constant 0 : index
    %21 = vector.load %arg8[%c0_17, %c0_18] : memref<8x128xf32, #tpu.memory_space<vmem>>, vector<8x128xf32>
    tpu.vector_store %arg8[%c0_17, %c0_18], %20 {strides = array<i32>} : memref<8x128xf32, #tpu.memory_space<vmem>>, vector<8x128xf32>,
    return
  }
  func.func @transform_0(%arg0: i32) -> (i32, i32) {
    %c0_i32 = arith.constant 0 : i32
    %c0_i32_0 = arith.constant 0 : i32
    return %arg0, %c0_i32 : i32, i32
  }
  func.func @transform_1(%arg0: i32) -> (i32, i32) {
    %c0_i32 = arith.constant 0 : i32
    %c0_i32_0 = arith.constant 0 : i32
    %c0_i32_1 = arith.constant 0 : i32
    return %c0_i32, %c0_i32_0 : i32, i32
  }
  func.func @transform_2(%arg0: i32) -> (i32, i32) {
    %c0_i32 = arith.constant 0 : i32
    %c0_i32_0 = arith.constant 0 : i32
    %c0_i32_1 = arith.constant 0 : i32
    return %c0_i32, %c0_i32_0 : i32, i32
  }
  func.func @transform_3(%arg0: i32) -> (i32, i32) {
    %c0_i32 = arith.constant 0 : i32
    %c0_i32_0 = arith.constant 0 : i32
    %c0_i32_1 = arith.constant 0 : i32
    return %c0_i32, %c0_i32_0 : i32, i32
  }
  func.func @transform_4(%arg0: i32) -> (i32, i32) {
    %c0_i32 = arith.constant 0 : i32
    %c0_i32_0 = arith.constant 0 : i32
    %c0_i32_1 = arith.constant 0 : i32
    return %c0_i32, %c0_i32_0 : i32, i32
  }
  func.func @transform_5(%arg0: i32) -> (i32, i32) {
    %c0_i32 = arith.constant 0 : i32
    %c0_i32_0 = arith.constant 0 : i32
    %c0_i32_1 = arith.constant 0 : i32
    return %c0_i32, %c0_i32_0 : i32, i32
  }
  func.func @transform_6(%arg0: i32) -> (i32, i32) {
    %c0_i32 = arith.constant 0 : i32
    %c0_i32_0 = arith.constant 0 : i32
    %c0_i32_1 = arith.constant 0 : i32
    return %c0_i32, %c0_i32_0 : i32, i32
  }
  func.func @transform_7(%arg0: i32) -> (i32, i32) {
    %c0_i32 = arith.constant 0 : i32
    %c0_i32_0 = arith.constant 0 : i32
    return %arg0, %c0_i32 : i32, i32
  }
}

</mosaic_0001>

<bundles_post_ra>
// kernel: dog_classifier_fc.1
= control target key start
LH: loop header
LB: loop body
LE: loop exit
PB: predicated region body
PF: predicated region fallthrough
CT: control target
= control target key end

     0   :  { %vm11234_vm0 = vmmov 0   ;;  %s14040_s1 = inlined_call_operand.vmem [shape: bf16[12288,128], index: 1, kind: input, shape index: {}]   ;;  %s14041_s0 = inlined_call_operand.vmem [shape: f32[8,12288], index: 0, kind: input, shape index: {}]   ;;  %s14042_s2 = inlined_call_operand.vmem [shape: f32[1,128], index: 2, kind: input, shape index: {}]   ;;  %s14043_s3 = inlined_call_operand.vmem [shape: f32[128,128], index: 3, kind: input, shape index: {}]   ;;  %s14044_s5 = inlined_call_operand.vmem [shape: f32[128,128], index: 5, kind: input, shape index: {}]   ;;  %s14045_s4 = inlined_call_operand.vmem [shape: f32[1,128], index: 4, kind: input, shape index: {}]   ;;  %s14046_s6 = inlined_call_operand.vmem [shape: f32[1,128], index: 6, kind: input, shape index: {}]   ;;  %s14047_s7 = inlined_call_operand.vmem [shape: f32[8,128], index: 7, kind: output, shape index: {}]  }
   0x1   :  { %v10465_v0 = vld [vmem:[%s14040_s1 + $0x40] sm:$0xff]   ;;  %v10469_v4 = vld [vmem:[%s14040_s1 + $0x48] sm:$0xff]   ;;  %v10473_v8 = vld [vmem:[%s14040_s1 + $0x50] sm:$0xff]  }
   0x2   :  { %v10466_v1 = vld [vmem:[%s14040_s1 + $0xc0] sm:$0xff]   ;;  %9254 = vmatprep.subr.bf16.mxu0 %v10465_v0  ;;  %v10470_v5 = vld [vmem:[%s14040_s1 + $0xc8] sm:$0xff]   ;;  %v10474_v9 = vld [vmem:[%s14040_s1 + $0xd0] sm:$0xff]  }
   0x3   :  { %v10467_v2 = vld [vmem:[%s14040_s1] sm:$0xff]   ;;  %9276 = vmatprep.subr.bf16.mxu1 %v10466_v1  ;;  %v10471_v6 = vld [vmem:[%s14040_s1 + $0x8] sm:$0xff]   ;;  %v10475_v10 = vld [vmem:[%s14040_s1 + $0x10] sm:$0xff]  }
   0x4   :  { %v10468_v3 = vld [vmem:[%s14040_s1 + $0x80] sm:$0xff]   ;;  %9255 = vmatpush3.bf16.msra.mxu0 %v10467_v2  ;;  %v10472_v7 = vld [vmem:[%s14040_s1 + $0x88] sm:$0xff]   ;;  %v10476_v11 = vld [vmem:[%s14040_s1 + $0x90] sm:$0xff]  }
   0x5   :  { %9277 = vmatpush3.bf16.msra.mxu1 %v10468_v3  ;;  %9256 = vmatprep.subr.bf16.mxu0 %v10469_v4  ;;  %v10477_v12 = vld [vmem:[%s14040_s1 + $0x58] sm:$0xff]   ;;  %v10481_v16 = vld [vmem:[%s14040_s1 + $0x60] sm:$0xff]   ;;  %v10485_v20 = vld [vmem:[%s14040_s1 + $0x68] sm:$0xff]  }
   0x6   :  { %9278 = vmatprep.subr.bf16.mxu1 %v10470_v5  ;;  %v10478_v13 = vld [vmem:[%s14040_s1 + $0xd8] sm:$0xff]   ;;  %v10482_v17 = vld [vmem:[%s14040_s1 + $0xe0] sm:$0xff]   ;;  %v10486_v21 = vld [vmem:[%s14040_s1 + $0xe8] sm:$0xff]  }
   0x7   :  { %v10479_v14 = vld [vmem:[%s14040_s1 + $0x18] sm:$0xff]   ;;  %v10483_v18 = vld [vmem:[%s14040_s1 + $0x20] sm:$0xff]   ;;  %v10487_v22 = vld [vmem:[%s14040_s1 + $0x28] sm:$0xff]  }
   0x8   :  { %9257 = vmatpush3.bf16.msra.mxu0 %v10471_v6  ;;  %v10480_v15 = vld [vmem:[%s14040_s1 + $0x98] sm:$0xff]   ;;  %v10484_v19 = vld [vmem:[%s14040_s1 + $0xa0] sm:$0xff]   ;;  %v10488_v23 = vld [vmem:[%s14040_s1 + $0xa8] sm:$0xff]  }
   0x9   :  { %9279 = vmatpush3.bf16.msra.mxu1 %v10472_v7  ;;  %9258 = vmatprep.subr.bf16.mxu0 %v10473_v8  ;;  %v10489_v24 = vld [vmem:[%s14040_s1 + $0x70] sm:$0xff]   ;;  %v10493_v28 = vld [vmem:[%s14040_s1 + $0x78] sm:$0xff]   ;;  %v28_v32 = vld [vmem:[%s14041_s0 + $0x8] sm:$0xff] }
   0xa   :  { %9280 = vmatprep.subr.bf16.mxu1 %v10474_v9  ;;  %v10490_v25 = vld [vmem:[%s14040_s1 + $0xf0] sm:$0xff]   ;;  %v10494_v29 = vld [vmem:[%s14040_s1 + $0xf8] sm:$0xff]   ;;  %v27_v34 = vld [vmem:[%s14041_s0] sm:$0xff]  ;;  %v124_v35 = vpack.c.bf16 %v28_v32, %v28_v32 }
   0xb   :  { %v10491_v26 = vld [vmem:[%s14040_s1 + $0x30] sm:$0xff]   ;;  %v10495_v30 = vld [vmem:[%s14040_s1 + $0x38] sm:$0xff]   ;;  %v123_v37 = vpack.c.bf16 %v27_v34, %v27_v34  ;;  %v10497_v40 = vld [vmem:[%s14040_s1 + $0x140] sm:$0xff]  }
   0xc   :  { %9259 = vmatpush3.bf16.msra.mxu0 %v10475_v10  ;;  %v10492_v27 = vld [vmem:[%s14040_s1 + $0xb0] sm:$0xff]   ;;  %v10496_v31 = vld [vmem:[%s14040_s1 + $0xb8] sm:$0xff]   ;;  %6402 = vmatprep.mubr.bf16.mxu0 %v124_v35  ;;  %v10498_v41 = vld [vmem:[%s14040_s1 + $0x1c0] sm:$0xff]  }
   0xd   :  { %9281 = vmatpush3.bf16.msra.mxu1 %v10476_v11  ;;  %9260 = vmatprep.subr.bf16.mxu0 %v10477_v12  ;;  %v30_v33 = vld [vmem:[%s14041_s0 + $0x18] sm:$0xff]  ;;  %v29_v38 = vld [vmem:[%s14041_s0 + $0x10] sm:$0xff]  ;;  %v10499_v42 = vld [vmem:[%s14040_s1 + $0x100] sm:$0xff]  }
   0xe   :  { %9282 = vmatprep.subr.bf16.mxu1 %v10478_v13  ;;  %v126_v36 = vpack.c.bf16 %v30_v33, %v30_v33  ;;  %v125_v39 = vpack.c.bf16 %v29_v38, %v29_v38  ;;  %v10500_v43 = vld [vmem:[%s14040_s1 + $0x180] sm:$0xff]   ;;  %v10501_v44 = vld [vmem:[%s14040_s1 + $0x148] sm:$0xff]   ;;  %v10505_v48 = vld [vmem:[%s14040_s1 + $0x150] sm:$0xff]  }
   0xf   :  { %v10502_v45 = vld [vmem:[%s14040_s1 + $0x1c8] sm:$0xff]   ;;  %v10506_v49 = vld [vmem:[%s14040_s1 + $0x1d0] sm:$0xff]   ;;  %v10509_v52 = vld [vmem:[%s14040_s1 + $0x158] sm:$0xff]  }
  0x10   :  { %9261 = vmatpush3.bf16.msra.mxu0 %v10479_v14  ;;  %6442 = vmatprep.mubr.bf16.mxu1 %v126_v36  ;;  %v10503_v46 = vld [vmem:[%s14040_s1 + $0x108] sm:$0xff]   ;;  %v10507_v50 = vld [vmem:[%s14040_s1 + $0x110] sm:$0xff]   ;;  %v10510_v53 = vld [vmem:[%s14040_s1 + $0x1d8] sm:$0xff]  }
  0x11   :  { %9283 = vmatpush3.bf16.msra.mxu1 %v10480_v15  ;;  %9262 = vmatprep.subr.bf16.mxu0 %v10481_v16  ;;  %v10504_v47 = vld [vmem:[%s14040_s1 + $0x188] sm:$0xff]   ;;  %v10508_v51 = vld [vmem:[%s14040_s1 + $0x190] sm:$0xff]   ;;  %v10511_v54 = vld [vmem:[%s14040_s1 + $0x118] sm:$0xff]  }
  0x12   :  { %9284 = vmatprep.subr.bf16.mxu1 %v10482_v17  ;;  %v10512_v55 = vld [vmem:[%s14040_s1 + $0x198] sm:$0xff]   ;;  %v10513_v56 = vld [vmem:[%s14040_s1 + $0x160] sm:$0xff]   ;;  %v10517_v60 = vld [vmem:[%s14040_s1 + $0x168] sm:$0xff]  }
  0x13   :  { %v10514_v57 = vld [vmem:[%s14040_s1 + $0x1e0] sm:$0xff]   ;;  %v10518_v61 = vld [vmem:[%s14040_s1 + $0x1e8] sm:$0xff]   ;;  %v10521_v0 = vld [vmem:[%s14040_s1 + $0x170] sm:$0xff]  }
  0x14   :  { %9263 = vmatpush3.bf16.msra.mxu0 %v10483_v18  ;;  %v10515_v58 = vld [vmem:[%s14040_s1 + $0x120] sm:$0xff]   ;;  %v10519_v62 = vld [vmem:[%s14040_s1 + $0x128] sm:$0xff]   ;;  %v10522_v1 = vld [vmem:[%s14040_s1 + $0x1f0] sm:$0xff]  }
  0x15   :  { %9285 = vmatpush3.bf16.msra.mxu1 %v10484_v19  ;;  %9264 = vmatprep.subr.bf16.mxu0 %v10485_v20  ;;  %v10516_v59 = vld [vmem:[%s14040_s1 + $0x1a0] sm:$0xff]   ;;  %v10520_v63 = vld [vmem:[%s14040_s1 + $0x1a8] sm:$0xff]   ;;  %v10523_v2 = vld [vmem:[%s14040_s1 + $0x130] sm:$0xff]  }
  0x16   :  { %9286 = vmatprep.subr.bf16.mxu1 %v10486_v21  ;;  %v10524_v3 = vld [vmem:[%s14040_s1 + $0x1b0] sm:$0xff]   ;;  %v10525_v4 = vld [vmem:[%s14040_s1 + $0x178] sm:$0xff]   ;;  %v32_v8 = vld [vmem:[%s14041_s0 + $0x28] sm:$0xff] }
  0x17   :  { %v10526_v5 = vld [vmem:[%s14040_s1 + $0x1f8] sm:$0xff]   ;;  %v128_v10 = vpack.c.bf16 %v32_v8, %v32_v8  ;;  %v31_v12 = vld [vmem:[%s14041_s0 + $0x20] sm:$0xff]  ;;  %v33_v13 = vld [vmem:[%s14041_s0 + $0x30] sm:$0xff] }
  0x18   :  { %9265 = vmatpush3.bf16.msra.mxu0 %v10487_v22  ;;  %v10527_v6 = vld [vmem:[%s14040_s1 + $0x138] sm:$0xff]   ;;  %v127_v14 = vpack.c.bf16 %v31_v12, %v31_v12  ;;  %v129_v15 = vpack.c.bf16 %v33_v13, %v33_v13  ;;  %v10529_v16 = vld [vmem:[%s14040_s1 + $0x240] sm:$0xff]   ;;  %v10533_v20 = vld [vmem:[%s14040_s1 + $0x248] sm:$0xff]  }
  0x19   :  { %9287 = vmatpush3.bf16.msra.mxu1 %v10488_v23  ;;  %9266 = vmatprep.subr.bf16.mxu0 %v10489_v24  ;;  %v10528_v7 = vld [vmem:[%s14040_s1 + $0x1b8] sm:$0xff]   ;;  %v10530_v17 = vld [vmem:[%s14040_s1 + $0x2c0] sm:$0xff]   ;;  %v10534_v21 = vld [vmem:[%s14040_s1 + $0x2c8] sm:$0xff]  }
  0x1a   :  { %9288 = vmatprep.subr.bf16.mxu1 %v10490_v25  ;;  %v34_v9 = vld [vmem:[%s14041_s0 + $0x38] sm:$0xff]  ;;  %v10531_v18 = vld [vmem:[%s14040_s1 + $0x200] sm:$0xff]   ;;  %v10535_v22 = vld [vmem:[%s14040_s1 + $0x208] sm:$0xff]  }
  0x1b   :  { %v130_v11 = vpack.c.bf16 %v34_v9, %v34_v9  ;;  %v10532_v19 = vld [vmem:[%s14040_s1 + $0x280] sm:$0xff]   ;;  %v10536_v23 = vld [vmem:[%s14040_s1 + $0x288] sm:$0xff]   ;;  %v10537_v24 = vld [vmem:[%s14040_s1 + $0x250] sm:$0xff]  }
  0x1c   :  { %9267 = vmatpush3.bf16.msra.mxu0 %v10491_v26  ;;  %v10538_v25 = vld [vmem:[%s14040_s1 + $0x2d0] sm:$0xff]   ;;  %v10545_v32 = vld [vmem:[%s14040_s1 + $0x260] sm:$0xff]   ;;  %v10549_v36 = vld [vmem:[%s14040_s1 + $0x268] sm:$0xff]  }
  0x1d   :  { %9289 = vmatpush3.bf16.msra.mxu1 %v10492_v27  ;;  %9268 = vmatprep.subr.bf16.mxu0 %v10493_v28  ;;  %v10539_v26 = vld [vmem:[%s14040_s1 + $0x210] sm:$0xff]   ;;  %v10541_v28 = vld [vmem:[%s14040_s1 + $0x258] sm:$0xff]   ;;  %v10546_v33 = vld [vmem:[%s14040_s1 + $0x2e0] sm:$0xff]  }
  0x1e   :  { %9290 = vmatprep.subr.bf16.mxu1 %v10494_v29  ;;  %v10540_v27 = vld [vmem:[%s14040_s1 + $0x290] sm:$0xff]   ;;  %v10542_v29 = vld [vmem:[%s14040_s1 + $0x2d8] sm:$0xff]   ;;  %v10547_v34 = vld [vmem:[%s14040_s1 + $0x220] sm:$0xff]  }
  0x1f   :  { %v10548_v35 = vld [vmem:[%s14040_s1 + $0x2a0] sm:$0xff]   ;;  %v10551_v38 = vld [vmem:[%s14040_s1 + $0x228] sm:$0xff]  }
  0x20   :  { %9269 = vmatpush3.bf16.msra.mxu0 %v10495_v30  ;;  %v10543_v30 = vld [vmem:[%s14040_s1 + $0x218] sm:$0xff]   ;;  %v10577_v8 = vld [vmem:[%s14040_s1 + $0x360] sm:$0xff]   ;;  %v10581_v12 = vld [vmem:[%s14040_s1 + $0x368] sm:$0xff]  }
  0x21   :  { %9291 = vmatpush3.bf16.msra.mxu1 %v10496_v31  ;;  %9298 = vmatprep.subr.bf16.mxu0 %v10497_v40  ;;  %v10544_v31 = vld [vmem:[%s14040_s1 + $0x298] sm:$0xff]   ;;  %v10553_v40 = vld [vmem:[%s14040_s1 + $0x270] sm:$0xff]   ;;  %v10578_v9 = vld [vmem:[%s14040_s1 + $0x3e0] sm:$0xff]  }
  0x22   :  { %9320 = vmatprep.subr.bf16.mxu1 %v10498_v41  ;;  %v10554_v41 = vld [vmem:[%s14040_s1 + $0x2f0] sm:$0xff]   ;;  %v10582_v13 = vld [vmem:[%s14040_s1 + $0x3e8] sm:$0xff]  }
  0x23   :  { %6403 = vmatmul.mubr.bf16.vlgmr.msra.gmra.mrb[0].mxu0 %v123_v37  ;;  %v10550_v37 = vld [vmem:[%s14040_s1 + $0x2e8] sm:$0xff]  }
  0x24   :  { %6443 = vmatmul.mubr.bf16.vlgmr.msra.gmra.mrb[0].mxu1 %v125_v39  ;;  %9299 = vmatpush3.bf16.msra.mxu0 %v10499_v42  ;;  %v10552_v39 = vld [vmem:[%s14040_s1 + $0x2a8] sm:$0xff]   ;;  %v10555_v42 = vld [vmem:[%s14040_s1 + $0x230] sm:$0xff]  }
  0x25   :  { %9321 = vmatpush3.bf16.msra.mxu1 %v10500_v43  ;;  %9300 = vmatprep.subr.bf16.mxu0 %v10501_v44  ;;  %v10556_v43 = vld [vmem:[%s14040_s1 + $0x2b0] sm:$0xff]   ;;  %v10557_v44 = vld [vmem:[%s14040_s1 + $0x278] sm:$0xff]  }
  0x26   :  { %9322 = vmatprep.subr.bf16.mxu1 %v10502_v45  ;;  %6482 = vmatprep.mubr.bf16.mxu0 %v128_v10  ;;  %v10558_v45 = vld [vmem:[%s14040_s1 + $0x2f8] sm:$0xff]   ;;  %v10579_v10 = vld [vmem:[%s14040_s1 + $0x320] sm:$0xff]  }
  0x27   :  { %6522 = vmatprep.mubr.bf16.mxu1 %v130_v11  ;;  %v10580_v11 = vld [vmem:[%s14040_s1 + $0x3a0] sm:$0xff]  }
  0x28   :  { %9301 = vmatpush3.bf16.msra.mxu0 %v10503_v46  ;;  %v10559_v46 = vld [vmem:[%s14040_s1 + $0x238] sm:$0xff]  }
  0x29   :  { %9323 = vmatpush3.bf16.msra.mxu1 %v10504_v47  ;;  %9302 = vmatprep.subr.bf16.mxu0 %v10505_v48  ;;  %v10560_v47 = vld [vmem:[%s14040_s1 + $0x2b8] sm:$0xff]   ;;  %v36_v48 = vld [vmem:[%s14041_s0 + $0x48] sm:$0xff] }
  0x2a   :  { %9324 = vmatprep.subr.bf16.mxu1 %v10506_v49  ;;  %v132_v49 = vpack.c.bf16 %v36_v48, %v36_v48  ;;  %v10609_v48 = vld [vmem:[%s14040_s1 + $0x460] sm:$0xff]  }
  0x2c   :  { %9303 = vmatpush3.bf16.msra.mxu0 %v10507_v50  ;;  %v38_v50 = vld [vmem:[%s14041_s0 + $0x58] sm:$0xff] }
  0x2d   :  { %9325 = vmatpush3.bf16.msra.mxu1 %v10508_v51  ;;  %9304 = vmatprep.subr.bf16.mxu0 %v10509_v52  ;;  %v35_v51 = vld [vmem:[%s14041_s0 + $0x40] sm:$0xff]  ;;  %v37_v52 = vld [vmem:[%s14041_s0 + $0x50] sm:$0xff] }
  0x2e   :  { %9326 = vmatprep.subr.bf16.mxu1 %v10510_v53  ;;  %v134_v53 = vpack.c.bf16 %v38_v50, %v38_v50  ;;  %v10611_v50 = vld [vmem:[%s14040_s1 + $0x420] sm:$0xff]  }
  0x30   :  { %9305 = vmatpush3.bf16.msra.mxu0 %v10511_v54  ;;  %v131_v54 = vpack.c.bf16 %v35_v51, %v35_v51  ;;  %v10612_v51 = vld [vmem:[%s14040_s1 + $0x4a0] sm:$0xff]  }
  0x31   :  { %9327 = vmatpush3.bf16.msra.mxu1 %v10512_v55  ;;  %9306 = vmatprep.subr.bf16.mxu0 %v10513_v56  ;;  %v133_v55 = vpack.c.bf16 %v37_v52, %v37_v52  ;;  %v10561_v56 = vld [vmem:[%s14040_s1 + $0x340] sm:$0xff]   ;;  %v10613_v52 = vld [vmem:[%s14040_s1 + $0x468] sm:$0xff]  }
  0x32   :  { %9328 = vmatprep.subr.bf16.mxu1 %v10514_v57  ;;  %v10562_v57 = vld [vmem:[%s14040_s1 + $0x3c0] sm:$0xff]  }
  0x34   :  { %9307 = vmatpush3.bf16.msra.mxu0 %v10515_v58  ;;  %v10563_v58 = vld [vmem:[%s14040_s1 + $0x300] sm:$0xff]  }
  0x35   :  { %9329 = vmatpush3.bf16.msra.mxu1 %v10516_v59  ;;  %9308 = vmatprep.subr.bf16.mxu0 %v10517_v60  ;;  %v10564_v59 = vld [vmem:[%s14040_s1 + $0x380] sm:$0xff]   ;;  %v10565_v60 = vld [vmem:[%s14040_s1 + $0x348] sm:$0xff]  }
  0x36   :  { %9330 = vmatprep.subr.bf16.mxu1 %v10518_v61  ;;  %v10566_v61 = vld [vmem:[%s14040_s1 + $0x3c8] sm:$0xff]  }
  0x38   :  { %9309 = vmatpush3.bf16.msra.mxu0 %v10519_v62  ;;  %v10567_v62 = vld [vmem:[%s14040_s1 + $0x308] sm:$0xff]  }
  0x39   :  { %9331 = vmatpush3.bf16.msra.mxu1 %v10520_v63  ;;  %9310 = vmatprep.subr.bf16.mxu0 %v10521_v0  ;;  %v10568_v63 = vld [vmem:[%s14040_s1 + $0x388] sm:$0xff]   ;;  %v10569_v0 = vld [vmem:[%s14040_s1 + $0x350] sm:$0xff]  }
  0x3a   :  { %9332 = vmatprep.subr.bf16.mxu1 %v10522_v1  ;;  %v10570_v1 = vld [vmem:[%s14040_s1 + $0x3d0] sm:$0xff]  }
  0x3c   :  { %9311 = vmatpush3.bf16.msra.mxu0 %v10523_v2  ;;  %v10571_v2 = vld [vmem:[%s14040_s1 + $0x310] sm:$0xff]  }
  0x3d   :  { %9333 = vmatpush3.bf16.msra.mxu1 %v10524_v3  ;;  %9312 = vmatprep.subr.bf16.mxu0 %v10525_v4  ;;  %v10572_v3 = vld [vmem:[%s14040_s1 + $0x390] sm:$0xff]   ;;  %v10573_v4 = vld [vmem:[%s14040_s1 + $0x358] sm:$0xff]  }
  0x3e   :  { %9334 = vmatprep.subr.bf16.mxu1 %v10526_v5  ;;  %v10574_v5 = vld [vmem:[%s14040_s1 + $0x3d8] sm:$0xff]  }
  0x40   :  { %9313 = vmatpush3.bf16.msra.mxu0 %v10527_v6  ;;  %v10575_v6 = vld [vmem:[%s14040_s1 + $0x318] sm:$0xff]  }
  0x41   :  { %9335 = vmatpush3.bf16.msra.mxu1 %v10528_v7  ;;  %9342 = vmatprep.subr.bf16.mxu0 %v10529_v16  ;;  %v10576_v7 = vld [vmem:[%s14040_s1 + $0x398] sm:$0xff]   ;;  %v10585_v16 = vld [vmem:[%s14040_s1 + $0x370] sm:$0xff]  }
  0x42   :  { %9364 = vmatprep.subr.bf16.mxu1 %v10530_v17  ;;  %v10586_v17 = vld [vmem:[%s14040_s1 + $0x3f0] sm:$0xff]  }
  0x43   :  { %6483 = vmatmul.mubr.bf16.vlgmr.msra.gmra.mrb[4].mxu0 %v127_v14  ;;  %v10583_v14 = vld [vmem:[%s14040_s1 + $0x328] sm:$0xff]  }
  0x44   :  { %6523 = vmatmul.mubr.bf16.vlgmr.msra.gmra.mrb[4].mxu1 %v129_v15  ;;  %9343 = vmatpush3.bf16.msra.mxu0 %v10531_v18  ;;  %v10584_v15 = vld [vmem:[%s14040_s1 + $0x3a8] sm:$0xff]   ;;  %v10587_v18 = vld [vmem:[%s14040_s1 + $0x330] sm:$0xff]  }
  0x45   :  { %9365 = vmatpush3.bf16.msra.mxu1 %v10532_v19  ;;  %9344 = vmatprep.subr.bf16.mxu0 %v10533_v20  ;;  %v10588_v19 = vld [vmem:[%s14040_s1 + $0x3b0] sm:$0xff]   ;;  %v10589_v20 = vld [vmem:[%s14040_s1 + $0x378] sm:$0xff]  }
  0x46   :  { %9366 = vmatprep.subr.bf16.mxu1 %v10534_v21  ;;  %6562 = vmatprep.mubr.bf16.mxu0 %v132_v49  ;;  %v10590_v21 = vld [vmem:[%s14040_s1 + $0x3f8] sm:$0xff]   ;;  %v10610_v49 = vld [vmem:[%s14040_s1 + $0x4e0] sm:$0xff]  }
  0x47   :  { %6602 = vmatprep.mubr.bf16.mxu1 %v134_v53  ;;  %v10614_v53 = vld [vmem:[%s14040_s1 + $0x4e8] sm:$0xff]  }
  0x48   :  { %9345 = vmatpush3.bf16.msra.mxu0 %v10535_v22  ;;  %v10591_v22 = vld [vmem:[%s14040_s1 + $0x338] sm:$0xff]  }
  0x49   :  { %9367 = vmatpush3.bf16.msra.mxu1 %v10536_v23  ;;  %9346 = vmatprep.subr.bf16.mxu0 %v10537_v24  ;;  %v10592_v23 = vld [vmem:[%s14040_s1 + $0x3b8] sm:$0xff]   ;;  %v40_v24 = vld [vmem:[%s14041_s0 + $0x68] sm:$0xff] }
  0x4a   :  { %9368 = vmatprep.subr.bf16.mxu1 %v10538_v25  ;;  %v42_v25 = vld [vmem:[%s14041_s0 + $0x78] sm:$0xff] }
  0x4c   :  { %9347 = vmatpush3.bf16.msra.mxu0 %v10539_v26  ;;  %v39_v26 = vld [vmem:[%s14041_s0 + $0x60] sm:$0xff] }
  0x4d   :  { %9369 = vmatpush3.bf16.msra.mxu1 %v10540_v27  ;;  %9348 = vmatprep.subr.bf16.mxu0 %v10541_v28  ;;  %v136_v27 = vpack.c.bf16 %v40_v24, %v40_v24  ;;  %v138_v28 = vpack.c.bf16 %v42_v25, %v42_v25  ;;  %v10641_v24 = vld [vmem:[%s14040_s1 + $0x560] sm:$0xff]  }
  0x4e   :  { %9370 = vmatprep.subr.bf16.mxu1 %v10542_v29  ;;  %v135_v29 = vpack.c.bf16 %v39_v26, %v39_v26  ;;  %v10642_v25 = vld [vmem:[%s14040_s1 + $0x5e0] sm:$0xff]  }
  0x4f   :  { %v10643_v26 = vld [vmem:[%s14040_s1 + $0x520] sm:$0xff]  }
  0x50   :  { %9349 = vmatpush3.bf16.msra.mxu0 %v10543_v30  ;;  %v41_v30 = vld [vmem:[%s14041_s0 + $0x70] sm:$0xff] }
  0x51   :  { %9371 = vmatpush3.bf16.msra.mxu1 %v10544_v31  ;;  %9350 = vmatprep.subr.bf16.mxu0 %v10545_v32  ;;  %v137_v31 = vpack.c.bf16 %v41_v30, %v41_v30  ;;  %v10593_v32 = vld [vmem:[%s14040_s1 + $0x440] sm:$0xff]   ;;  %v10647_v30 = vld [vmem:[%s14040_s1 + $0x528] sm:$0xff]  }
  0x52   :  { %9372 = vmatprep.subr.bf16.mxu1 %v10546_v33  ;;  %v10594_v33 = vld [vmem:[%s14040_s1 + $0x4c0] sm:$0xff]  }
  0x54   :  { %9351 = vmatpush3.bf16.msra.mxu0 %v10547_v34  ;;  %v10595_v34 = vld [vmem:[%s14040_s1 + $0x400] sm:$0xff]  }
  0x55   :  { %9373 = vmatpush3.bf16.msra.mxu1 %v10548_v35  ;;  %9352 = vmatprep.subr.bf16.mxu0 %v10549_v36  ;;  %v10596_v35 = vld [vmem:[%s14040_s1 + $0x480] sm:$0xff]   ;;  %v10597_v36 = vld [vmem:[%s14040_s1 + $0x448] sm:$0xff]  }
  0x56   :  { %9374 = vmatprep.subr.bf16.mxu1 %v10550_v37  ;;  %v10598_v37 = vld [vmem:[%s14040_s1 + $0x4c8] sm:$0xff]  }
  0x58   :  { %9353 = vmatpush3.bf16.msra.mxu0 %v10551_v38  ;;  %v10599_v38 = vld [vmem:[%s14040_s1 + $0x408] sm:$0xff]  }
  0x59   :  { %9375 = vmatpush3.bf16.msra.mxu1 %v10552_v39  ;;  %9354 = vmatprep.subr.bf16.mxu0 %v10553_v40  ;;  %v10600_v39 = vld [vmem:[%s14040_s1 + $0x488] sm:$0xff]   ;;  %v10601_v40 = vld [vmem:[%s14040_s1 + $0x450] sm:$0xff]  }
  0x5a   :  { %9376 = vmatprep.subr.bf16.mxu1 %v10554_v41  ;;  %v10602_v41 = vld [vmem:[%s14040_s1 + $0x4d0] sm:$0xff]  }
  0x5c   :  { %9355 = vmatpush3.bf16.msra.mxu0 %v10555_v42  ;;  %v10603_v42 = vld [vmem:[%s14040_s1 + $0x410] sm:$0xff]  }
  0x5d   :  { %9377 = vmatpush3.bf16.msra.mxu1 %v10556_v43  ;;  %9356 = vmatprep.subr.bf16.mxu0 %v10557_v44  ;;  %v10604_v43 = vld [vmem:[%s14040_s1 + $0x490] sm:$0xff]   ;;  %v10605_v44 = vld [vmem:[%s14040_s1 + $0x458] sm:$0xff]  }
  0x5e   :  { %9378 = vmatprep.subr.bf16.mxu1 %v10558_v45  ;;  %v10606_v45 = vld [vmem:[%s14040_s1 + $0x4d8] sm:$0xff]  }
  0x60   :  { %9357 = vmatpush3.bf16.msra.mxu0 %v10559_v46  ;;  %v10607_v46 = vld [vmem:[%s14040_s1 + $0x418] sm:$0xff]  }
  0x61   :  { %9379 = vmatpush3.bf16.msra.mxu1 %v10560_v47  ;;  %9386 = vmatprep.subr.bf16.mxu0 %v10561_v56  ;;  %v10608_v47 = vld [vmem:[%s14040_s1 + $0x498] sm:$0xff]   ;;  %v10617_v56 = vld [vmem:[%s14040_s1 + $0x470] sm:$0xff]  }
  0x62   :  { %9408 = vmatprep.subr.bf16.mxu1 %v10562_v57  ;;  %v10618_v57 = vld [vmem:[%s14040_s1 + $0x4f0] sm:$0xff]  }
  0x63   :  { %6563 = vmatmul.mubr.bf16.vlgmr.msra.gmra.mrb[8].mxu0 %v131_v54  ;;  %v10615_v54 = vld [vmem:[%s14040_s1 + $0x428] sm:$0xff]  }
  0x64   :  { %6603 = vmatmul.mubr.bf16.vlgmr.msra.gmra.mrb[8].mxu1 %v133_v55  ;;  %9387 = vmatpush3.bf16.msra.mxu0 %v10563_v58  ;;  %v10616_v55 = vld [vmem:[%s14040_s1 + $0x4a8] sm:$0xff]   ;;  %v10619_v58 = vld [vmem:[%s14040_s1 + $0x430] sm:$0xff]  }
  0x65   :  { %9409 = vmatpush3.bf16.msra.mxu1 %v10564_v59  ;;  %9388 = vmatprep.subr.bf16.mxu0 %v10565_v60  ;;  %v10620_v59 = vld [vmem:[%s14040_s1 + $0x4b0] sm:$0xff]   ;;  %v10621_v60 = vld [vmem:[%s14040_s1 + $0x478] sm:$0xff]  }
  0x66   :  { %9410 = vmatprep.subr.bf16.mxu1 %v10566_v61  ;;  %6642 = vmatprep.mubr.bf16.mxu0 %v136_v27  ;;  %v10622_v61 = vld [vmem:[%s14040_s1 + $0x4f8] sm:$0xff]   ;;  %v10644_v27 = vld [vmem:[%s14040_s1 + $0x5a0] sm:$0xff]  }
  0x67   :  { %6682 = vmatprep.mubr.bf16.mxu1 %v138_v28  ;;  %v10645_v28 = vld [vmem:[%s14040_s1 + $0x568] sm:$0xff]  }
  0x68   :  { %9389 = vmatpush3.bf16.msra.mxu0 %v10567_v62  ;;  %v10623_v62 = vld [vmem:[%s14040_s1 + $0x438] sm:$0xff]  }
  0x69   :  { %9411 = vmatpush3.bf16.msra.mxu1 %v10568_v63  ;;  %9390 = vmatprep.subr.bf16.mxu0 %v10569_v0  ;;  %v10624_v63 = vld [vmem:[%s14040_s1 + $0x4b8] sm:$0xff]   ;;  %v44_v0 = vld [vmem:[%s14041_s0 + $0x88] sm:$0xff] }
  0x6a   :  { %9412 = vmatprep.subr.bf16.mxu1 %v10570_v1  ;;  %v46_v1 = vld [vmem:[%s14041_s0 + $0x98] sm:$0xff] }
  0x6c   :  { %9391 = vmatpush3.bf16.msra.mxu0 %v10571_v2  ;;  %v140_v2 = vpack.c.bf16 %v44_v0, %v44_v0  ;;  %v10673_v0 = vld [vmem:[%s14040_s1 + $0x660] sm:$0xff]  }
  0x6d   :  { %9413 = vmatpush3.bf16.msra.mxu1 %v10572_v3  ;;  %9392 = vmatprep.subr.bf16.mxu0 %v10573_v4  ;;  %v142_v3 = vpack.c.bf16 %v46_v1, %v46_v1  ;;  %v43_v4 = vld [vmem:[%s14041_s0 + $0x80] sm:$0xff] }
  0x6e   :  { %9414 = vmatprep.subr.bf16.mxu1 %v10574_v5  ;;  %v45_v5 = vld [vmem:[%s14041_s0 + $0x90] sm:$0xff]  ;;  %v10674_v1 = vld [vmem:[%s14040_s1 + $0x6e0] sm:$0xff]  }
  0x70   :  { %9393 = vmatpush3.bf16.msra.mxu0 %v10575_v6  ;;  %v139_v6 = vpack.c.bf16 %v43_v4, %v43_v4  ;;  %v10677_v4 = vld [vmem:[%s14040_s1 + $0x668] sm:$0xff]  }
  0x71   :  { %9415 = vmatpush3.bf16.msra.mxu1 %v10576_v7  ;;  %9394 = vmatprep.subr.bf16.mxu0 %v10577_v8  ;;  %v141_v7 = vpack.c.bf16 %v45_v5, %v45_v5  ;;  %v10625_v8 = vld [vmem:[%s14040_s1 + $0x540] sm:$0xff]   ;;  %v10678_v5 = vld [vmem:[%s14040_s1 + $0x6e8] sm:$0xff]  }
  0x72   :  { %9416 = vmatprep.subr.bf16.mxu1 %v10578_v9  ;;  %v10626_v9 = vld [vmem:[%s14040_s1 + $0x5c0] sm:$0xff]  }
  0x74   :  { %9395 = vmatpush3.bf16.msra.mxu0 %v10579_v10  ;;  %v10627_v10 = vld [vmem:[%s14040_s1 + $0x500] sm:$0xff]  }
  0x75   :  { %9417 = vmatpush3.bf16.msra.mxu1 %v10580_v11  ;;  %9396 = vmatprep.subr.bf16.mxu0 %v10581_v12  ;;  %v10628_v11 = vld [vmem:[%s14040_s1 + $0x580] sm:$0xff]   ;;  %v10629_v12 = vld [vmem:[%s14040_s1 + $0x548] sm:$0xff]  }
  0x76   :  { %9418 = vmatprep.subr.bf16.mxu1 %v10582_v13  ;;  %v10630_v13 = vld [vmem:[%s14040_s1 + $0x5c8] sm:$0xff]  }
  0x78   :  { %9397 = vmatpush3.bf16.msra.mxu0 %v10583_v14  ;;  %v10631_v14 = vld [vmem:[%s14040_s1 + $0x508] sm:$0xff]  }
  0x79   :  { %9419 = vmatpush3.bf16.msra.mxu1 %v10584_v15  ;;  %9398 = vmatprep.subr.bf16.mxu0 %v10585_v16  ;;  %v10632_v15 = vld [vmem:[%s14040_s1 + $0x588] sm:$0xff]   ;;  %v10633_v16 = vld [vmem:[%s14040_s1 + $0x550] sm:$0xff]  }
  0x7a   :  { %9420 = vmatprep.subr.bf16.mxu1 %v10586_v17  ;;  %v10634_v17 = vld [vmem:[%s14040_s1 + $0x5d0] sm:$0xff]  }
  0x7c   :  { %9399 = vmatpush3.bf16.msra.mxu0 %v10587_v18  ;;  %v10635_v18 = vld [vmem:[%s14040_s1 + $0x510] sm:$0xff]  }
  0x7d   :  { %9421 = vmatpush3.bf16.msra.mxu1 %v10588_v19  ;;  %9400 = vmatprep.subr.bf16.mxu0 %v10589_v20  ;;  %v10636_v19 = vld [vmem:[%s14040_s1 + $0x590] sm:$0xff]   ;;  %v10637_v20 = vld [vmem:[%s14040_s1 + $0x558] sm:$0xff]  }
  0x7e   :  { %9422 = vmatprep.subr.bf16.mxu1 %v10590_v21  ;;  %v10638_v21 = vld [vmem:[%s14040_s1 + $0x5d8] sm:$0xff]  }
  0x80   :  { %9401 = vmatpush3.bf16.msra.mxu0 %v10591_v22  ;;  %v10639_v22 = vld [vmem:[%s14040_s1 + $0x518] sm:$0xff]  }
  0x81   :  { %9423 = vmatpush3.bf16.msra.mxu1 %v10592_v23  ;;  %9430 = vmatprep.subr.bf16.mxu0 %v10593_v32  ;;  %v10640_v23 = vld [vmem:[%s14040_s1 + $0x598] sm:$0xff]   ;;  %v10649_v32 = vld [vmem:[%s14040_s1 + $0x570] sm:$0xff]  }
  0x82   :  { %9452 = vmatprep.subr.bf16.mxu1 %v10594_v33  ;;  %v10650_v33 = vld [vmem:[%s14040_s1 + $0x5f0] sm:$0xff]  }
  0x83   :  { %6643 = vmatmul.mubr.bf16.vlgmr.msra.gmra.mrb[12].mxu0 %v135_v29  ;;  %v10646_v29 = vld [vmem:[%s14040_s1 + $0x5e8] sm:$0xff]  }
  0x84   :  { %6683 = vmatmul.mubr.bf16.vlgmr.msra.gmra.mrb[12].mxu1 %v137_v31  ;;  %9431 = vmatpush3.bf16.msra.mxu0 %v10595_v34  ;;  %v10648_v31 = vld [vmem:[%s14040_s1 + $0x5a8] sm:$0xff]   ;;  %v10651_v34 = vld [vmem:[%s14040_s1 + $0x530] sm:$0xff]  }
  0x85   :  { %9453 = vmatpush3.bf16.msra.mxu1 %v10596_v35  ;;  %9432 = vmatprep.subr.bf16.mxu0 %v10597_v36  ;;  %v10652_v35 = vld [vmem:[%s14040_s1 + $0x5b0] sm:$0xff]   ;;  %v10653_v36 = vld [vmem:[%s14040_s1 + $0x578] sm:$0xff]  }
  0x86   :  { %9454 = vmatprep.subr.bf16.mxu1 %v10598_v37  ;;  %6722 = vmatprep.mubr.bf16.mxu0 %v140_v2  ;;  %v10654_v37 = vld [vmem:[%s14040_s1 + $0x5f8] sm:$0xff]   ;;  %v10675_v2 = vld [vmem:[%s14040_s1 + $0x620] sm:$0xff]  }
  0x87   :  { %6762 = vmatprep.mubr.bf16.mxu1 %v142_v3  ;;  %v10676_v3 = vld [vmem:[%s14040_s1 + $0x6a0] sm:$0xff]  }
  0x88   :  { %9433 = vmatpush3.bf16.msra.mxu0 %v10599_v38  ;;  %v10655_v38 = vld [vmem:[%s14040_s1 + $0x538] sm:$0xff]  }
  0x89   :  { %9455 = vmatpush3.bf16.msra.mxu1 %v10600_v39  ;;  %9434 = vmatprep.subr.bf16.mxu0 %v10601_v40  ;;  %v10656_v39 = vld [vmem:[%s14040_s1 + $0x5b8] sm:$0xff]   ;;  %v48_v40 = vld [vmem:[%s14041_s0 + $0xa8] sm:$0xff] }
  0x8a   :  { %9456 = vmatprep.subr.bf16.mxu1 %v10602_v41  ;;  %v144_v41 = vpack.c.bf16 %v48_v40, %v48_v40 }
  0x8c   :  { %9435 = vmatpush3.bf16.msra.mxu0 %v10603_v42  ;;  %v50_v42 = vld [vmem:[%s14041_s0 + $0xb8] sm:$0xff] }
  0x8d   :  { %9457 = vmatpush3.bf16.msra.mxu1 %v10604_v43  ;;  %9436 = vmatprep.subr.bf16.mxu0 %v10605_v44  ;;  %v47_v43 = vld [vmem:[%s14041_s0 + $0xa0] sm:$0xff]  ;;  %v49_v44 = vld [vmem:[%s14041_s0 + $0xb0] sm:$0xff] }
  0x8e   :  { %9458 = vmatprep.subr.bf16.mxu1 %v10606_v45  ;;  %v146_v45 = vpack.c.bf16 %v50_v42, %v50_v42 }
  0x90   :  { %9437 = vmatpush3.bf16.msra.mxu0 %v10607_v46  ;;  %v143_v46 = vpack.c.bf16 %v47_v43, %v47_v43  ;;  %v10705_v43 = vld [vmem:[%s14040_s1 + $0x760] sm:$0xff]  }
  0x91   :  { %9459 = vmatpush3.bf16.msra.mxu1 %v10608_v47  ;;  %9438 = vmatprep.subr.bf16.mxu0 %v10609_v48  ;;  %v145_v47 = vpack.c.bf16 %v49_v44, %v49_v44  ;;  %v10657_v48 = vld [vmem:[%s14040_s1 + $0x640] sm:$0xff]  }
  0x92   :  { %9460 = vmatprep.subr.bf16.mxu1 %v10610_v49  ;;  %v10658_v49 = vld [vmem:[%s14040_s1 + $0x6c0] sm:$0xff]  }
  0x94   :  { %9439 = vmatpush3.bf16.msra.mxu0 %v10611_v50  ;;  %v10659_v50 = vld [vmem:[%s14040_s1 + $0x600] sm:$0xff]  }
  0x95   :  { %9461 = vmatpush3.bf16.msra.mxu1 %v10612_v51  ;;  %9440 = vmatprep.subr.bf16.mxu0 %v10613_v52  ;;  %v10660_v51 = vld [vmem:[%s14040_s1 + $0x680] sm:$0xff]   ;;  %v10661_v52 = vld [vmem:[%s14040_s1 + $0x648] sm:$0xff]  }
  0x96   :  { %9462 = vmatprep.subr.bf16.mxu1 %v10614_v53  ;;  %v10662_v53 = vld [vmem:[%s14040_s1 + $0x6c8] sm:$0xff]  }
  0x98   :  { %9441 = vmatpush3.bf16.msra.mxu0 %v10615_v54  ;;  %v10663_v54 = vld [vmem:[%s14040_s1 + $0x608] sm:$0xff]  }
  0x99   :  { %9463 = vmatpush3.bf16.msra.mxu1 %v10616_v55  ;;  %9442 = vmatprep.subr.bf16.mxu0 %v10617_v56  ;;  %v10664_v55 = vld [vmem:[%s14040_s1 + $0x688] sm:$0xff]   ;;  %v10665_v56 = vld [vmem:[%s14040_s1 + $0x650] sm:$0xff]  }
  0x9a   :  { %9464 = vmatprep.subr.bf16.mxu1 %v10618_v57  ;;  %v10666_v57 = vld [vmem:[%s14040_s1 + $0x6d0] sm:$0xff]  }
  0x9c   :  { %9443 = vmatpush3.bf16.msra.mxu0 %v10619_v58  ;;  %v10667_v58 = vld [vmem:[%s14040_s1 + $0x610] sm:$0xff]  }
  0x9d   :  { %9465 = vmatpush3.bf16.msra.mxu1 %v10620_v59  ;;  %9444 = vmatprep.subr.bf16.mxu0 %v10621_v60  ;;  %v10668_v59 = vld [vmem:[%s14040_s1 + $0x690] sm:$0xff]   ;;  %v10669_v60 = vld [vmem:[%s14040_s1 + $0x658] sm:$0xff]  }
  0x9e   :  { %9466 = vmatprep.subr.bf16.mxu1 %v10622_v61  ;;  %v10670_v61 = vld [vmem:[%s14040_s1 + $0x6d8] sm:$0xff]  }
  0xa0   :  { %9445 = vmatpush3.bf16.msra.mxu0 %v10623_v62  ;;  %v10671_v62 = vld [vmem:[%s14040_s1 + $0x618] sm:$0xff]  }
  0xa1   :  { %9467 = vmatpush3.bf16.msra.mxu1 %v10624_v63  ;;  %9474 = vmatprep.subr.bf16.mxu0 %v10625_v8  ;;  %v10672_v63 = vld [vmem:[%s14040_s1 + $0x698] sm:$0xff]   ;;  %v10681_v8 = vld [vmem:[%s14040_s1 + $0x670] sm:$0xff]  }
  0xa2   :  { %9496 = vmatprep.subr.bf16.mxu1 %v10626_v9  ;;  %v10682_v9 = vld [vmem:[%s14040_s1 + $0x6f0] sm:$0xff]  }
  0xa3   :  { %6723 = vmatmul.mubr.bf16.vlgmr.msra.gmra.mrb[16].mxu0 %v139_v6  ;;  %v10679_v6 = vld [vmem:[%s14040_s1 + $0x628] sm:$0xff]  }
  0xa4   :  { %6763 = vmatmul.mubr.bf16.vlgmr.msra.gmra.mrb[16].mxu1 %v141_v7  ;;  %9475 = vmatpush3.bf16.msra.mxu0 %v10627_v10  ;;  %v10680_v7 = vld [vmem:[%s14040_s1 + $0x6a8] sm:$0xff]   ;;  %v10683_v10 = vld [vmem:[%s14040_s1 + $0x630] sm:$0xff]  }
  0xa5   :  { %9497 = vmatpush3.bf16.msra.mxu1 %v10628_v11  ;;  %9476 = vmatprep.subr.bf16.mxu0 %v10629_v12  ;;  %v10684_v11 = vld [vmem:[%s14040_s1 + $0x6b0] sm:$0xff]   ;;  %v10685_v12 = vld [vmem:[%s14040_s1 + $0x678] sm:$0xff]  }
  0xa6   :  { %9498 = vmatprep.subr.bf16.mxu1 %v10630_v13  ;;  %6802 = vmatprep.mubr.bf16.mxu0 %v144_v41  ;;  %v10686_v13 = vld [vmem:[%s14040_s1 + $0x6f8] sm:$0xff]  }
  0xa7   :  { %6842 = vmatprep.mubr.bf16.mxu1 %v146_v45  ;;  %v10704_v41 = vld [vmem:[%s14040_s1 + $0x798] sm:$0xff]  }
  0xa8   :  { %9477 = vmatpush3.bf16.msra.mxu0 %v10631_v14  ;;  %v10687_v14 = vld [vmem:[%s14040_s1 + $0x638] sm:$0xff]  }
  0xa9   :  { %9499 = vmatpush3.bf16.msra.mxu1 %v10632_v15  ;;  %9478 = vmatprep.subr.bf16.mxu0 %v10633_v16  ;;  %v10688_v15 = vld [vmem:[%s14040_s1 + $0x6b8] sm:$0xff]   ;;  %v52_v16 = vld [vmem:[%s14041_s0 + $0xc8] sm:$0xff] }
  0xaa   :  { %9500 = vmatprep.subr.bf16.mxu1 %v10634_v17  ;;  %v54_v17 = vld [vmem:[%s14041_s0 + $0xd8] sm:$0xff] }
  0xac   :  { %9479 = vmatpush3.bf16.msra.mxu0 %v10635_v18  ;;  %v51_v18 = vld [vmem:[%s14041_s0 + $0xc0] sm:$0xff] }
  0xad   :  { %9501 = vmatpush3.bf16.msra.mxu1 %v10636_v19  ;;  %9480 = vmatprep.subr.bf16.mxu0 %v10637_v20  ;;  %v148_v19 = vpack.c.bf16 %v52_v16, %v52_v16  ;;  %v150_v20 = vpack.c.bf16 %v54_v17, %v54_v17  ;;  %v10724_v16 = vld [vmem:[%s14040_s1 + $0x880] sm:$0xff]   ;;  %v10725_v17 = vld [vmem:[%s14040_s1 + $0x848] sm:$0xff]  }
  0xae   :  { %9502 = vmatprep.subr.bf16.mxu1 %v10638_v21  ;;  %v147_v21 = vpack.c.bf16 %v51_v18, %v51_v18  ;;  %v10726_v18 = vld [vmem:[%s14040_s1 + $0x8c8] sm:$0xff]  }
  0xb0   :  { %9481 = vmatpush3.bf16.msra.mxu0 %v10639_v22  ;;  %v53_v22 = vld [vmem:[%s14041_s0 + $0xd0] sm:$0xff] }
  0xb1   :  { %9503 = vmatpush3.bf16.msra.mxu1 %v10640_v23  ;;  %9482 = vmatprep.subr.bf16.mxu0 %v10641_v24  ;;  %v149_v23 = vpack.c.bf16 %v53_v22, %v53_v22  ;;  %v10689_v24 = vld [vmem:[%s14040_s1 + $0x740] sm:$0xff]   ;;  %v10730_v22 = vld [vmem:[%s14040_s1 + $0x8d0] sm:$0xff]  }
  0xb2   :  { %9504 = vmatprep.subr.bf16.mxu1 %v10642_v25  ;;  %v10690_v25 = vld [vmem:[%s14040_s1 + $0x7c0] sm:$0xff]  }
  0xb4   :  { %9483 = vmatpush3.bf16.msra.mxu0 %v10643_v26  ;;  %v10691_v26 = vld [vmem:[%s14040_s1 + $0x700] sm:$0xff]  }
  0xb5   :  { %9505 = vmatpush3.bf16.msra.mxu1 %v10644_v27  ;;  %9484 = vmatprep.subr.bf16.mxu0 %v10645_v28  ;;  %v10692_v27 = vld [vmem:[%s14040_s1 + $0x780] sm:$0xff]   ;;  %v10693_v28 = vld [vmem:[%s14040_s1 + $0x748] sm:$0xff]  }
  0xb6   :  { %9506 = vmatprep.subr.bf16.mxu1 %v10646_v29  ;;  %v10694_v29 = vld [vmem:[%s14040_s1 + $0x7c8] sm:$0xff]  }
  0xb8   :  { %9485 = vmatpush3.bf16.msra.mxu0 %v10647_v30  ;;  %v10695_v30 = vld [vmem:[%s14040_s1 + $0x708] sm:$0xff]  }
  0xb9   :  { %9507 = vmatpush3.bf16.msra.mxu1 %v10648_v31  ;;  %9486 = vmatprep.subr.bf16.mxu0 %v10649_v32  ;;  %v10696_v31 = vld [vmem:[%s14040_s1 + $0x788] sm:$0xff]   ;;  %v10697_v32 = vld [vmem:[%s14040_s1 + $0x750] sm:$0xff]  }
  0xba   :  { %9508 = vmatprep.subr.bf16.mxu1 %v10650_v33  ;;  %v10698_v33 = vld [vmem:[%s14040_s1 + $0x7d0] sm:$0xff]  }
  0xbc   :  { %9487 = vmatpush3.bf16.msra.mxu0 %v10651_v34  ;;  %v10699_v34 = vld [vmem:[%s14040_s1 + $0x710] sm:$0xff]  }
  0xbd   :  { %9509 = vmatpush3.bf16.msra.mxu1 %v10652_v35  ;;  %9488 = vmatprep.subr.bf16.mxu0 %v10653_v36  ;;  %v10700_v35 = vld [vmem:[%s14040_s1 + $0x790] sm:$0xff]   ;;  %v10701_v36 = vld [vmem:[%s14040_s1 + $0x758] sm:$0xff]  }
  0xbe   :  { %9510 = vmatprep.subr.bf16.mxu1 %v10654_v37  ;;  %v10702_v37 = vld [vmem:[%s14040_s1 + $0x7d8] sm:$0xff]  }
  0xc0   :  { %9489 = vmatpush3.bf16.msra.mxu0 %v10655_v38 }
  0xc1   :  { %9511 = vmatpush3.bf16.msra.mxu1 %v10656_v39  ;;  %9518 = vmatprep.subr.bf16.mxu0 %v10657_v48  ;;  %v10703_v39 = vld [vmem:[%s14040_s1 + $0x718] sm:$0xff]  }
  0xc2   :  { %9540 = vmatprep.subr.bf16.mxu1 %v10658_v49  ;;  %v10707_v49 = vld [vmem:[%s14040_s1 + $0x720] sm:$0xff]  }
  0xc3   :  { %6803 = vmatmul.mubr.bf16.vlgmr.msra.gmra.mrb[20].mxu0 %v143_v46  ;;  %v10706_v46 = vld [vmem:[%s14040_s1 + $0x7e0] sm:$0xff]  }
  0xc4   :  { %6843 = vmatmul.mubr.bf16.vlgmr.msra.gmra.mrb[20].mxu1 %v145_v47  ;;  %9519 = vmatpush3.bf16.msra.mxu0 %v10659_v50 }
  0xc5   :  { %9541 = vmatpush3.bf16.msra.mxu1 %v10660_v51  ;;  %9520 = vmatprep.subr.bf16.mxu0 %v10661_v52  ;;  %v10708_v51 = vld [vmem:[%s14040_s1 + $0x7a0] sm:$0xff]  }
  0xc6   :  { %9542 = vmatprep.subr.bf16.mxu1 %v10662_v53  ;;  %6882 = vmatprep.mubr.bf16.mxu0 %v148_v19  ;;  %v8483_v52 = vld [vmem:[%s14042_s2] ss:$0 sm:$0xff]  ;;  %v10727_v19 = vld [vmem:[%s14040_s1 + $0x808] sm:$0xff]  }
  0xc7   :  { %6922 = vmatprep.mubr.bf16.mxu1 %v150_v20  ;;  %v10728_v20 = vld [vmem:[%s14040_s1 + $0x888] sm:$0xff]  }
  0xc8   :  { %9521 = vmatpush3.bf16.msra.mxu0 %v10663_v54 }
  0xc9   :  { %9543 = vmatpush3.bf16.msra.mxu1 %v10664_v55  ;;  %9522 = vmatprep.subr.bf16.mxu0 %v10665_v56  ;;  %v10709_v55 = vld [vmem:[%s14040_s1 + $0x768] sm:$0xff]  }
  0xca   :  { %9544 = vmatprep.subr.bf16.mxu1 %v10666_v57  ;;  %v10710_v57 = vld [vmem:[%s14040_s1 + $0x7e8] sm:$0xff]  }
  0xcc   :  { %9523 = vmatpush3.bf16.msra.mxu0 %v10667_v58 }
  0xcd   :  { %9545 = vmatpush3.bf16.msra.mxu1 %v10668_v59  ;;  %9524 = vmatprep.subr.bf16.mxu0 %v10669_v60  ;;  %v10711_v59 = vld [vmem:[%s14040_s1 + $0x728] sm:$0xff]  }
  0xce   :  { %9546 = vmatprep.subr.bf16.mxu1 %v10670_v61  ;;  %v10712_v60 = vld [vmem:[%s14040_s1 + $0x7a8] sm:$0xff]   ;;  %v10713_v61 = vld [vmem:[%s14040_s1 + $0x770] sm:$0xff]  }
  0xd0   :  { %9525 = vmatpush3.bf16.msra.mxu0 %v10671_v62  ;;  %v10714_v62 = vld [vmem:[%s14040_s1 + $0x7f0] sm:$0xff]  }
  0xd1   :  { %9547 = vmatpush3.bf16.msra.mxu1 %v10672_v63  ;;  %9526 = vmatprep.subr.bf16.mxu0 %v10673_v0  ;;  %v10715_v63 = vld [vmem:[%s14040_s1 + $0x730] sm:$0xff]  }
  0xd2   :  { %9548 = vmatprep.subr.bf16.mxu1 %v10674_v1  ;;  %v10716_v0 = vld [vmem:[%s14040_s1 + $0x7b0] sm:$0xff]   ;;  %v10717_v1 = vld [vmem:[%s14040_s1 + $0x778] sm:$0xff]  }
  0xd4   :  { %9527 = vmatpush3.bf16.msra.mxu0 %v10675_v2  ;;  %v10718_v2 = vld [vmem:[%s14040_s1 + $0x7f8] sm:$0xff]  }
  0xd5   :  { %9549 = vmatpush3.bf16.msra.mxu1 %v10676_v3  ;;  %9528 = vmatprep.subr.bf16.mxu0 %v10677_v4  ;;  %v10719_v3 = vld [vmem:[%s14040_s1 + $0x738] sm:$0xff]  }
  0xd6   :  { %9550 = vmatprep.subr.bf16.mxu1 %v10678_v5  ;;  %v10720_v4 = vld [vmem:[%s14040_s1 + $0x7b8] sm:$0xff]   ;;  %v56_v5 = vld [vmem:[%s14041_s0 + $0xe8] sm:$0xff] }
  0xd8   :  { %9529 = vmatpush3.bf16.msra.mxu0 %v10679_v6  ;;  %v152_v6 = vpack.c.bf16 %v56_v5, %v56_v5  ;;  %v10757_v5 = vld [vmem:[%s14040_s1 + $0x948] sm:$0xff]  }
  0xd9   :  { %9551 = vmatpush3.bf16.msra.mxu1 %v10680_v7  ;;  %9530 = vmatprep.subr.bf16.mxu0 %v10681_v8  ;;  %v58_v7 = vld [vmem:[%s14041_s0 + $0xf8] sm:$0xff]  ;;  %v55_v8 = vld [vmem:[%s14041_s0 + $0xe0] sm:$0xff] }
  0xda   :  { %9552 = vmatprep.subr.bf16.mxu1 %v10682_v9  ;;  %v57_v9 = vld [vmem:[%s14041_s0 + $0xf0] sm:$0xff] }
  0xdc   :  { %9531 = vmatpush3.bf16.msra.mxu0 %v10683_v10  ;;  %v154_v10 = vpack.c.bf16 %v58_v7, %v58_v7  ;;  %v10759_v7 = vld [vmem:[%s14040_s1 + $0x908] sm:$0xff]  }
  0xdd   :  { %9553 = vmatpush3.bf16.msra.mxu1 %v10684_v11  ;;  %9532 = vmatprep.subr.bf16.mxu0 %v10685_v12  ;;  %v151_v11 = vpack.c.bf16 %v55_v8, %v55_v8  ;;  %v153_v12 = vpack.c.bf16 %v57_v9, %v57_v9  ;;  %v10760_v8 = vld [vmem:[%s14040_s1 + $0x988] sm:$0xff]   ;;  %v10761_v9 = vld [vmem:[%s14040_s1 + $0x950] sm:$0xff]  }
  0xde   :  { %9554 = vmatprep.subr.bf16.mxu1 %v10686_v13  ;;  %v10721_v13 = vld [vmem:[%s14040_s1 + $0x840] sm:$0xff]  }
  0xe0   :  { %9533 = vmatpush3.bf16.msra.mxu0 %v10687_v14  ;;  %v10722_v14 = vld [vmem:[%s14040_s1 + $0x8c0] sm:$0xff]  }
  0xe1   :  { %9555 = vmatpush3.bf16.msra.mxu1 %v10688_v15  ;;  %9562 = vmatprep.subr.bf16.mxu0 %v10689_v24  ;;  %v10723_v15 = vld [vmem:[%s14040_s1 + $0x800] sm:$0xff]   ;;  %v10732_v24 = vld [vmem:[%s14040_s1 + $0x890] sm:$0xff]  }
  0xe2   :  { %9584 = vmatprep.subr.bf16.mxu1 %v10690_v25  ;;  %v10733_v25 = vld [vmem:[%s14040_s1 + $0x858] sm:$0xff]  }
  0xe3   :  { %6883 = vmatmul.mubr.bf16.vlgmr.msra.gmra.mrb[24].mxu0 %v147_v21  ;;  %v10729_v21 = vld [vmem:[%s14040_s1 + $0x850] sm:$0xff]  }
  0xe4   :  { %6923 = vmatmul.mubr.bf16.vlgmr.msra.gmra.mrb[24].mxu1 %v149_v23  ;;  %9563 = vmatpush3.bf16.msra.mxu0 %v10691_v26  ;;  %v10731_v23 = vld [vmem:[%s14040_s1 + $0x810] sm:$0xff]   ;;  %v10734_v26 = vld [vmem:[%s14040_s1 + $0x8d8] sm:$0xff]  }
  0xe5   :  { %9585 = vmatpush3.bf16.msra.mxu1 %v10692_v27  ;;  %9564 = vmatprep.subr.bf16.mxu0 %v10693_v28  ;;  %v10735_v28 = vld [vmem:[%s14040_s1 + $0x818] sm:$0xff]  }
  0xe6   :  { %9586 = vmatprep.subr.bf16.mxu1 %v10694_v29  ;;  %6962 = vmatprep.mubr.bf16.mxu0 %v152_v6  ;;  %v10758_v6 = vld [vmem:[%s14040_s1 + $0x9c8] sm:$0xff]  }
  0xe7   :  { %7002 = vmatprep.mubr.bf16.mxu1 %v154_v10  ;;  %v10762_v10 = vld [vmem:[%s14040_s1 + $0x9d0] sm:$0xff]  }
  0xe8   :  { %9565 = vmatpush3.bf16.msra.mxu0 %v10695_v30  ;;  %v10736_v30 = vld [vmem:[%s14040_s1 + $0x898] sm:$0xff]  }
  0xe9   :  { %9587 = vmatpush3.bf16.msra.mxu1 %v10696_v31  ;;  %9566 = vmatprep.subr.bf16.mxu0 %v10697_v32  ;;  %v10737_v32 = vld [vmem:[%s14040_s1 + $0x860] sm:$0xff]  }
  0xea   :  { %9588 = vmatprep.subr.bf16.mxu1 %v10698_v33 }
  0xec   :  { %9567 = vmatpush3.bf16.msra.mxu0 %v10699_v34 }
  0xed   :  { %9589 = vmatpush3.bf16.msra.mxu1 %v10700_v35  ;;  %9568 = vmatprep.subr.bf16.mxu0 %v10701_v36  ;;  %v10738_v35 = vld [vmem:[%s14040_s1 + $0x8e0] sm:$0xff]  }
  0xee   :  { %9590 = vmatprep.subr.bf16.mxu1 %v10702_v37 }
  0xf0   :  { %9569 = vmatpush3.bf16.msra.mxu0 %v10703_v39 }
  0xf1   :  { %9591 = vmatpush3.bf16.msra.mxu1 %v10704_v41  ;;  %9570 = vmatprep.subr.bf16.mxu0 %v10705_v43  ;;  %v10740_v41 = vld [vmem:[%s14040_s1 + $0x8a0] sm:$0xff]  }
  0xf2   :  { %9592 = vmatprep.subr.bf16.mxu1 %v10706_v46  ;;  %v10742_v46 = vld [vmem:[%s14040_s1 + $0x8e8] sm:$0xff]  }
  0xf4   :  { %9571 = vmatpush3.bf16.msra.mxu0 %v10707_v49  ;;  %v10745_v49 = vld [vmem:[%s14040_s1 + $0x870] sm:$0xff]  }
  0xf5   :  { %9593 = vmatpush3.bf16.msra.mxu1 %v10708_v51  ;;  %9572 = vmatprep.subr.bf16.mxu0 %v10709_v55  ;;  %v10747_v51 = vld [vmem:[%s14040_s1 + $0x830] sm:$0xff]   ;;  %v10751_v55 = vld [vmem:[%s14040_s1 + $0x838] sm:$0xff]  }
  0xf6   :  { %v9270_v38 = vpop.f32.mrb[0].mxu0  ;;  %9594 = vmatprep.subr.bf16.mxu1 %v10710_v57  ;;  %v60_v57 = vld [vmem:[%s14041_s0 + $0x108] sm:$0xff] }
  0xf7   :  { %v9292_v40 = vpop.f32.mrb[0].mxu1  ;;  %v9271_v42 = vpop.f32.mrb[1].mxu0 }
  0xf8   :  { %v9272_v44 = vadd.f32 %v9271_v42, %v9270_v38  ;;  %v9293_v45 = vpop.f32.mrb[1].mxu1  ;;  %v9273_v48 = vpop.f32.mrb[2].mxu0  ;;  %9573 = vmatpush3.bf16.msra.mxu0 %v10711_v59  ;;  %v10739_v38 = vld [vmem:[%s14040_s1 + $0x820] sm:$0xff]  }
  0xf9   :  { %v9294_v47 = vadd.f32 %v9293_v45, %v9292_v40  ;;  %v9295_v50 = vpop.f32.mrb[2].mxu1  ;;  %v9274_v53 = vpop.f32.mrb[3].mxu0  ;;  %9595 = vmatpush3.bf16.msra.mxu1 %v10712_v60  ;;  %9574 = vmatprep.subr.bf16.mxu0 %v10713_v61  ;;  %v10744_v48 = vld [vmem:[%s14040_s1 + $0x8a8] sm:$0xff]   ;;  %v59_v59 = vld [vmem:[%s14041_s0 + $0x100] sm:$0xff]  ;;  %v156_v60 = vpack.c.bf16 %v60_v57, %v60_v57 }
  0xfa   :  { %v6405_v54 = vadd.f32 %v9272_v44, %v8483_v52  ;;  %v9296_v56 = vpop.f32.mrb[3].mxu1  ;;  %9596 = vmatprep.subr.bf16.mxu1 %v10714_v62  ;;  %v10741_v44 = vld [vmem:[%s14040_s1 + $0x868] sm:$0xff]   ;;  %v10746_v50 = vld [vmem:[%s14040_s1 + $0x8f0] sm:$0xff]   ;;  %v10749_v53 = vld [vmem:[%s14040_s1 + $0x878] sm:$0xff]   ;;  %v155_v62 = vpack.c.bf16 %v59_v59, %v59_v59 }
  0xfb   :  { %v10748_v52 = vld [vmem:[%s14040_s1 + $0x8b0] sm:$0xff]   ;;  %v10752_v56 = vld [vmem:[%s14040_s1 + $0x8b8] sm:$0xff]   ;;  %v10789_v57 = vld [vmem:[%s14040_s1 + $0xa48] sm:$0xff]  }
  0xfc   :  { %v12101_v58 = vadd.f32 %v9294_v47, %v6405_v54  ;;  %9575 = vmatpush3.bf16.msra.mxu0 %v10715_v63  ;;  %v10743_v47 = vld [vmem:[%s14040_s1 + $0x828] sm:$0xff]   ;;  %v10750_v54 = vld [vmem:[%s14040_s1 + $0x8f8] sm:$0xff]   ;;  %v61_v63 = vld [vmem:[%s14041_s0 + $0x110] sm:$0xff] }
  0xfd   :  { %9597 = vmatpush3.bf16.msra.mxu1 %v10716_v0  ;;  %9576 = vmatprep.subr.bf16.mxu0 %v10717_v1  ;;  %v157_v0 = vpack.c.bf16 %v61_v63, %v61_v63  ;;  %v10753_v1 = vld [vmem:[%s14040_s1 + $0x940] sm:$0xff]   ;;  %v10791_v59 = vld [vmem:[%s14040_s1 + $0xa08] sm:$0xff]   ;;  %v10795_v63 = vld [vmem:[%s14040_s1 + $0xa10] sm:$0xff]  }
  0xfe   :  { %9598 = vmatprep.subr.bf16.mxu1 %v10718_v2  ;;  %v10754_v2 = vld [vmem:[%s14040_s1 + $0x9c0] sm:$0xff]  }
 0x100   :  { %9577 = vmatpush3.bf16.msra.mxu0 %v10719_v3  ;;  %v10755_v3 = vld [vmem:[%s14040_s1 + $0x900] sm:$0xff]  }
 0x101   :  { %9599 = vmatpush3.bf16.msra.mxu1 %v10720_v4  ;;  %9606 = vmatprep.subr.bf16.mxu0 %v10721_v13  ;;  %v10756_v4 = vld [vmem:[%s14040_s1 + $0x980] sm:$0xff]   ;;  %v10765_v13 = vld [vmem:[%s14040_s1 + $0x958] sm:$0xff]  }
 0x102   :  { %9628 = vmatprep.subr.bf16.mxu1 %v10722_v14 }
 0x103   :  { %6963 = vmatmul.mubr.bf16.vlgmr.msra.gmra.mrb[28].mxu0 %v151_v11  ;;  %v10763_v11 = vld [vmem:[%s14040_s1 + $0x910] sm:$0xff]  }
 0x104   :  { %7003 = vmatmul.mubr.bf16.vlgmr.msra.gmra.mrb[28].mxu1 %v153_v12  ;;  %9607 = vmatpush3.bf16.msra.mxu0 %v10723_v15  ;;  %v10764_v12 = vld [vmem:[%s14040_s1 + $0x990] sm:$0xff]   ;;  %v10766_v15 = vld [vmem:[%s14040_s1 + $0x9d8] sm:$0xff]  }
 0x105   :  { %9629 = vmatpush3.bf16.msra.mxu1 %v10724_v16  ;;  %9608 = vmatprep.subr.bf16.mxu0 %v10725_v17  ;;  %v10767_v17 = vld [vmem:[%s14040_s1 + $0x918] sm:$0xff]  }
 0x106   :  { %9630 = vmatprep.subr.bf16.mxu1 %v10726_v18  ;;  %7042 = vmatprep.mubr.bf16.mxu0 %v156_v60  ;;  %v10792_v60 = vld [vmem:[%s14040_s1 + $0xa88] sm:$0xff]  }
 0x108   :  { %9609 = vmatpush3.bf16.msra.mxu0 %v10727_v19  ;;  %v10768_v19 = vld [vmem:[%s14040_s1 + $0x998] sm:$0xff]  }
 0x109   :  { %9631 = vmatpush3.bf16.msra.mxu1 %v10728_v20  ;;  %9610 = vmatprep.subr.bf16.mxu0 %v10729_v21 }
 0x10a   :  { %9632 = vmatprep.subr.bf16.mxu1 %v10730_v22  ;;  %v10769_v22 = vld [vmem:[%s14040_s1 + $0x960] sm:$0xff]  }
 0x10c   :  { %9611 = vmatpush3.bf16.msra.mxu0 %v10731_v23 }
 0x10d   :  { %9633 = vmatpush3.bf16.msra.mxu1 %v10732_v24  ;;  %9612 = vmatprep.subr.bf16.mxu0 %v10733_v25  ;;  %v10770_v25 = vld [vmem:[%s14040_s1 + $0x9e0] sm:$0xff]  }
 0x10e   :  { %9634 = vmatprep.subr.bf16.mxu1 %v10734_v26 }
 0x110   :  { %9613 = vmatpush3.bf16.msra.mxu0 %v10735_v28  ;;  %v10771_v28 = vld [vmem:[%s14040_s1 + $0x920] sm:$0xff]  }
 0x111   :  { %9635 = vmatpush3.bf16.msra.mxu1 %v10736_v30  ;;  %9614 = vmatprep.subr.bf16.mxu0 %v10737_v32  ;;  %v10772_v30 = vld [vmem:[%s14040_s1 + $0x9a0] sm:$0xff]  }
 0x112   :  { %9636 = vmatprep.subr.bf16.mxu1 %v10738_v35  ;;  %v10775_v35 = vld [vmem:[%s14040_s1 + $0x928] sm:$0xff]  }
 0x114   :  { %9615 = vmatpush3.bf16.msra.mxu0 %v10739_v38  ;;  %v10778_v38 = vld [vmem:[%s14040_s1 + $0x9f0] sm:$0xff]  }
 0x115   :  { %9637 = vmatpush3.bf16.msra.mxu1 %v10740_v41  ;;  %9616 = vmatprep.subr.bf16.mxu0 %v10741_v44  ;;  %v10781_v41 = vld [vmem:[%s14040_s1 + $0x978] sm:$0xff]  }
 0x116   :  { %v9314_v27 = vpop.f32.mrb[4].mxu0  ;;  %9638 = vmatprep.subr.bf16.mxu1 %v10742_v46  ;;  %v10784_v44 = vld [vmem:[%s14040_s1 + $0x9b8] sm:$0xff]  }
 0x117   :  { %v9336_v29 = vpop.f32.mrb[4].mxu1  ;;  %v9315_v31 = vpop.f32.mrb[5].mxu0  ;;  %v66_v46 = vld [vmem:[%s14041_s0 + $0x138] sm:$0xff] }
 0x118   :  { %v9316_v33 = vadd.f32 %v9315_v31, %v9314_v27  ;;  %v9337_v34 = vpop.f32.mrb[5].mxu1  ;;  %v9317_v37 = vpop.f32.mrb[6].mxu0  ;;  %9617 = vmatpush3.bf16.msra.mxu0 %v10743_v47 }
 0x119   :  { %v9338_v36 = vadd.f32 %v9337_v34, %v9336_v29  ;;  %v9339_v40 = vpop.f32.mrb[6].mxu1  ;;  %v9318_v42 = vpop.f32.mrb[7].mxu0  ;;  %9639 = vmatpush3.bf16.msra.mxu1 %v10744_v48  ;;  %9618 = vmatprep.subr.bf16.mxu0 %v10745_v49  ;;  %v10774_v34 = vld [vmem:[%s14040_s1 + $0x9e8] sm:$0xff]   ;;  %v10777_v37 = vld [vmem:[%s14040_s1 + $0x970] sm:$0xff]   ;;  %v162_v48 = vpack.c.bf16 %v66_v46, %v66_v46  ;;  %v63_v49 = vld [vmem:[%s14041_s0 + $0x120] sm:$0xff] }
 0x11a   :  { %v6485_v39 = vadd.f32 %v9316_v33, %v12101_v58  ;;  %v9340_v45 = vpop.f32.mrb[7].mxu1  ;;  %9640 = vmatprep.subr.bf16.mxu1 %v10746_v50  ;;  %v62_v58 = vld [vmem:[%s14041_s0 + $0x118] sm:$0xff]  ;;  %v10773_v33 = vld [vmem:[%s14040_s1 + $0x968] sm:$0xff]   ;;  %v10780_v40 = vld [vmem:[%s14040_s1 + $0x9b0] sm:$0xff]  }
 0x11b   :  { %v158_v61 = vpack.c.bf16 %v62_v58, %v62_v58  ;;  %v10782_v42 = vld [vmem:[%s14040_s1 + $0x9f8] sm:$0xff]   ;;  %v64_v45 = vld [vmem:[%s14041_s0 + $0x128] sm:$0xff]  ;;  %v65_v50 = vld [vmem:[%s14041_s0 + $0x130] sm:$0xff] }
 0x11c   :  { %v12206_v43 = vadd.f32 %v9338_v36, %v6485_v39  ;;  %9619 = vmatpush3.bf16.msra.mxu0 %v10747_v51  ;;  %v10776_v36 = vld [vmem:[%s14040_s1 + $0x9a8] sm:$0xff]   ;;  %v10779_v39 = vld [vmem:[%s14040_s1 + $0x930] sm:$0xff]   ;;  %v160_v47 = vpack.c.bf16 %v64_v45, %v64_v45  ;;  %v159_v51 = vpack.c.bf16 %v63_v49, %v63_v49 }
 0x11d   :  { %9641 = vmatpush3.bf16.msra.mxu1 %v10748_v52  ;;  %9620 = vmatprep.subr.bf16.mxu0 %v10749_v53  ;;  %v161_v52 = vpack.c.bf16 %v65_v50, %v65_v50  ;;  %v10785_v53 = vld [vmem:[%s14040_s1 + $0xa40] sm:$0xff]   ;;  %v10790_v58 = vld [vmem:[%s14040_s1 + $0xac8] sm:$0xff]   ;;  %v10825_v49 = vld [vmem:[%s14040_s1 + $0xb50] sm:$0xff]  }
 0x11e   :  { %9642 = vmatprep.subr.bf16.mxu1 %v10750_v54  ;;  %7082 = vmatprep.mubr.bf16.mxu1 %v158_v61  ;;  %v10786_v54 = vld [vmem:[%s14040_s1 + $0xac0] sm:$0xff]   ;;  %v10793_v61 = vld [vmem:[%s14040_s1 + $0xa50] sm:$0xff]   ;;  %v10821_v45 = vld [vmem:[%s14040_s1 + $0xb48] sm:$0xff]  }
 0x11f   :  { %v10822_v46 = vld [vmem:[%s14040_s1 + $0xbc8] sm:$0xff]   ;;  %v10826_v50 = vld [vmem:[%s14040_s1 + $0xbd0] sm:$0xff]  }
 0x120   :  { %9621 = vmatpush3.bf16.msra.mxu0 %v10751_v55  ;;  %v10787_v55 = vld [vmem:[%s14040_s1 + $0xa00] sm:$0xff]  }
 0x121   :  { %9643 = vmatpush3.bf16.msra.mxu1 %v10752_v56  ;;  %9650 = vmatprep.subr.bf16.mxu0 %v10753_v1  ;;  %v10788_v56 = vld [vmem:[%s14040_s1 + $0xa80] sm:$0xff]   ;;  %v10797_v1 = vld [vmem:[%s14040_s1 + $0xa58] sm:$0xff]  }
 0x122   :  { %9672 = vmatprep.subr.bf16.mxu1 %v10754_v2  ;;  %v10798_v2 = vld [vmem:[%s14040_s1 + $0xad8] sm:$0xff]  }
 0x123   :  { %7043 = vmatmul.mubr.bf16.vlgmr.msra.gmra.mrb[32].mxu0 %v155_v62  ;;  %v10794_v62 = vld [vmem:[%s14040_s1 + $0xad0] sm:$0xff]  }
 0x124   :  { %7083 = vmatmul.mubr.bf16.vlgmr.msra.gmra.mrb[32].mxu1 %v157_v0  ;;  %9651 = vmatpush3.bf16.msra.mxu0 %v10755_v3  ;;  %v10796_v0 = vld [vmem:[%s14040_s1 + $0xa90] sm:$0xff]  }
 0x125   :  { %9673 = vmatpush3.bf16.msra.mxu1 %v10756_v4  ;;  %9652 = vmatprep.subr.bf16.mxu0 %v10757_v5  ;;  %v10799_v4 = vld [vmem:[%s14040_s1 + $0xa18] sm:$0xff]  }
 0x126   :  { %9674 = vmatprep.subr.bf16.mxu1 %v10758_v6  ;;  %7122 = vmatprep.mubr.bf16.mxu0 %v160_v47  ;;  %v10800_v6 = vld [vmem:[%s14040_s1 + $0xa98] sm:$0xff]   ;;  %v10823_v47 = vld [vmem:[%s14040_s1 + $0xb08] sm:$0xff]  }
 0x127   :  { %7162 = vmatprep.mubr.bf16.mxu1 %v162_v48  ;;  %v10824_v48 = vld [vmem:[%s14040_s1 + $0xb88] sm:$0xff]  }
 0x128   :  { %9653 = vmatpush3.bf16.msra.mxu0 %v10759_v7 }
 0x129   :  { %9675 = vmatpush3.bf16.msra.mxu1 %v10760_v8  ;;  %9654 = vmatprep.subr.bf16.mxu0 %v10761_v9  ;;  %v10801_v8 = vld [vmem:[%s14040_s1 + $0xa60] sm:$0xff]  }
 0x12a   :  { %9676 = vmatprep.subr.bf16.mxu1 %v10762_v10 }
 0x12c   :  { %9655 = vmatpush3.bf16.msra.mxu0 %v10763_v11  ;;  %v10802_v11 = vld [vmem:[%s14040_s1 + $0xae0] sm:$0xff]  }
 0x12d   :  { %9677 = vmatpush3.bf16.msra.mxu1 %v10764_v12  ;;  %9656 = vmatprep.subr.bf16.mxu0 %v10765_v13 }
 0x12e   :  { %9678 = vmatprep.subr.bf16.mxu1 %v10766_v15 }
 0x130   :  { %9657 = vmatpush3.bf16.msra.mxu0 %v10767_v17  ;;  %v10804_v17 = vld [vmem:[%s14040_s1 + $0xaa0] sm:$0xff]  }
 0x131   :  { %9679 = vmatpush3.bf16.msra.mxu1 %v10768_v19  ;;  %9658 = vmatprep.subr.bf16.mxu0 %v10769_v22  ;;  %v10806_v22 = vld [vmem:[%s14040_s1 + $0xae8] sm:$0xff]  }
 0x132   :  { %9680 = vmatprep.subr.bf16.mxu1 %v10770_v25  ;;  %v10809_v25 = vld [vmem:[%s14040_s1 + $0xa70] sm:$0xff]  }
 0x134   :  { %9659 = vmatpush3.bf16.msra.mxu0 %v10771_v28  ;;  %v10812_v28 = vld [vmem:[%s14040_s1 + $0xab0] sm:$0xff]  }
 0x135   :  { %9681 = vmatpush3.bf16.msra.mxu1 %v10772_v30  ;;  %9660 = vmatprep.subr.bf16.mxu0 %v10773_v33  ;;  %v10814_v30 = vld [vmem:[%s14040_s1 + $0xaf8] sm:$0xff]   ;;  %v68_v33 = vld [vmem:[%s14041_s0 + $0x148] sm:$0xff] }
 0x136   :  { %v9358_v14 = vpop.f32.mrb[8].mxu0  ;;  %9682 = vmatprep.subr.bf16.mxu1 %v10774_v34  ;;  %v164_v34 = vpack.c.bf16 %v68_v33, %v68_v33  ;;  %v10853_v33 = vld [vmem:[%s14040_s1 + $0xc48] sm:$0xff]  }
 0x137   :  { %v9380_v16 = vpop.f32.mrb[8].mxu1  ;;  %v9359_v18 = vpop.f32.mrb[9].mxu0 }
 0x138   :  { %v9360_v20 = vadd.f32 %v9359_v18, %v9358_v14  ;;  %v9381_v21 = vpop.f32.mrb[9].mxu1  ;;  %v9361_v24 = vpop.f32.mrb[10].mxu0  ;;  %9661 = vmatpush3.bf16.msra.mxu0 %v10775_v35  ;;  %v10803_v14 = vld [vmem:[%s14040_s1 + $0xa20] sm:$0xff]   ;;  %v70_v35 = vld [vmem:[%s14041_s0 + $0x158] sm:$0xff] }
 0x139   :  { %v9382_v23 = vadd.f32 %v9381_v21, %v9380_v16  ;;  %v9383_v27 = vpop.f32.mrb[10].mxu1  ;;  %v9362_v29 = vpop.f32.mrb[11].mxu0  ;;  %9683 = vmatpush3.bf16.msra.mxu1 %v10776_v36  ;;  %9662 = vmatprep.subr.bf16.mxu0 %v10777_v37  ;;  %v10808_v24 = vld [vmem:[%s14040_s1 + $0xaa8] sm:$0xff]   ;;  %v67_v36 = vld [vmem:[%s14041_s0 + $0x140] sm:$0xff]  ;;  %v69_v37 = vld [vmem:[%s14041_s0 + $0x150] sm:$0xff] }
 0x13a   :  { %v6565_v26 = vadd.f32 %v9360_v20, %v12206_v43  ;;  %v9384_v32 = vpop.f32.mrb[11].mxu1  ;;  %9684 = vmatprep.subr.bf16.mxu1 %v10778_v38  ;;  %v10783_v43 = vld [vmem:[%s14040_s1 + $0x938] sm:$0xff]   ;;  %v10805_v20 = vld [vmem:[%s14040_s1 + $0xa68] sm:$0xff]   ;;  %v10811_v27 = vld [vmem:[%s14040_s1 + $0xa30] sm:$0xff]   ;;  %v166_v38 = vpack.c.bf16 %v70_v35, %v70_v35 }
 0x13b   :  { %v10813_v29 = vld [vmem:[%s14040_s1 + $0xa78] sm:$0xff]   ;;  %v10855_v35 = vld [vmem:[%s14040_s1 + $0xc08] sm:$0xff]  }
 0x13c   :  { %v12317_v31 = vadd.f32 %v9382_v23, %v6565_v26  ;;  %9663 = vmatpush3.bf16.msra.mxu0 %v10779_v39  ;;  %v10807_v23 = vld [vmem:[%s14040_s1 + $0xa28] sm:$0xff]   ;;  %v10810_v26 = vld [vmem:[%s14040_s1 + $0xaf0] sm:$0xff]   ;;  %v10816_v32 = vld [vmem:[%s14040_s1 + $0xab8] sm:$0xff]   ;;  %v163_v39 = vpack.c.bf16 %v67_v36, %v67_v36 }
 0x13d   :  { %9685 = vmatpush3.bf16.msra.mxu1 %v10780_v40  ;;  %9664 = vmatprep.subr.bf16.mxu0 %v10781_v41  ;;  %v165_v40 = vpack.c.bf16 %v69_v37, %v69_v37  ;;  %v10817_v41 = vld [vmem:[%s14040_s1 + $0xb40] sm:$0xff]   ;;  %v10856_v36 = vld [vmem:[%s14040_s1 + $0xc88] sm:$0xff]   ;;  %v10857_v37 = vld [vmem:[%s14040_s1 + $0xc50] sm:$0xff]  }
 0x13e   :  { %9686 = vmatprep.subr.bf16.mxu1 %v10782_v42  ;;  %v10818_v42 = vld [vmem:[%s14040_s1 + $0xbc0] sm:$0xff]  }
 0x140   :  { %9665 = vmatpush3.bf16.msra.mxu0 %v10783_v43  ;;  %v10819_v43 = vld [vmem:[%s14040_s1 + $0xb00] sm:$0xff]  }
 0x141   :  { %9687 = vmatpush3.bf16.msra.mxu1 %v10784_v44  ;;  %9694 = vmatprep.subr.bf16.mxu0 %v10785_v53  ;;  %v10820_v44 = vld [vmem:[%s14040_s1 + $0xb80] sm:$0xff]   ;;  %v10829_v53 = vld [vmem:[%s14040_s1 + $0xb58] sm:$0xff]  }
 0x142   :  { %9716 = vmatprep.subr.bf16.mxu1 %v10786_v54  ;;  %v10830_v54 = vld [vmem:[%s14040_s1 + $0xbd8] sm:$0xff]  }
 0x143   :  { %7123 = vmatmul.mubr.bf16.vlgmr.msra.gmra.mrb[36].mxu0 %v159_v51  ;;  %v10827_v51 = vld [vmem:[%s14040_s1 + $0xb10] sm:$0xff]  }
 0x144   :  { %7163 = vmatmul.mubr.bf16.vlgmr.msra.gmra.mrb[36].mxu1 %v161_v52  ;;  %9695 = vmatpush3.bf16.msra.mxu0 %v10787_v55  ;;  %v10828_v52 = vld [vmem:[%s14040_s1 + $0xb90] sm:$0xff]  }
 0x145   :  { %9717 = vmatpush3.bf16.msra.mxu1 %v10788_v56  ;;  %9696 = vmatprep.subr.bf16.mxu0 %v10789_v57  ;;  %v10831_v56 = vld [vmem:[%s14040_s1 + $0xb18] sm:$0xff]  }
 0x146   :  { %9718 = vmatprep.subr.bf16.mxu1 %v10790_v58  ;;  %7202 = vmatprep.mubr.bf16.mxu0 %v164_v34  ;;  %v10832_v58 = vld [vmem:[%s14040_s1 + $0xb98] sm:$0xff]   ;;  %v10854_v34 = vld [vmem:[%s14040_s1 + $0xcc8] sm:$0xff]  }
 0x147   :  { %7242 = vmatprep.mubr.bf16.mxu1 %v166_v38  ;;  %v10858_v38 = vld [vmem:[%s14040_s1 + $0xcd0] sm:$0xff]  }
 0x148   :  { %9697 = vmatpush3.bf16.msra.mxu0 %v10791_v59 }
 0x149   :  { %9719 = vmatpush3.bf16.msra.mxu1 %v10792_v60  ;;  %9698 = vmatprep.subr.bf16.mxu0 %v10793_v61  ;;  %v10833_v60 = vld [vmem:[%s14040_s1 + $0xb60] sm:$0xff]  }
 0x14a   :  { %9720 = vmatprep.subr.bf16.mxu1 %v10794_v62 }
 0x14c   :  { %9699 = vmatpush3.bf16.msra.mxu0 %v10795_v63  ;;  %v10834_v63 = vld [vmem:[%s14040_s1 + $0xbe0] sm:$0xff]  }
 0x14d   :  { %9721 = vmatpush3.bf16.msra.mxu1 %v10796_v0  ;;  %9700 = vmatprep.subr.bf16.mxu0 %v10797_v1 }
 0x14e   :  { %9722 = vmatprep.subr.bf16.mxu1 %v10798_v2  ;;  %v10835_v2 = vld [vmem:[%s14040_s1 + $0xb20] sm:$0xff]  }
 0x150   :  { %9701 = vmatpush3.bf16.msra.mxu0 %v10799_v4 }
 0x151   :  { %9723 = vmatpush3.bf16.msra.mxu1 %v10800_v6  ;;  %9702 = vmatprep.subr.bf16.mxu0 %v10801_v8  ;;  %v10837_v8 = vld [vmem:[%s14040_s1 + $0xb68] sm:$0xff]  }
 0x152   :  { %9724 = vmatprep.subr.bf16.mxu1 %v10802_v11  ;;  %v10839_v11 = vld [vmem:[%s14040_s1 + $0xb28] sm:$0xff]  }
 0x154   :  { %9703 = vmatpush3.bf16.msra.mxu0 %v10803_v14  ;;  %v10842_v14 = vld [vmem:[%s14040_s1 + $0xbf0] sm:$0xff]  }
 0x155   :  { %9725 = vmatpush3.bf16.msra.mxu1 %v10804_v17  ;;  %9704 = vmatprep.subr.bf16.mxu0 %v10805_v20  ;;  %v10845_v17 = vld [vmem:[%s14040_s1 + $0xb78] sm:$0xff]  }
 0x156   :  { %v9402_v3 = vpop.f32.mrb[12].mxu0  ;;  %9726 = vmatprep.subr.bf16.mxu1 %v10806_v22  ;;  %v10848_v20 = vld [vmem:[%s14040_s1 + $0xbb8] sm:$0xff]  }
 0x157   :  { %v9424_v5 = vpop.f32.mrb[12].mxu1  ;;  %v9403_v7 = vpop.f32.mrb[13].mxu0  ;;  %v74_v22 = vld [vmem:[%s14041_s0 + $0x178] sm:$0xff] }
 0x158   :  { %v9404_v9 = vadd.f32 %v9403_v7, %v9402_v3  ;;  %v9425_v10 = vpop.f32.mrb[13].mxu1  ;;  %v9405_v13 = vpop.f32.mrb[14].mxu0  ;;  %9705 = vmatpush3.bf16.msra.mxu0 %v10807_v23  ;;  %v71_v23 = vld [vmem:[%s14041_s0 + $0x160] sm:$0xff] }
 0x159   :  { %v9426_v12 = vadd.f32 %v9425_v10, %v9424_v5  ;;  %v9427_v16 = vpop.f32.mrb[14].mxu1  ;;  %v9406_v18 = vpop.f32.mrb[15].mxu0  ;;  %9727 = vmatpush3.bf16.msra.mxu1 %v10808_v24  ;;  %9706 = vmatprep.subr.bf16.mxu0 %v10809_v25  ;;  %v10836_v5 = vld [vmem:[%s14040_s1 + $0xba0] sm:$0xff]   ;;  %v10838_v10 = vld [vmem:[%s14040_s1 + $0xbe8] sm:$0xff]   ;;  %v10841_v13 = vld [vmem:[%s14040_s1 + $0xb70] sm:$0xff]   ;;  %v170_v25 = vpack.c.bf16 %v74_v22, %v74_v22 }
 0x15a   :  { %v6645_v15 = vadd.f32 %v9404_v9, %v12317_v31  ;;  %v9428_v21 = vpop.f32.mrb[15].mxu1  ;;  %9728 = vmatprep.subr.bf16.mxu1 %v10810_v26  ;;  %v10815_v31 = vld [vmem:[%s14040_s1 + $0xa38] sm:$0xff]   ;;  %v10844_v16 = vld [vmem:[%s14040_s1 + $0xbb0] sm:$0xff]   ;;  %v167_v26 = vpack.c.bf16 %v71_v23, %v71_v23  ;;  %v10886_v22 = vld [vmem:[%s14040_s1 + $0xdc8] sm:$0xff]  }
 0x15b   :  { %v10846_v18 = vld [vmem:[%s14040_s1 + $0xbf8] sm:$0xff]   ;;  %v72_v21 = vld [vmem:[%s14041_s0 + $0x168] sm:$0xff] }
 0x15c   :  { %v12428_v19 = vadd.f32 %v9426_v12, %v6645_v15  ;;  %9707 = vmatpush3.bf16.msra.mxu0 %v10811_v27  ;;  %v10840_v12 = vld [vmem:[%s14040_s1 + $0xba8] sm:$0xff]   ;;  %v10843_v15 = vld [vmem:[%s14040_s1 + $0xb30] sm:$0xff]   ;;  %v168_v24 = vpack.c.bf16 %v72_v21, %v72_v21 }
 0x15d   :  { %9729 = vmatpush3.bf16.msra.mxu1 %v10812_v28  ;;  %9708 = vmatprep.subr.bf16.mxu0 %v10813_v29  ;;  %v73_v27 = vld [vmem:[%s14041_s0 + $0x170] sm:$0xff]  ;;  %v10849_v29 = vld [vmem:[%s14040_s1 + $0xc40] sm:$0xff]   ;;  %v10885_v21 = vld [vmem:[%s14040_s1 + $0xd48] sm:$0xff]  }
 0x15e   :  { %9730 = vmatprep.subr.bf16.mxu1 %v10814_v30  ;;  %v169_v28 = vpack.c.bf16 %v73_v27, %v73_v27  ;;  %v10850_v30 = vld [vmem:[%s14040_s1 + $0xcc0] sm:$0xff]   ;;  %v10887_v23 = vld [vmem:[%s14040_s1 + $0xd08] sm:$0xff]   ;;  %v10891_v27 = vld [vmem:[%s14040_s1 + $0xd10] sm:$0xff]  }
 0x160   :  { %9709 = vmatpush3.bf16.msra.mxu0 %v10815_v31  ;;  %v10851_v31 = vld [vmem:[%s14040_s1 + $0xc00] sm:$0xff]  }
 0x161   :  { %9731 = vmatpush3.bf16.msra.mxu1 %v10816_v32  ;;  %9738 = vmatprep.subr.bf16.mxu0 %v10817_v41  ;;  %v10852_v32 = vld [vmem:[%s14040_s1 + $0xc80] sm:$0xff]   ;;  %v10861_v41 = vld [vmem:[%s14040_s1 + $0xc58] sm:$0xff]  }
 0x162   :  { %9760 = vmatprep.subr.bf16.mxu1 %v10818_v42 }
 0x163   :  { %7203 = vmatmul.mubr.bf16.vlgmr.msra.gmra.mrb[40].mxu0 %v163_v39  ;;  %v10859_v39 = vld [vmem:[%s14040_s1 + $0xc10] sm:$0xff]  }
 0x164   :  { %7243 = vmatmul.mubr.bf16.vlgmr.msra.gmra.mrb[40].mxu1 %v165_v40  ;;  %9739 = vmatpush3.bf16.msra.mxu0 %v10819_v43  ;;  %v10860_v40 = vld [vmem:[%s14040_s1 + $0xc90] sm:$0xff]   ;;  %v10862_v43 = vld [vmem:[%s14040_s1 + $0xcd8] sm:$0xff]  }
 0x165   :  { %9761 = vmatpush3.bf16.msra.mxu1 %v10820_v44  ;;  %9740 = vmatprep.subr.bf16.mxu0 %v10821_v45  ;;  %v10863_v45 = vld [vmem:[%s14040_s1 + $0xc18] sm:$0xff]  }
 0x166   :  { %9762 = vmatprep.subr.bf16.mxu1 %v10822_v46  ;;  %7282 = vmatprep.mubr.bf16.mxu0 %v168_v24  ;;  %v10888_v24 = vld [vmem:[%s14040_s1 + $0xd88] sm:$0xff]  }
 0x167   :  { %7322 = vmatprep.mubr.bf16.mxu1 %v170_v25  ;;  %v10889_v25 = vld [vmem:[%s14040_s1 + $0xd50] sm:$0xff]  }
 0x168   :  { %9741 = vmatpush3.bf16.msra.mxu0 %v10823_v47  ;;  %v10864_v47 = vld [vmem:[%s14040_s1 + $0xc98] sm:$0xff]  }
 0x169   :  { %9763 = vmatpush3.bf16.msra.mxu1 %v10824_v48  ;;  %9742 = vmatprep.subr.bf16.mxu0 %v10825_v49 }
 0x16a   :  { %9764 = vmatprep.subr.bf16.mxu1 %v10826_v50  ;;  %v10865_v50 = vld [vmem:[%s14040_s1 + $0xc60] sm:$0xff]  }
 0x16c   :  { %9743 = vmatpush3.bf16.msra.mxu0 %v10827_v51 }
 0x16d   :  { %9765 = vmatpush3.bf16.msra.mxu1 %v10828_v52  ;;  %9744 = vmatprep.subr.bf16.mxu0 %v10829_v53  ;;  %v10866_v53 = vld [vmem:[%s14040_s1 + $0xce0] sm:$0xff]  }
 0x16e   :  { %9766 = vmatprep.subr.bf16.mxu1 %v10830_v54 }
 0x170   :  { %9745 = vmatpush3.bf16.msra.mxu0 %v10831_v56  ;;  %v10867_v56 = vld [vmem:[%s14040_s1 + $0xc20] sm:$0xff]  }
 0x171   :  { %9767 = vmatpush3.bf16.msra.mxu1 %v10832_v58  ;;  %9746 = vmatprep.subr.bf16.mxu0 %v10833_v60  ;;  %v10868_v58 = vld [vmem:[%s14040_s1 + $0xca0] sm:$0xff]  }
 0x172   :  { %9768 = vmatprep.subr.bf16.mxu1 %v10834_v63  ;;  %v10871_v63 = vld [vmem:[%s14040_s1 + $0xc28] sm:$0xff]  }
 0x174   :  { %9747 = vmatpush3.bf16.msra.mxu0 %v10835_v2  ;;  %v10874_v2 = vld [vmem:[%s14040_s1 + $0xcf0] sm:$0xff]  }
 0x175   :  { %9769 = vmatpush3.bf16.msra.mxu1 %v10836_v5  ;;  %9748 = vmatprep.subr.bf16.mxu0 %v10837_v8  ;;  %v10877_v5 = vld [vmem:[%s14040_s1 + $0xc78] sm:$0xff]  }
 0x176   :  { %v9446_v55 = vpop.f32.mrb[16].mxu0  ;;  %9770 = vmatprep.subr.bf16.mxu1 %v10838_v10  ;;  %v10880_v8 = vld [vmem:[%s14040_s1 + $0xcb8] sm:$0xff]  }
 0x177   :  { %v9468_v57 = vpop.f32.mrb[16].mxu1  ;;  %v9447_v59 = vpop.f32.mrb[17].mxu0  ;;  %v78_v10 = vld [vmem:[%s14041_s0 + $0x198] sm:$0xff] }
 0x178   :  { %v9448_v61 = vadd.f32 %v9447_v59, %v9446_v55  ;;  %v9469_v62 = vpop.f32.mrb[17].mxu1  ;;  %v9449_v1 = vpop.f32.mrb[18].mxu0  ;;  %9749 = vmatpush3.bf16.msra.mxu0 %v10839_v11 }
 0x179   :  { %v9470_v0 = vadd.f32 %v9469_v62, %v9468_v57  ;;  %v9471_v4 = vpop.f32.mrb[18].mxu1  ;;  %v9450_v6 = vpop.f32.mrb[19].mxu0  ;;  %9771 = vmatpush3.bf16.msra.mxu1 %v10840_v12  ;;  %9750 = vmatprep.subr.bf16.mxu0 %v10841_v13  ;;  %v10870_v62 = vld [vmem:[%s14040_s1 + $0xce8] sm:$0xff]   ;;  %v10873_v1 = vld [vmem:[%s14040_s1 + $0xc70] sm:$0xff]   ;;  %v174_v12 = vpack.c.bf16 %v78_v10, %v78_v10  ;;  %v75_v13 = vld [vmem:[%s14041_s0 + $0x180] sm:$0xff] }
 0x17a   :  { %v6725_v3 = vadd.f32 %v9448_v61, %v12428_v19  ;;  %v9472_v9 = vpop.f32.mrb[19].mxu1  ;;  %9772 = vmatprep.subr.bf16.mxu1 %v10842_v14  ;;  %v10847_v19 = vld [vmem:[%s14040_s1 + $0xb38] sm:$0xff]   ;;  %v10869_v61 = vld [vmem:[%s14040_s1 + $0xc68] sm:$0xff]   ;;  %v10876_v4 = vld [vmem:[%s14040_s1 + $0xcb0] sm:$0xff]  }
 0x17b   :  { %v10878_v6 = vld [vmem:[%s14040_s1 + $0xcf8] sm:$0xff]   ;;  %v76_v9 = vld [vmem:[%s14041_s0 + $0x188] sm:$0xff]  ;;  %v77_v14 = vld [vmem:[%s14041_s0 + $0x190] sm:$0xff] }
 0x17c   :  { %v12539_v7 = vadd.f32 %v9470_v0, %v6725_v3  ;;  %9751 = vmatpush3.bf16.msra.mxu0 %v10843_v15  ;;  %v10872_v0 = vld [vmem:[%s14040_s1 + $0xca8] sm:$0xff]   ;;  %v10875_v3 = vld [vmem:[%s14040_s1 + $0xc30] sm:$0xff]   ;;  %v172_v11 = vpack.c.bf16 %v76_v9, %v76_v9  ;;  %v171_v15 = vpack.c.bf16 %v75_v13, %v75_v13 }
 0x17d   :  { %9773 = vmatpush3.bf16.msra.mxu1 %v10844_v16  ;;  %9752 = vmatprep.subr.bf16.mxu0 %v10845_v17  ;;  %v173_v16 = vpack.c.bf16 %v77_v14, %v77_v14  ;;  %v10881_v17 = vld [vmem:[%s14040_s1 + $0xd40] sm:$0xff]   ;;  %v10917_v9 = vld [vmem:[%s14040_s1 + $0xe48] sm:$0xff]   ;;  %v10921_v13 = vld [vmem:[%s14040_s1 + $0xe50] sm:$0xff]  }
 0x17e   :  { %9774 = vmatprep.subr.bf16.mxu1 %v10846_v18  ;;  %v10882_v18 = vld [vmem:[%s14040_s1 + $0xdc0] sm:$0xff]   ;;  %v10918_v10 = vld [vmem:[%s14040_s1 + $0xec8] sm:$0xff]   ;;  %v10922_v14 = vld [vmem:[%s14040_s1 + $0xed0] sm:$0xff]  }
 0x180   :  { %9753 = vmatpush3.bf16.msra.mxu0 %v10847_v19  ;;  %v10883_v19 = vld [vmem:[%s14040_s1 + $0xd00] sm:$0xff]  }
 0x181   :  { %9775 = vmatpush3.bf16.msra.mxu1 %v10848_v20  ;;  %9782 = vmatprep.subr.bf16.mxu0 %v10849_v29  ;;  %v10884_v20 = vld [vmem:[%s14040_s1 + $0xd80] sm:$0xff]   ;;  %v10893_v29 = vld [vmem:[%s14040_s1 + $0xd58] sm:$0xff]  }
 0x182   :  { %9804 = vmatprep.subr.bf16.mxu1 %v10850_v30  ;;  %v10894_v30 = vld [vmem:[%s14040_s1 + $0xdd8] sm:$0xff]  }
 0x183   :  { %7283 = vmatmul.mubr.bf16.vlgmr.msra.gmra.mrb[44].mxu0 %v167_v26  ;;  %v10890_v26 = vld [vmem:[%s14040_s1 + $0xdd0] sm:$0xff]  }
 0x184   :  { %7323 = vmatmul.mubr.bf16.vlgmr.msra.gmra.mrb[44].mxu1 %v169_v28  ;;  %9783 = vmatpush3.bf16.msra.mxu0 %v10851_v31  ;;  %v10892_v28 = vld [vmem:[%s14040_s1 + $0xd90] sm:$0xff]  }
 0x185   :  { %9805 = vmatpush3.bf16.msra.mxu1 %v10852_v32  ;;  %9784 = vmatprep.subr.bf16.mxu0 %v10853_v33  ;;  %v10895_v32 = vld [vmem:[%s14040_s1 + $0xd18] sm:$0xff]  }
 0x186   :  { %9806 = vmatprep.subr.bf16.mxu1 %v10854_v34  ;;  %7362 = vmatprep.mubr.bf16.mxu0 %v172_v11  ;;  %v10896_v34 = vld [vmem:[%s14040_s1 + $0xd98] sm:$0xff]   ;;  %v10919_v11 = vld [vmem:[%s14040_s1 + $0xe08] sm:$0xff]  }
 0x187   :  { %7402 = vmatprep.mubr.bf16.mxu1 %v174_v12  ;;  %v10920_v12 = vld [vmem:[%s14040_s1 + $0xe88] sm:$0xff]  }
 0x188   :  { %9785 = vmatpush3.bf16.msra.mxu0 %v10855_v35 }
 0x189   :  { %9807 = vmatpush3.bf16.msra.mxu1 %v10856_v36  ;;  %9786 = vmatprep.subr.bf16.mxu0 %v10857_v37  ;;  %v10897_v36 = vld [vmem:[%s14040_s1 + $0xd60] sm:$0xff]  }
 0x18a   :  { %9808 = vmatprep.subr.bf16.mxu1 %v10858_v38 }
 0x18c   :  { %9787 = vmatpush3.bf16.msra.mxu0 %v10859_v39  ;;  %v10898_v39 = vld [vmem:[%s14040_s1 + $0xde0] sm:$0xff]  }
 0x18d   :  { %9809 = vmatpush3.bf16.msra.mxu1 %v10860_v40  ;;  %9788 = vmatprep.subr.bf16.mxu0 %v10861_v41 }
 0x18e   :  { %9810 = vmatprep.subr.bf16.mxu1 %v10862_v43 }
 0x190   :  { %9789 = vmatpush3.bf16.msra.mxu0 %v10863_v45  ;;  %v10900_v45 = vld [vmem:[%s14040_s1 + $0xda0] sm:$0xff]  }
 0x191   :  { %9811 = vmatpush3.bf16.msra.mxu1 %v10864_v47  ;;  %9790 = vmatprep.subr.bf16.mxu0 %v10865_v50  ;;  %v10902_v50 = vld [vmem:[%s14040_s1 + $0xde8] sm:$0xff]  }
 0x192   :  { %9812 = vmatprep.subr.bf16.mxu1 %v10866_v53  ;;  %v10905_v53 = vld [vmem:[%s14040_s1 + $0xd70] sm:$0xff]  }
 0x194   :  { %9791 = vmatpush3.bf16.msra.mxu0 %v10867_v56  ;;  %v10908_v56 = vld [vmem:[%s14040_s1 + $0xdb0] sm:$0xff]  }
 0x195   :  { %9813 = vmatpush3.bf16.msra.mxu1 %v10868_v58  ;;  %9792 = vmatprep.subr.bf16.mxu0 %v10869_v61  ;;  %v10910_v58 = vld [vmem:[%s14040_s1 + $0xdf8] sm:$0xff]   ;;  %v80_v61 = vld [vmem:[%s14041_s0 + $0x1a8] sm:$0xff] }
 0x196   :  { %v9490_v42 = vpop.f32.mrb[20].mxu0  ;;  %9814 = vmatprep.subr.bf16.mxu1 %v10870_v62  ;;  %v176_v62 = vpack.c.bf16 %v80_v61, %v80_v61  ;;  %v10949_v61 = vld [vmem:[%s14040_s1 + $0xf48] sm:$0xff]  }
 0x197   :  { %v9512_v44 = vpop.f32.mrb[20].mxu1  ;;  %v9491_v46 = vpop.f32.mrb[21].mxu0 }
 0x198   :  { %v9492_v48 = vadd.f32 %v9491_v46, %v9490_v42  ;;  %v9513_v49 = vpop.f32.mrb[21].mxu1  ;;  %v9493_v52 = vpop.f32.mrb[22].mxu0  ;;  %9793 = vmatpush3.bf16.msra.mxu0 %v10871_v63  ;;  %v10899_v42 = vld [vmem:[%s14040_s1 + $0xd20] sm:$0xff]   ;;  %v82_v63 = vld [vmem:[%s14041_s0 + $0x1b8] sm:$0xff] }
 0x199   :  { %v9514_v51 = vadd.f32 %v9513_v49, %v9512_v44  ;;  %v9515_v55 = vpop.f32.mrb[22].mxu1  ;;  %v9494_v57 = vpop.f32.mrb[23].mxu0  ;;  %9815 = vmatpush3.bf16.msra.mxu1 %v10872_v0  ;;  %9794 = vmatprep.subr.bf16.mxu0 %v10873_v1  ;;  %v10904_v52 = vld [vmem:[%s14040_s1 + $0xda8] sm:$0xff]   ;;  %v79_v0 = vld [vmem:[%s14041_s0 + $0x1a0] sm:$0xff]  ;;  %v81_v1 = vld [vmem:[%s14041_s0 + $0x1b0] sm:$0xff] }
 0x19a   :  { %v6805_v54 = vadd.f32 %v9492_v48, %v12539_v7  ;;  %v9516_v60 = vpop.f32.mrb[23].mxu1  ;;  %9816 = vmatprep.subr.bf16.mxu1 %v10874_v2  ;;  %v10879_v7 = vld [vmem:[%s14040_s1 + $0xc38] sm:$0xff]   ;;  %v10901_v48 = vld [vmem:[%s14040_s1 + $0xd68] sm:$0xff]   ;;  %v10907_v55 = vld [vmem:[%s14040_s1 + $0xd30] sm:$0xff]   ;;  %v178_v2 = vpack.c.bf16 %v82_v63, %v82_v63 }
 0x19b   :  { %v10909_v57 = vld [vmem:[%s14040_s1 + $0xd78] sm:$0xff]   ;;  %v10951_v63 = vld [vmem:[%s14040_s1 + $0xf08] sm:$0xff]  }
 0x19c   :  { %v12650_v59 = vadd.f32 %v9514_v51, %v6805_v54  ;;  %9795 = vmatpush3.bf16.msra.mxu0 %v10875_v3  ;;  %v10903_v51 = vld [vmem:[%s14040_s1 + $0xd28] sm:$0xff]   ;;  %v10906_v54 = vld [vmem:[%s14040_s1 + $0xdf0] sm:$0xff]   ;;  %v10912_v60 = vld [vmem:[%s14040_s1 + $0xdb8] sm:$0xff]   ;;  %v175_v3 = vpack.c.bf16 %v79_v0, %v79_v0 }
 0x19d   :  { %9817 = vmatpush3.bf16.msra.mxu1 %v10876_v4  ;;  %9796 = vmatprep.subr.bf16.mxu0 %v10877_v5  ;;  %v177_v4 = vpack.c.bf16 %v81_v1, %v81_v1  ;;  %v10913_v5 = vld [vmem:[%s14040_s1 + $0xe40] sm:$0xff]   ;;  %v10952_v0 = vld [vmem:[%s14040_s1 + $0xf88] sm:$0xff]   ;;  %v10953_v1 = vld [vmem:[%s14040_s1 + $0xf50] sm:$0xff]  }
 0x19e   :  { %9818 = vmatprep.subr.bf16.mxu1 %v10878_v6  ;;  %v10914_v6 = vld [vmem:[%s14040_s1 + $0xec0] sm:$0xff]  }
 0x1a0   :  { %9797 = vmatpush3.bf16.msra.mxu0 %v10879_v7  ;;  %v10915_v7 = vld [vmem:[%s14040_s1 + $0xe00] sm:$0xff]  }
 0x1a1   :  { %9819 = vmatpush3.bf16.msra.mxu1 %v10880_v8  ;;  %9826 = vmatprep.subr.bf16.mxu0 %v10881_v17  ;;  %v10916_v8 = vld [vmem:[%s14040_s1 + $0xe80] sm:$0xff]   ;;  %v10925_v17 = vld [vmem:[%s14040_s1 + $0xe58] sm:$0xff]  }
 0x1a2   :  { %9848 = vmatprep.subr.bf16.mxu1 %v10882_v18  ;;  %v10926_v18 = vld [vmem:[%s14040_s1 + $0xed8] sm:$0xff]  }
 0x1a3   :  { %7363 = vmatmul.mubr.bf16.vlgmr.msra.gmra.mrb[48].mxu0 %v171_v15  ;;  %v10923_v15 = vld [vmem:[%s14040_s1 + $0xe10] sm:$0xff]  }
 0x1a4   :  { %7403 = vmatmul.mubr.bf16.vlgmr.msra.gmra.mrb[48].mxu1 %v173_v16  ;;  %9827 = vmatpush3.bf16.msra.mxu0 %v10883_v19  ;;  %v10924_v16 = vld [vmem:[%s14040_s1 + $0xe90] sm:$0xff]  }
 0x1a5   :  { %9849 = vmatpush3.bf16.msra.mxu1 %v10884_v20  ;;  %9828 = vmatprep.subr.bf16.mxu0 %v10885_v21  ;;  %v10927_v20 = vld [vmem:[%s14040_s1 + $0xe18] sm:$0xff]  }
 0x1a6   :  { %9850 = vmatprep.subr.bf16.mxu1 %v10886_v22  ;;  %7442 = vmatprep.mubr.bf16.mxu0 %v176_v62  ;;  %v10928_v22 = vld [vmem:[%s14040_s1 + $0xe98] sm:$0xff]   ;;  %v10950_v62 = vld [vmem:[%s14040_s1 + $0xfc8] sm:$0xff]  }
 0x1a7   :  { %7482 = vmatprep.mubr.bf16.mxu1 %v178_v2  ;;  %v10954_v2 = vld [vmem:[%s14040_s1 + $0xfd0] sm:$0xff]  }
 0x1a8   :  { %9829 = vmatpush3.bf16.msra.mxu0 %v10887_v23 }
 0x1a9   :  { %9851 = vmatpush3.bf16.msra.mxu1 %v10888_v24  ;;  %9830 = vmatprep.subr.bf16.mxu0 %v10889_v25  ;;  %v10929_v24 = vld [vmem:[%s14040_s1 + $0xe60] sm:$0xff]  }
 0x1aa   :  { %9852 = vmatprep.subr.bf16.mxu1 %v10890_v26 }
 0x1ac   :  { %9831 = vmatpush3.bf16.msra.mxu0 %v10891_v27  ;;  %v10930_v27 = vld [vmem:[%s14040_s1 + $0xee0] sm:$0xff]  }
 0x1ad   :  { %9853 = vmatpush3.bf16.msra.mxu1 %v10892_v28  ;;  %9832 = vmatprep.subr.bf16.mxu0 %v10893_v29 }
 0x1ae   :  { %9854 = vmatprep.subr.bf16.mxu1 %v10894_v30  ;;  %v10931_v30 = vld [vmem:[%s14040_s1 + $0xe20] sm:$0xff]  }
 0x1b0   :  { %9833 = vmatpush3.bf16.msra.mxu0 %v10895_v32 }
 0x1b1   :  { %9855 = vmatpush3.bf16.msra.mxu1 %v10896_v34  ;;  %9834 = vmatprep.subr.bf16.mxu0 %v10897_v36  ;;  %v10933_v36 = vld [vmem:[%s14040_s1 + $0xe68] sm:$0xff]  }
 0x1b2   :  { %9856 = vmatprep.subr.bf16.mxu1 %v10898_v39  ;;  %v10935_v39 = vld [vmem:[%s14040_s1 + $0xe28] sm:$0xff]  }
 0x1b4   :  { %9835 = vmatpush3.bf16.msra.mxu0 %v10899_v42  ;;  %v10938_v42 = vld [vmem:[%s14040_s1 + $0xef0] sm:$0xff]  }
 0x1b5   :  { %9857 = vmatpush3.bf16.msra.mxu1 %v10900_v45  ;;  %9836 = vmatprep.subr.bf16.mxu0 %v10901_v48  ;;  %v10941_v45 = vld [vmem:[%s14040_s1 + $0xe78] sm:$0xff]  }
 0x1b6   :  { %v9534_v31 = vpop.f32.mrb[24].mxu0  ;;  %9858 = vmatprep.subr.bf16.mxu1 %v10902_v50  ;;  %v10944_v48 = vld [vmem:[%s14040_s1 + $0xeb8] sm:$0xff]  }
 0x1b7   :  { %v9556_v33 = vpop.f32.mrb[24].mxu1  ;;  %v9535_v35 = vpop.f32.mrb[25].mxu0  ;;  %v86_v50 = vld [vmem:[%s14041_s0 + $0x1d8] sm:$0xff] }
 0x1b8   :  { %v9536_v37 = vadd.f32 %v9535_v35, %v9534_v31  ;;  %v9557_v38 = vpop.f32.mrb[25].mxu1  ;;  %v9537_v41 = vpop.f32.mrb[26].mxu0  ;;  %9837 = vmatpush3.bf16.msra.mxu0 %v10903_v51  ;;  %v83_v51 = vld [vmem:[%s14041_s0 + $0x1c0] sm:$0xff] }
 0x1b9   :  { %v9558_v40 = vadd.f32 %v9557_v38, %v9556_v33  ;;  %v9559_v44 = vpop.f32.mrb[26].mxu1  ;;  %v9538_v46 = vpop.f32.mrb[27].mxu0  ;;  %9859 = vmatpush3.bf16.msra.mxu1 %v10904_v52  ;;  %9838 = vmatprep.subr.bf16.mxu0 %v10905_v53  ;;  %v10932_v33 = vld [vmem:[%s14040_s1 + $0xea0] sm:$0xff]   ;;  %v10934_v38 = vld [vmem:[%s14040_s1 + $0xee8] sm:$0xff]   ;;  %v10937_v41 = vld [vmem:[%s14040_s1 + $0xe70] sm:$0xff]   ;;  %v182_v53 = vpack.c.bf16 %v86_v50, %v86_v50 }
 0x1ba   :  { %v6885_v43 = vadd.f32 %v9536_v37, %v12650_v59  ;;  %v9560_v49 = vpop.f32.mrb[27].mxu1  ;;  %9860 = vmatprep.subr.bf16.mxu1 %v10906_v54  ;;  %v10911_v59 = vld [vmem:[%s14040_s1 + $0xd38] sm:$0xff]   ;;  %v10940_v44 = vld [vmem:[%s14040_s1 + $0xeb0] sm:$0xff]   ;;  %v179_v54 = vpack.c.bf16 %v83_v51, %v83_v51  ;;  %v10982_v50 = vld [vmem:[%s14040_s1 + $0x10c8] sm:$0xff]  }
 0x1bb   :  { %v10942_v46 = vld [vmem:[%s14040_s1 + $0xef8] sm:$0xff]   ;;  %v84_v49 = vld [vmem:[%s14041_s0 + $0x1c8] sm:$0xff] }
 0x1bc   :  { %v12761_v47 = vadd.f32 %v9558_v40, %v6885_v43  ;;  %9839 = vmatpush3.bf16.msra.mxu0 %v10907_v55  ;;  %v10936_v40 = vld [vmem:[%s14040_s1 + $0xea8] sm:$0xff]   ;;  %v10939_v43 = vld [vmem:[%s14040_s1 + $0xe30] sm:$0xff]   ;;  %v180_v52 = vpack.c.bf16 %v84_v49, %v84_v49 }
 0x1bd   :  { %9861 = vmatpush3.bf16.msra.mxu1 %v10908_v56  ;;  %9840 = vmatprep.subr.bf16.mxu0 %v10909_v57  ;;  %v85_v55 = vld [vmem:[%s14041_s0 + $0x1d0] sm:$0xff]  ;;  %v10945_v57 = vld [vmem:[%s14040_s1 + $0xf40] sm:$0xff]   ;;  %v10981_v49 = vld [vmem:[%s14040_s1 + $0x1048] sm:$0xff]  }
 0x1be   :  { %9862 = vmatprep.subr.bf16.mxu1 %v10910_v58  ;;  %v181_v56 = vpack.c.bf16 %v85_v55, %v85_v55  ;;  %v10946_v58 = vld [vmem:[%s14040_s1 + $0xfc0] sm:$0xff]   ;;  %v10983_v51 = vld [vmem:[%s14040_s1 + $0x1008] sm:$0xff]   ;;  %v10987_v55 = vld [vmem:[%s14040_s1 + $0x1010] sm:$0xff]  }
 0x1c0   :  { %9841 = vmatpush3.bf16.msra.mxu0 %v10911_v59  ;;  %v10947_v59 = vld [vmem:[%s14040_s1 + $0xf00] sm:$0xff]  }
 0x1c1   :  { %9863 = vmatpush3.bf16.msra.mxu1 %v10912_v60  ;;  %9870 = vmatprep.subr.bf16.mxu0 %v10913_v5  ;;  %v10948_v60 = vld [vmem:[%s14040_s1 + $0xf80] sm:$0xff]   ;;  %v10957_v5 = vld [vmem:[%s14040_s1 + $0xf58] sm:$0xff]  }
 0x1c2   :  { %9892 = vmatprep.subr.bf16.mxu1 %v10914_v6  ;;  %v10958_v6 = vld [vmem:[%s14040_s1 + $0xfd8] sm:$0xff]  }
 0x1c3   :  { %7443 = vmatmul.mubr.bf16.vlgmr.msra.gmra.mrb[52].mxu0 %v175_v3  ;;  %v10955_v3 = vld [vmem:[%s14040_s1 + $0xf10] sm:$0xff]  }
 0x1c4   :  { %7483 = vmatmul.mubr.bf16.vlgmr.msra.gmra.mrb[52].mxu1 %v177_v4  ;;  %9871 = vmatpush3.bf16.msra.mxu0 %v10915_v7  ;;  %v10956_v4 = vld [vmem:[%s14040_s1 + $0xf90] sm:$0xff]  }
 0x1c5   :  { %9893 = vmatpush3.bf16.msra.mxu1 %v10916_v8  ;;  %9872 = vmatprep.subr.bf16.mxu0 %v10917_v9  ;;  %v10959_v8 = vld [vmem:[%s14040_s1 + $0xf18] sm:$0xff]  }
 0x1c6   :  { %9894 = vmatprep.subr.bf16.mxu1 %v10918_v10  ;;  %7522 = vmatprep.mubr.bf16.mxu0 %v180_v52  ;;  %v10960_v10 = vld [vmem:[%s14040_s1 + $0xf98] sm:$0xff]   ;;  %v10984_v52 = vld [vmem:[%s14040_s1 + $0x1088] sm:$0xff]  }
 0x1c7   :  { %7562 = vmatprep.mubr.bf16.mxu1 %v182_v53  ;;  %v10985_v53 = vld [vmem:[%s14040_s1 + $0x1050] sm:$0xff]  }
 0x1c8   :  { %9873 = vmatpush3.bf16.msra.mxu0 %v10919_v11 }
 0x1c9   :  { %9895 = vmatpush3.bf16.msra.mxu1 %v10920_v12  ;;  %9874 = vmatprep.subr.bf16.mxu0 %v10921_v13  ;;  %v10961_v12 = vld [vmem:[%s14040_s1 + $0xf60] sm:$0xff]  }
 0x1ca   :  { %9896 = vmatprep.subr.bf16.mxu1 %v10922_v14 }
 0x1cc   :  { %9875 = vmatpush3.bf16.msra.mxu0 %v10923_v15  ;;  %v10962_v15 = vld [vmem:[%s14040_s1 + $0xfe0] sm:$0xff]  }
 0x1cd   :  { %9897 = vmatpush3.bf16.msra.mxu1 %v10924_v16  ;;  %9876 = vmatprep.subr.bf16.mxu0 %v10925_v17 }
 0x1ce   :  { %9898 = vmatprep.subr.bf16.mxu1 %v10926_v18  ;;  %v10963_v18 = vld [vmem:[%s14040_s1 + $0xf20] sm:$0xff]  }
 0x1d0   :  { %9877 = vmatpush3.bf16.msra.mxu0 %v10927_v20 }
 0x1d1   :  { %9899 = vmatpush3.bf16.msra.mxu1 %v10928_v22  ;;  %9878 = vmatprep.subr.bf16.mxu0 %v10929_v24  ;;  %v10965_v24 = vld [vmem:[%s14040_s1 + $0xf68] sm:$0xff]  }
 0x1d2   :  { %9900 = vmatprep.subr.bf16.mxu1 %v10930_v27  ;;  %v10967_v27 = vld [vmem:[%s14040_s1 + $0xf28] sm:$0xff]  }
 0x1d4   :  { %9879 = vmatpush3.bf16.msra.mxu0 %v10931_v30  ;;  %v10970_v30 = vld [vmem:[%s14040_s1 + $0xff0] sm:$0xff]  }
 0x1d5   :  { %9901 = vmatpush3.bf16.msra.mxu1 %v10932_v33  ;;  %9880 = vmatprep.subr.bf16.mxu0 %v10933_v36  ;;  %v10973_v33 = vld [vmem:[%s14040_s1 + $0xf78] sm:$0xff]  }
 0x1d6   :  { %v9578_v19 = vpop.f32.mrb[28].mxu0  ;;  %9902 = vmatprep.subr.bf16.mxu1 %v10934_v38  ;;  %v10976_v36 = vld [vmem:[%s14040_s1 + $0xfb8] sm:$0xff]  }
 0x1d7   :  { %v9600_v21 = vpop.f32.mrb[28].mxu1  ;;  %v9579_v23 = vpop.f32.mrb[29].mxu0  ;;  %v90_v38 = vld [vmem:[%s14041_s0 + $0x1f8] sm:$0xff] }
 0x1d8   :  { %v9580_v25 = vadd.f32 %v9579_v23, %v9578_v19  ;;  %v9601_v26 = vpop.f32.mrb[29].mxu1  ;;  %v9581_v29 = vpop.f32.mrb[30].mxu0  ;;  %9881 = vmatpush3.bf16.msra.mxu0 %v10935_v39 }
 0x1d9   :  { %v9602_v28 = vadd.f32 %v9601_v26, %v9600_v21  ;;  %v9603_v32 = vpop.f32.mrb[30].mxu1  ;;  %v9582_v34 = vpop.f32.mrb[31].mxu0  ;;  %9903 = vmatpush3.bf16.msra.mxu1 %v10936_v40  ;;  %9882 = vmatprep.subr.bf16.mxu0 %v10937_v41  ;;  %v10964_v21 = vld [vmem:[%s14040_s1 + $0xfa0] sm:$0xff]   ;;  %v10966_v26 = vld [vmem:[%s14040_s1 + $0xfe8] sm:$0xff]   ;;  %v10969_v29 = vld [vmem:[%s14040_s1 + $0xf70] sm:$0xff]   ;;  %v186_v40 = vpack.c.bf16 %v90_v38, %v90_v38 }
 0x1da   :  { %v6965_v31 = vadd.f32 %v9580_v25, %v12761_v47  ;;  %v9604_v37 = vpop.f32.mrb[31].mxu1  ;;  %9904 = vmatprep.subr.bf16.mxu1 %v10938_v42  ;;  %v10943_v47 = vld [vmem:[%s14040_s1 + $0xe38] sm:$0xff]   ;;  %v10972_v32 = vld [vmem:[%s14040_s1 + $0xfb0] sm:$0xff]   ;;  %v87_v41 = vld [vmem:[%s14041_s0 + $0x1e0] sm:$0xff] }
 0x1db   :  { %v10974_v34 = vld [vmem:[%s14040_s1 + $0xff8] sm:$0xff]   ;;  %v88_v37 = vld [vmem:[%s14041_s0 + $0x1e8] sm:$0xff]  ;;  %v89_v42 = vld [vmem:[%s14041_s0 + $0x1f0] sm:$0xff] }
 0x1dc   :  { %v12872_v35 = vadd.f32 %v9602_v28, %v6965_v31  ;;  %9883 = vmatpush3.bf16.msra.mxu0 %v10939_v43  ;;  %v10968_v28 = vld [vmem:[%s14040_s1 + $0xfa8] sm:$0xff]   ;;  %v10971_v31 = vld [vmem:[%s14040_s1 + $0xf30] sm:$0xff]   ;;  %v184_v39 = vpack.c.bf16 %v88_v37, %v88_v37  ;;  %v183_v43 = vpack.c.bf16 %v87_v41, %v87_v41 }
 0x1dd   :  { %9905 = vmatpush3.bf16.msra.mxu1 %v10940_v44  ;;  %9884 = vmatprep.subr.bf16.mxu0 %v10941_v45  ;;  %v185_v44 = vpack.c.bf16 %v89_v42, %v89_v42  ;;  %v10977_v45 = vld [vmem:[%s14040_s1 + $0x1040] sm:$0xff]   ;;  %v11013_v37 = vld [vmem:[%s14040_s1 + $0x1148] sm:$0xff]   ;;  %v11017_v41 = vld [vmem:[%s14040_s1 + $0x1150] sm:$0xff]  }
 0x1de   :  { %9906 = vmatprep.subr.bf16.mxu1 %v10942_v46  ;;  %v10978_v46 = vld [vmem:[%s14040_s1 + $0x10c0] sm:$0xff]   ;;  %v11014_v38 = vld [vmem:[%s14040_s1 + $0x11c8] sm:$0xff]   ;;  %v11018_v42 = vld [vmem:[%s14040_s1 + $0x11d0] sm:$0xff]  }
 0x1e0   :  { %9885 = vmatpush3.bf16.msra.mxu0 %v10943_v47  ;;  %v10979_v47 = vld [vmem:[%s14040_s1 + $0x1000] sm:$0xff]  }
 0x1e1   :  { %9907 = vmatpush3.bf16.msra.mxu1 %v10944_v48  ;;  %9914 = vmatprep.subr.bf16.mxu0 %v10945_v57  ;;  %v10980_v48 = vld [vmem:[%s14040_s1 + $0x1080] sm:$0xff]   ;;  %v10989_v57 = vld [vmem:[%s14040_s1 + $0x1058] sm:$0xff]  }
 0x1e2   :  { %9936 = vmatprep.subr.bf16.mxu1 %v10946_v58  ;;  %v10990_v58 = vld [vmem:[%s14040_s1 + $0x10d8] sm:$0xff]  }
 0x1e3   :  { %7523 = vmatmul.mubr.bf16.vlgmr.msra.gmra.mrb[56].mxu0 %v179_v54  ;;  %v10986_v54 = vld [vmem:[%s14040_s1 + $0x10d0] sm:$0xff]  }
 0x1e4   :  { %7563 = vmatmul.mubr.bf16.vlgmr.msra.gmra.mrb[56].mxu1 %v181_v56  ;;  %9915 = vmatpush3.bf16.msra.mxu0 %v10947_v59  ;;  %v10988_v56 = vld [vmem:[%s14040_s1 + $0x1090] sm:$0xff]  }
 0x1e5   :  { %9937 = vmatpush3.bf16.msra.mxu1 %v10948_v60  ;;  %9916 = vmatprep.subr.bf16.mxu0 %v10949_v61  ;;  %v10991_v60 = vld [vmem:[%s14040_s1 + $0x1018] sm:$0xff]  }
 0x1e6   :  { %9938 = vmatprep.subr.bf16.mxu1 %v10950_v62  ;;  %7602 = vmatprep.mubr.bf16.mxu0 %v184_v39  ;;  %v10992_v62 = vld [vmem:[%s14040_s1 + $0x1098] sm:$0xff]   ;;  %v11015_v39 = vld [vmem:[%s14040_s1 + $0x1108] sm:$0xff]  }
 0x1e7   :  { %7642 = vmatprep.mubr.bf16.mxu1 %v186_v40  ;;  %v11016_v40 = vld [vmem:[%s14040_s1 + $0x1188] sm:$0xff]  }
 0x1e8   :  { %9917 = vmatpush3.bf16.msra.mxu0 %v10951_v63 }
 0x1e9   :  { %9939 = vmatpush3.bf16.msra.mxu1 %v10952_v0  ;;  %9918 = vmatprep.subr.bf16.mxu0 %v10953_v1  ;;  %v10993_v0 = vld [vmem:[%s14040_s1 + $0x1060] sm:$0xff]  }
 0x1ea   :  { %9940 = vmatprep.subr.bf16.mxu1 %v10954_v2 }
 0x1ec   :  { %9919 = vmatpush3.bf16.msra.mxu0 %v10955_v3  ;;  %v10994_v3 = vld [vmem:[%s14040_s1 + $0x10e0] sm:$0xff]  }
 0x1ed   :  { %9941 = vmatpush3.bf16.msra.mxu1 %v10956_v4  ;;  %9920 = vmatprep.subr.bf16.mxu0 %v10957_v5 }
 0x1ee   :  { %9942 = vmatprep.subr.bf16.mxu1 %v10958_v6  ;;  %v10995_v6 = vld [vmem:[%s14040_s1 + $0x1020] sm:$0xff]  }
 0x1f0   :  { %9921 = vmatpush3.bf16.msra.mxu0 %v10959_v8 }
 0x1f1   :  { %9943 = vmatpush3.bf16.msra.mxu1 %v10960_v10  ;;  %9922 = vmatprep.subr.bf16.mxu0 %v10961_v12  ;;  %v10997_v12 = vld [vmem:[%s14040_s1 + $0x1068] sm:$0xff]  }
 0x1f2   :  { %9944 = vmatprep.subr.bf16.mxu1 %v10962_v15  ;;  %v10999_v15 = vld [vmem:[%s14040_s1 + $0x1028] sm:$0xff]  }
 0x1f4   :  { %9923 = vmatpush3.bf16.msra.mxu0 %v10963_v18  ;;  %v11002_v18 = vld [vmem:[%s14040_s1 + $0x10f0] sm:$0xff]  }
 0x1f5   :  { %9945 = vmatpush3.bf16.msra.mxu1 %v10964_v21  ;;  %9924 = vmatprep.subr.bf16.mxu0 %v10965_v24  ;;  %v11005_v21 = vld [vmem:[%s14040_s1 + $0x1078] sm:$0xff]  }
 0x1f6   :  { %v9622_v7 = vpop.f32.mrb[32].mxu0  ;;  %9946 = vmatprep.subr.bf16.mxu1 %v10966_v26  ;;  %v11008_v24 = vld [vmem:[%s14040_s1 + $0x10b8] sm:$0xff]  }
 0x1f7   :  { %v9644_v9 = vpop.f32.mrb[32].mxu1  ;;  %v9623_v11 = vpop.f32.mrb[33].mxu0 }
 0x1f8   :  { %v9624_v13 = vadd.f32 %v9623_v11, %v9622_v7  ;;  %v9645_v14 = vpop.f32.mrb[33].mxu1  ;;  %v9625_v17 = vpop.f32.mrb[34].mxu0  ;;  %9925 = vmatpush3.bf16.msra.mxu0 %v10967_v27  ;;  %v94_v27 = vld [vmem:[%s14041_s0 + $0x218] sm:$0xff] }
 0x1f9   :  { %v9646_v16 = vadd.f32 %v9645_v14, %v9644_v9  ;;  %v9647_v20 = vpop.f32.mrb[34].mxu1  ;;  %v9626_v22 = vpop.f32.mrb[35].mxu0  ;;  %9947 = vmatpush3.bf16.msra.mxu1 %v10968_v28  ;;  %9926 = vmatprep.subr.bf16.mxu0 %v10969_v29  ;;  %v10996_v9 = vld [vmem:[%s14040_s1 + $0x10a0] sm:$0xff]   ;;  %v10998_v14 = vld [vmem:[%s14040_s1 + $0x10e8] sm:$0xff]   ;;  %v11001_v17 = vld [vmem:[%s14040_s1 + $0x1070] sm:$0xff]  }
 0x1fa   :  { %v7045_v19 = vadd.f32 %v9624_v13, %v12872_v35  ;;  %v9648_v25 = vpop.f32.mrb[35].mxu1  ;;  %9948 = vmatprep.subr.bf16.mxu1 %v10970_v30  ;;  %v10975_v35 = vld [vmem:[%s14040_s1 + $0xf38] sm:$0xff]   ;;  %v11004_v20 = vld [vmem:[%s14040_s1 + $0x10b0] sm:$0xff]   ;;  %v91_v28 = vld [vmem:[%s14041_s0 + $0x200] sm:$0xff]  ;;  %v190_v30 = vpack.c.bf16 %v94_v27, %v94_v27 }
 0x1fb   :  { %v11006_v22 = vld [vmem:[%s14040_s1 + $0x10f8] sm:$0xff]   ;;  %v92_v25 = vld [vmem:[%s14041_s0 + $0x208] sm:$0xff]  ;;  %v93_v29 = vld [vmem:[%s14041_s0 + $0x210] sm:$0xff] }
 0x1fc   :  { %v12983_v23 = vadd.f32 %v9646_v16, %v7045_v19  ;;  %9927 = vmatpush3.bf16.msra.mxu0 %v10971_v31  ;;  %v11000_v16 = vld [vmem:[%s14040_s1 + $0x10a8] sm:$0xff]   ;;  %v11003_v19 = vld [vmem:[%s14040_s1 + $0x1030] sm:$0xff]   ;;  %v188_v26 = vpack.c.bf16 %v92_v25, %v92_v25  ;;  %v187_v31 = vpack.c.bf16 %v91_v28, %v91_v28 }
 0x1fd   :  { %9949 = vmatpush3.bf16.msra.mxu1 %v10972_v32  ;;  %9928 = vmatprep.subr.bf16.mxu0 %v10973_v33  ;;  %v189_v32 = vpack.c.bf16 %v93_v29, %v93_v29  ;;  %v11009_v33 = vld [vmem:[%s14040_s1 + $0x1140] sm:$0xff]   ;;  %v11045_v25 = vld [vmem:[%s14040_s1 + $0x1248] sm:$0xff]   ;;  %v11049_v29 = vld [vmem:[%s14040_s1 + $0x1250] sm:$0xff]  }
 0x1fe   :  { %9950 = vmatprep.subr.bf16.mxu1 %v10974_v34  ;;  %v11010_v34 = vld [vmem:[%s14040_s1 + $0x11c0] sm:$0xff]   ;;  %v11047_v27 = vld [vmem:[%s14040_s1 + $0x1208] sm:$0xff]  }
 0x1ff   :  { %v11048_v28 = vld [vmem:[%s14040_s1 + $0x1288] sm:$0xff]  }
 0x200   :  { %9929 = vmatpush3.bf16.msra.mxu0 %v10975_v35  ;;  %v11011_v35 = vld [vmem:[%s14040_s1 + $0x1100] sm:$0xff]  }
 0x201   :  { %9951 = vmatpush3.bf16.msra.mxu1 %v10976_v36  ;;  %9958 = vmatprep.subr.bf16.mxu0 %v10977_v45  ;;  %v11012_v36 = vld [vmem:[%s14040_s1 + $0x1180] sm:$0xff]   ;;  %v11021_v45 = vld [vmem:[%s14040_s1 + $0x1158] sm:$0xff]  }
 0x202   :  { %9980 = vmatprep.subr.bf16.mxu1 %v10978_v46  ;;  %v11022_v46 = vld [vmem:[%s14040_s1 + $0x11d8] sm:$0xff]  }
 0x203   :  { %7603 = vmatmul.mubr.bf16.vlgmr.msra.gmra.mrb[60].mxu0 %v183_v43  ;;  %v11019_v43 = vld [vmem:[%s14040_s1 + $0x1110] sm:$0xff]  }
 0x204   :  { %7643 = vmatmul.mubr.bf16.vlgmr.msra.gmra.mrb[60].mxu1 %v185_v44  ;;  %9959 = vmatpush3.bf16.msra.mxu0 %v10979_v47  ;;  %v11020_v44 = vld [vmem:[%s14040_s1 + $0x1190] sm:$0xff]  }
 0x205   :  { %9981 = vmatpush3.bf16.msra.mxu1 %v10980_v48  ;;  %9960 = vmatprep.subr.bf16.mxu0 %v10981_v49  ;;  %v11023_v48 = vld [vmem:[%s14040_s1 + $0x1118] sm:$0xff]  }
 0x206   :  { %9982 = vmatprep.subr.bf16.mxu1 %v10982_v50  ;;  %7682 = vmatprep.mubr.bf16.mxu0 %v188_v26  ;;  %v11024_v50 = vld [vmem:[%s14040_s1 + $0x1198] sm:$0xff]   ;;  %v11046_v26 = vld [vmem:[%s14040_s1 + $0x12c8] sm:$0xff]  }
 0x207   :  { %7722 = vmatprep.mubr.bf16.mxu1 %v190_v30  ;;  %v11050_v30 = vld [vmem:[%s14040_s1 + $0x12d0] sm:$0xff]  }
 0x208   :  { %9961 = vmatpush3.bf16.msra.mxu0 %v10983_v51 }
 0x209   :  { %9983 = vmatpush3.bf16.msra.mxu1 %v10984_v52  ;;  %9962 = vmatprep.subr.bf16.mxu0 %v10985_v53  ;;  %v11025_v52 = vld [vmem:[%s14040_s1 + $0x1160] sm:$0xff]  }
 0x20a   :  { %9984 = vmatprep.subr.bf16.mxu1 %v10986_v54 }
 0x20c   :  { %9963 = vmatpush3.bf16.msra.mxu0 %v10987_v55  ;;  %v11026_v55 = vld [vmem:[%s14040_s1 + $0x11e0] sm:$0xff]  }
 0x20d   :  { %9985 = vmatpush3.bf16.msra.mxu1 %v10988_v56  ;;  %9964 = vmatprep.subr.bf16.mxu0 %v10989_v57 }
 0x20e   :  { %9986 = vmatprep.subr.bf16.mxu1 %v10990_v58  ;;  %v11027_v58 = vld [vmem:[%s14040_s1 + $0x1120] sm:$0xff]  }
 0x210   :  { %9965 = vmatpush3.bf16.msra.mxu0 %v10991_v60 }
 0x211   :  { %9987 = vmatpush3.bf16.msra.mxu1 %v10992_v62  ;;  %9966 = vmatprep.subr.bf16.mxu0 %v10993_v0  ;;  %v11029_v0 = vld [vmem:[%s14040_s1 + $0x1168] sm:$0xff]  }
 0x212   :  { %9988 = vmatprep.subr.bf16.mxu1 %v10994_v3  ;;  %v11031_v3 = vld [vmem:[%s14040_s1 + $0x1128] sm:$0xff]  }
 0x214   :  { %9967 = vmatpush3.bf16.msra.mxu0 %v10995_v6  ;;  %v11034_v6 = vld [vmem:[%s14040_s1 + $0x11f0] sm:$0xff]  }
 0x215   :  { %9989 = vmatpush3.bf16.msra.mxu1 %v10996_v9  ;;  %9968 = vmatprep.subr.bf16.mxu0 %v10997_v12  ;;  %v11037_v9 = vld [vmem:[%s14040_s1 + $0x1178] sm:$0xff]  }
 0x216   :  { %v9666_v59 = vpop.f32.mrb[36].mxu0  ;;  %9990 = vmatprep.subr.bf16.mxu1 %v10998_v14  ;;  %v11040_v12 = vld [vmem:[%s14040_s1 + $0x11b8] sm:$0xff]  }
 0x217   :  { %v9688_v61 = vpop.f32.mrb[36].mxu1  ;;  %v9667_v63 = vpop.f32.mrb[37].mxu0  ;;  %v98_v14 = vld [vmem:[%s14041_s0 + $0x238] sm:$0xff] }
 0x218   :  { %v9668_v1 = vadd.f32 %v9667_v63, %v9666_v59  ;;  %v9689_v2 = vpop.f32.mrb[37].mxu1  ;;  %v9669_v5 = vpop.f32.mrb[38].mxu0  ;;  %9969 = vmatpush3.bf16.msra.mxu0 %v10999_v15  ;;  %v95_v15 = vld [vmem:[%s14041_s0 + $0x220] sm:$0xff] }
 0x219   :  { %v9690_v4 = vadd.f32 %v9689_v2, %v9688_v61  ;;  %v9691_v8 = vpop.f32.mrb[38].mxu1  ;;  %v9670_v10 = vpop.f32.mrb[39].mxu0  ;;  %9991 = vmatpush3.bf16.msra.mxu1 %v11000_v16  ;;  %9970 = vmatprep.subr.bf16.mxu0 %v11001_v17  ;;  %v11028_v61 = vld [vmem:[%s14040_s1 + $0x11a0] sm:$0xff]   ;;  %v11030_v2 = vld [vmem:[%s14040_s1 + $0x11e8] sm:$0xff]   ;;  %v11033_v5 = vld [vmem:[%s14040_s1 + $0x1170] sm:$0xff]   ;;  %v194_v17 = vpack.c.bf16 %v98_v14, %v98_v14 }
 0x21a   :  { %v7125_v7 = vadd.f32 %v9668_v1, %v12983_v23  ;;  %v9692_v13 = vpop.f32.mrb[39].mxu1  ;;  %9992 = vmatprep.subr.bf16.mxu1 %v11002_v18  ;;  %v11007_v23 = vld [vmem:[%s14040_s1 + $0x1038] sm:$0xff]   ;;  %v11036_v8 = vld [vmem:[%s14040_s1 + $0x11b0] sm:$0xff]   ;;  %v191_v18 = vpack.c.bf16 %v95_v15, %v95_v15  ;;  %v11078_v14 = vld [vmem:[%s14040_s1 + $0x13c8] sm:$0xff]  }
 0x21b   :  { %v11038_v10 = vld [vmem:[%s14040_s1 + $0x11f8] sm:$0xff]   ;;  %v96_v13 = vld [vmem:[%s14041_s0 + $0x228] sm:$0xff] }
 0x21c   :  { %v13094_v11 = vadd.f32 %v9690_v4, %v7125_v7  ;;  %9971 = vmatpush3.bf16.msra.mxu0 %v11003_v19  ;;  %v11032_v4 = vld [vmem:[%s14040_s1 + $0x11a8] sm:$0xff]   ;;  %v11035_v7 = vld [vmem:[%s14040_s1 + $0x1130] sm:$0xff]   ;;  %v192_v16 = vpack.c.bf16 %v96_v13, %v96_v13 }
 0x21d   :  { %9993 = vmatpush3.bf16.msra.mxu1 %v11004_v20  ;;  %9972 = vmatprep.subr.bf16.mxu0 %v11005_v21  ;;  %v97_v19 = vld [vmem:[%s14041_s0 + $0x230] sm:$0xff]  ;;  %v11041_v21 = vld [vmem:[%s14040_s1 + $0x1240] sm:$0xff]   ;;  %v11077_v13 = vld [vmem:[%s14040_s1 + $0x1348] sm:$0xff]  }
 0x21e   :  { %9994 = vmatprep.subr.bf16.mxu1 %v11006_v22  ;;  %v193_v20 = vpack.c.bf16 %v97_v19, %v97_v19  ;;  %v11042_v22 = vld [vmem:[%s14040_s1 + $0x12c0] sm:$0xff]   ;;  %v11079_v15 = vld [vmem:[%s14040_s1 + $0x1308] sm:$0xff]   ;;  %v11083_v19 = vld [vmem:[%s14040_s1 + $0x1310] sm:$0xff]  }
 0x220   :  { %9973 = vmatpush3.bf16.msra.mxu0 %v11007_v23  ;;  %v11043_v23 = vld [vmem:[%s14040_s1 + $0x1200] sm:$0xff]  }
 0x221   :  { %9995 = vmatpush3.bf16.msra.mxu1 %v11008_v24  ;;  %10002 = vmatprep.subr.bf16.mxu0 %v11009_v33  ;;  %v11044_v24 = vld [vmem:[%s14040_s1 + $0x1280] sm:$0xff]   ;;  %v11053_v33 = vld [vmem:[%s14040_s1 + $0x1258] sm:$0xff]  }
 0x222   :  { %10024 = vmatprep.subr.bf16.mxu1 %v11010_v34  ;;  %v11054_v34 = vld [vmem:[%s14040_s1 + $0x12d8] sm:$0xff]  }
 0x223   :  { %7683 = vmatmul.mubr.bf16.vlgmr.msra.gmra.mrb[64].mxu0 %v187_v31  ;;  %v11051_v31 = vld [vmem:[%s14040_s1 + $0x1210] sm:$0xff]  }
 0x224   :  { %7723 = vmatmul.mubr.bf16.vlgmr.msra.gmra.mrb[64].mxu1 %v189_v32  ;;  %10003 = vmatpush3.bf16.msra.mxu0 %v11011_v35  ;;  %v11052_v32 = vld [vmem:[%s14040_s1 + $0x1290] sm:$0xff]  }
 0x225   :  { %10025 = vmatpush3.bf16.msra.mxu1 %v11012_v36  ;;  %10004 = vmatprep.subr.bf16.mxu0 %v11013_v37  ;;  %v11055_v36 = vld [vmem:[%s14040_s1 + $0x1218] sm:$0xff]  }
 0x226   :  { %10026 = vmatprep.subr.bf16.mxu1 %v11014_v38  ;;  %7762 = vmatprep.mubr.bf16.mxu0 %v192_v16  ;;  %v11056_v38 = vld [vmem:[%s14040_s1 + $0x1298] sm:$0xff]   ;;  %v11080_v16 = vld [vmem:[%s14040_s1 + $0x1388] sm:$0xff]  }
 0x227   :  { %7802 = vmatprep.mubr.bf16.mxu1 %v194_v17  ;;  %v11081_v17 = vld [vmem:[%s14040_s1 + $0x1350] sm:$0xff]  }
 0x228   :  { %10005 = vmatpush3.bf16.msra.mxu0 %v11015_v39 }
 0x229   :  { %10027 = vmatpush3.bf16.msra.mxu1 %v11016_v40  ;;  %10006 = vmatprep.subr.bf16.mxu0 %v11017_v41  ;;  %v11057_v40 = vld [vmem:[%s14040_s1 + $0x1260] sm:$0xff]  }
 0x22a   :  { %10028 = vmatprep.subr.bf16.mxu1 %v11018_v42 }
 0x22c   :  { %10007 = vmatpush3.bf16.msra.mxu0 %v11019_v43  ;;  %v11058_v43 = vld [vmem:[%s14040_s1 + $0x12e0] sm:$0xff]  }
 0x22d   :  { %10029 = vmatpush3.bf16.msra.mxu1 %v11020_v44  ;;  %10008 = vmatprep.subr.bf16.mxu0 %v11021_v45 }
 0x22e   :  { %10030 = vmatprep.subr.bf16.mxu1 %v11022_v46  ;;  %v11059_v46 = vld [vmem:[%s14040_s1 + $0x1220] sm:$0xff]  }
 0x230   :  { %10009 = vmatpush3.bf16.msra.mxu0 %v11023_v48 }
 0x231   :  { %10031 = vmatpush3.bf16.msra.mxu1 %v11024_v50  ;;  %10010 = vmatprep.subr.bf16.mxu0 %v11025_v52  ;;  %v11061_v52 = vld [vmem:[%s14040_s1 + $0x1268] sm:$0xff]  }
 0x232   :  { %10032 = vmatprep.subr.bf16.mxu1 %v11026_v55  ;;  %v11063_v55 = vld [vmem:[%s14040_s1 + $0x1228] sm:$0xff]  }
 0x234   :  { %10011 = vmatpush3.bf16.msra.mxu0 %v11027_v58  ;;  %v11066_v58 = vld [vmem:[%s14040_s1 + $0x12f0] sm:$0xff]  }
 0x235   :  { %10033 = vmatpush3.bf16.msra.mxu1 %v11028_v61  ;;  %10012 = vmatprep.subr.bf16.mxu0 %v11029_v0  ;;  %v11069_v61 = vld [vmem:[%s14040_s1 + $0x1278] sm:$0xff]  }
 0x236   :  { %v9710_v47 = vpop.f32.mrb[40].mxu0  ;;  %10034 = vmatprep.subr.bf16.mxu1 %v11030_v2  ;;  %v11072_v0 = vld [vmem:[%s14040_s1 + $0x12b8] sm:$0xff]  }
 0x237   :  { %v9732_v49 = vpop.f32.mrb[40].mxu1  ;;  %v9711_v51 = vpop.f32.mrb[41].mxu0  ;;  %v102_v2 = vld [vmem:[%s14041_s0 + $0x258] sm:$0xff] }
 0x238   :  { %v9712_v53 = vadd.f32 %v9711_v51, %v9710_v47  ;;  %v9733_v54 = vpop.f32.mrb[41].mxu1  ;;  %v9713_v57 = vpop.f32.mrb[42].mxu0  ;;  %10013 = vmatpush3.bf16.msra.mxu0 %v11031_v3 }
 0x239   :  { %v9734_v56 = vadd.f32 %v9733_v54, %v9732_v49  ;;  %v9735_v60 = vpop.f32.mrb[42].mxu1  ;;  %v9714_v62 = vpop.f32.mrb[43].mxu0  ;;  %10035 = vmatpush3.bf16.msra.mxu1 %v11032_v4  ;;  %10014 = vmatprep.subr.bf16.mxu0 %v11033_v5  ;;  %v11060_v49 = vld [vmem:[%s14040_s1 + $0x12a0] sm:$0xff]   ;;  %v11062_v54 = vld [vmem:[%s14040_s1 + $0x12e8] sm:$0xff]   ;;  %v11065_v57 = vld [vmem:[%s14040_s1 + $0x1270] sm:$0xff]   ;;  %v198_v4 = vpack.c.bf16 %v102_v2, %v102_v2 }
 0x23a   :  { %v7205_v59 = vadd.f32 %v9712_v53, %v13094_v11  ;;  %v9736_v1 = vpop.f32.mrb[43].mxu1  ;;  %10036 = vmatprep.subr.bf16.mxu1 %v11034_v6  ;;  %v11039_v11 = vld [vmem:[%s14040_s1 + $0x1138] sm:$0xff]   ;;  %v11068_v60 = vld [vmem:[%s14040_s1 + $0x12b0] sm:$0xff]   ;;  %v99_v5 = vld [vmem:[%s14041_s0 + $0x240] sm:$0xff] }
 0x23b   :  { %v11070_v62 = vld [vmem:[%s14040_s1 + $0x12f8] sm:$0xff]   ;;  %v100_v1 = vld [vmem:[%s14041_s0 + $0x248] sm:$0xff]  ;;  %v101_v6 = vld [vmem:[%s14041_s0 + $0x250] sm:$0xff] }
 0x23c   :  { %v13205_v63 = vadd.f32 %v9734_v56, %v7205_v59  ;;  %10015 = vmatpush3.bf16.msra.mxu0 %v11035_v7  ;;  %v11064_v56 = vld [vmem:[%s14040_s1 + $0x12a8] sm:$0xff]   ;;  %v11067_v59 = vld [vmem:[%s14040_s1 + $0x1230] sm:$0xff]   ;;  %v196_v3 = vpack.c.bf16 %v100_v1, %v100_v1  ;;  %v195_v7 = vpack.c.bf16 %v99_v5, %v99_v5 }
 0x23d   :  { %10037 = vmatpush3.bf16.msra.mxu1 %v11036_v8  ;;  %10016 = vmatprep.subr.bf16.mxu0 %v11037_v9  ;;  %v197_v8 = vpack.c.bf16 %v101_v6, %v101_v6  ;;  %v11073_v9 = vld [vmem:[%s14040_s1 + $0x1340] sm:$0xff]   ;;  %v11109_v1 = vld [vmem:[%s14040_s1 + $0x1448] sm:$0xff]   ;;  %v11113_v5 = vld [vmem:[%s14040_s1 + $0x1450] sm:$0xff]  }
 0x23e   :  { %10038 = vmatprep.subr.bf16.mxu1 %v11038_v10  ;;  %v11074_v10 = vld [vmem:[%s14040_s1 + $0x13c0] sm:$0xff]   ;;  %v11110_v2 = vld [vmem:[%s14040_s1 + $0x14c8] sm:$0xff]   ;;  %v11114_v6 = vld [vmem:[%s14040_s1 + $0x14d0] sm:$0xff]  }
 0x240   :  { %10017 = vmatpush3.bf16.msra.mxu0 %v11039_v11  ;;  %v11075_v11 = vld [vmem:[%s14040_s1 + $0x1300] sm:$0xff]  }
 0x241   :  { %10039 = vmatpush3.bf16.msra.mxu1 %v11040_v12  ;;  %10046 = vmatprep.subr.bf16.mxu0 %v11041_v21  ;;  %v11076_v12 = vld [vmem:[%s14040_s1 + $0x1380] sm:$0xff]   ;;  %v11085_v21 = vld [vmem:[%s14040_s1 + $0x1358] sm:$0xff]  }
 0x242   :  { %10068 = vmatprep.subr.bf16.mxu1 %v11042_v22  ;;  %v11086_v22 = vld [vmem:[%s14040_s1 + $0x13d8] sm:$0xff]  }
 0x243   :  { %7763 = vmatmul.mubr.bf16.vlgmr.msra.gmra.mrb[68].mxu0 %v191_v18  ;;  %v11082_v18 = vld [vmem:[%s14040_s1 + $0x13d0] sm:$0xff]  }
 0x244   :  { %7803 = vmatmul.mubr.bf16.vlgmr.msra.gmra.mrb[68].mxu1 %v193_v20  ;;  %10047 = vmatpush3.bf16.msra.mxu0 %v11043_v23  ;;  %v11084_v20 = vld [vmem:[%s14040_s1 + $0x1390] sm:$0xff]  }
 0x245   :  { %10069 = vmatpush3.bf16.msra.mxu1 %v11044_v24  ;;  %10048 = vmatprep.subr.bf16.mxu0 %v11045_v25  ;;  %v11087_v24 = vld [vmem:[%s14040_s1 + $0x1318] sm:$0xff]  }
 0x246   :  { %10070 = vmatprep.subr.bf16.mxu1 %v11046_v26  ;;  %7842 = vmatprep.mubr.bf16.mxu0 %v196_v3  ;;  %v11088_v26 = vld [vmem:[%s14040_s1 + $0x1398] sm:$0xff]   ;;  %v11111_v3 = vld [vmem:[%s14040_s1 + $0x1408] sm:$0xff]  }
 0x247   :  { %7882 = vmatprep.mubr.bf16.mxu1 %v198_v4  ;;  %v11112_v4 = vld [vmem:[%s14040_s1 + $0x1488] sm:$0xff]  }
 0x248   :  { %10049 = vmatpush3.bf16.msra.mxu0 %v11047_v27 }
 0x249   :  { %10071 = vmatpush3.bf16.msra.mxu1 %v11048_v28  ;;  %10050 = vmatprep.subr.bf16.mxu0 %v11049_v29  ;;  %v11089_v28 = vld [vmem:[%s14040_s1 + $0x1360] sm:$0xff]  }
 0x24a   :  { %10072 = vmatprep.subr.bf16.mxu1 %v11050_v30 }
 0x24c   :  { %10051 = vmatpush3.bf16.msra.mxu0 %v11051_v31  ;;  %v11090_v31 = vld [vmem:[%s14040_s1 + $0x13e0] sm:$0xff]  }
 0x24d   :  { %10073 = vmatpush3.bf16.msra.mxu1 %v11052_v32  ;;  %10052 = vmatprep.subr.bf16.mxu0 %v11053_v33 }
 0x24e   :  { %10074 = vmatprep.subr.bf16.mxu1 %v11054_v34  ;;  %v11091_v34 = vld [vmem:[%s14040_s1 + $0x1320] sm:$0xff]  }
 0x250   :  { %10053 = vmatpush3.bf16.msra.mxu0 %v11055_v36 }
 0x251   :  { %10075 = vmatpush3.bf16.msra.mxu1 %v11056_v38  ;;  %10054 = vmatprep.subr.bf16.mxu0 %v11057_v40  ;;  %v11093_v40 = vld [vmem:[%s14040_s1 + $0x1368] sm:$0xff]  }
 0x252   :  { %10076 = vmatprep.subr.bf16.mxu1 %v11058_v43  ;;  %v11095_v43 = vld [vmem:[%s14040_s1 + $0x1328] sm:$0xff]  }
 0x254   :  { %10055 = vmatpush3.bf16.msra.mxu0 %v11059_v46  ;;  %v11098_v46 = vld [vmem:[%s14040_s1 + $0x13f0] sm:$0xff]  }
 0x255   :  { %10077 = vmatpush3.bf16.msra.mxu1 %v11060_v49  ;;  %10056 = vmatprep.subr.bf16.mxu0 %v11061_v52  ;;  %v11101_v49 = vld [vmem:[%s14040_s1 + $0x1378] sm:$0xff]  }
 0x256   :  { %v9754_v35 = vpop.f32.mrb[44].mxu0  ;;  %10078 = vmatprep.subr.bf16.mxu1 %v11062_v54  ;;  %v11104_v52 = vld [vmem:[%s14040_s1 + $0x13b8] sm:$0xff]  }
 0x257   :  { %v9776_v37 = vpop.f32.mrb[44].mxu1  ;;  %v9755_v39 = vpop.f32.mrb[45].mxu0 }
 0x258   :  { %v9756_v41 = vadd.f32 %v9755_v39, %v9754_v35  ;;  %v9777_v42 = vpop.f32.mrb[45].mxu1  ;;  %v9757_v45 = vpop.f32.mrb[46].mxu0  ;;  %10057 = vmatpush3.bf16.msra.mxu0 %v11063_v55  ;;  %v106_v55 = vld [vmem:[%s14041_s0 + $0x278] sm:$0xff] }
 0x259   :  { %v9778_v44 = vadd.f32 %v9777_v42, %v9776_v37  ;;  %v9779_v48 = vpop.f32.mrb[46].mxu1  ;;  %v9758_v50 = vpop.f32.mrb[47].mxu0  ;;  %10079 = vmatpush3.bf16.msra.mxu1 %v11064_v56  ;;  %10058 = vmatprep.subr.bf16.mxu0 %v11065_v57  ;;  %v11092_v37 = vld [vmem:[%s14040_s1 + $0x13a0] sm:$0xff]   ;;  %v11094_v42 = vld [vmem:[%s14040_s1 + $0x13e8] sm:$0xff]   ;;  %v11097_v45 = vld [vmem:[%s14040_s1 + $0x1370] sm:$0xff]  }
 0x25a   :  { %v7285_v47 = vadd.f32 %v9756_v41, %v13205_v63  ;;  %v9780_v53 = vpop.f32.mrb[47].mxu1  ;;  %10080 = vmatprep.subr.bf16.mxu1 %v11066_v58  ;;  %v11071_v63 = vld [vmem:[%s14040_s1 + $0x1238] sm:$0xff]   ;;  %v11100_v48 = vld [vmem:[%s14040_s1 + $0x13b0] sm:$0xff]   ;;  %v103_v56 = vld [vmem:[%s14041_s0 + $0x260] sm:$0xff]  ;;  %v202_v58 = vpack.c.bf16 %v106_v55, %v106_v55 }
 0x25b   :  { %v11102_v50 = vld [vmem:[%s14040_s1 + $0x13f8] sm:$0xff]   ;;  %v104_v53 = vld [vmem:[%s14041_s0 + $0x268] sm:$0xff]  ;;  %v105_v57 = vld [vmem:[%s14041_s0 + $0x270] sm:$0xff] }
 0x25c   :  { %v13316_v51 = vadd.f32 %v9778_v44, %v7285_v47  ;;  %10059 = vmatpush3.bf16.msra.mxu0 %v11067_v59  ;;  %v11096_v44 = vld [vmem:[%s14040_s1 + $0x13a8] sm:$0xff]   ;;  %v11099_v47 = vld [vmem:[%s14040_s1 + $0x1330] sm:$0xff]   ;;  %v200_v54 = vpack.c.bf16 %v104_v53, %v104_v53  ;;  %v199_v59 = vpack.c.bf16 %v103_v56, %v103_v56 }
 0x25d   :  { %10081 = vmatpush3.bf16.msra.mxu1 %v11068_v60  ;;  %10060 = vmatprep.subr.bf16.mxu0 %v11069_v61  ;;  %v201_v60 = vpack.c.bf16 %v105_v57, %v105_v57  ;;  %v11105_v61 = vld [vmem:[%s14040_s1 + $0x1440] sm:$0xff]   ;;  %v11141_v53 = vld [vmem:[%s14040_s1 + $0x1548] sm:$0xff]   ;;  %v11145_v57 = vld [vmem:[%s14040_s1 + $0x1550] sm:$0xff]  }
 0x25e   :  { %10082 = vmatprep.subr.bf16.mxu1 %v11070_v62  ;;  %v11106_v62 = vld [vmem:[%s14040_s1 + $0x14c0] sm:$0xff]   ;;  %v11143_v55 = vld [vmem:[%s14040_s1 + $0x1508] sm:$0xff]  }
 0x25f   :  { %v11144_v56 = vld [vmem:[%s14040_s1 + $0x1588] sm:$0xff]  }
 0x260   :  { %10061 = vmatpush3.bf16.msra.mxu0 %v11071_v63  ;;  %v11107_v63 = vld [vmem:[%s14040_s1 + $0x1400] sm:$0xff]  }
 0x261   :  { %10083 = vmatpush3.bf16.msra.mxu1 %v11072_v0  ;;  %10090 = vmatprep.subr.bf16.mxu0 %v11073_v9  ;;  %v11108_v0 = vld [vmem:[%s14040_s1 + $0x1480] sm:$0xff]   ;;  %v11117_v9 = vld [vmem:[%s14040_s1 + $0x1458] sm:$0xff]  }
 0x262   :  { %10112 = vmatprep.subr.bf16.mxu1 %v11074_v10  ;;  %v11118_v10 = vld [vmem:[%s14040_s1 + $0x14d8] sm:$0xff]  }
 0x263   :  { %7843 = vmatmul.mubr.bf16.vlgmr.msra.gmra.mrb[72].mxu0 %v195_v7  ;;  %v11115_v7 = vld [vmem:[%s14040_s1 + $0x1410] sm:$0xff]  }
 0x264   :  { %7883 = vmatmul.mubr.bf16.vlgmr.msra.gmra.mrb[72].mxu1 %v197_v8  ;;  %10091 = vmatpush3.bf16.msra.mxu0 %v11075_v11  ;;  %v11116_v8 = vld [vmem:[%s14040_s1 + $0x1490] sm:$0xff]  }
 0x265   :  { %10113 = vmatpush3.bf16.msra.mxu1 %v11076_v12  ;;  %10092 = vmatprep.subr.bf16.mxu0 %v11077_v13  ;;  %v11119_v12 = vld [vmem:[%s14040_s1 + $0x1418] sm:$0xff]  }
 0x266   :  { %10114 = vmatprep.subr.bf16.mxu1 %v11078_v14  ;;  %7922 = vmatprep.mubr.bf16.mxu0 %v200_v54  ;;  %v11120_v14 = vld [vmem:[%s14040_s1 + $0x1498] sm:$0xff]   ;;  %v11142_v54 = vld [vmem:[%s14040_s1 + $0x15c8] sm:$0xff]  }
 0x267   :  { %7962 = vmatprep.mubr.bf16.mxu1 %v202_v58  ;;  %v11146_v58 = vld [vmem:[%s14040_s1 + $0x15d0] sm:$0xff]  }
 0x268   :  { %10093 = vmatpush3.bf16.msra.mxu0 %v11079_v15 }
 0x269   :  { %10115 = vmatpush3.bf16.msra.mxu1 %v11080_v16  ;;  %10094 = vmatprep.subr.bf16.mxu0 %v11081_v17  ;;  %v11121_v16 = vld [vmem:[%s14040_s1 + $0x1460] sm:$0xff]  }
 0x26a   :  { %10116 = vmatprep.subr.bf16.mxu1 %v11082_v18 }
 0x26c   :  { %10095 = vmatpush3.bf16.msra.mxu0 %v11083_v19  ;;  %v11122_v19 = vld [vmem:[%s14040_s1 + $0x14e0] sm:$0xff]  }
 0x26d   :  { %10117 = vmatpush3.bf16.msra.mxu1 %v11084_v20  ;;  %10096 = vmatprep.subr.bf16.mxu0 %v11085_v21 }
 0x26e   :  { %10118 = vmatprep.subr.bf16.mxu1 %v11086_v22  ;;  %v11123_v22 = vld [vmem:[%s14040_s1 + $0x1420] sm:$0xff]  }
 0x270   :  { %10097 = vmatpush3.bf16.msra.mxu0 %v11087_v24 }
 0x271   :  { %10119 = vmatpush3.bf16.msra.mxu1 %v11088_v26  ;;  %10098 = vmatprep.subr.bf16.mxu0 %v11089_v28  ;;  %v11125_v28 = vld [vmem:[%s14040_s1 + $0x1468] sm:$0xff]  }
 0x272   :  { %10120 = vmatprep.subr.bf16.mxu1 %v11090_v31  ;;  %v11127_v31 = vld [vmem:[%s14040_s1 + $0x1428] sm:$0xff]  }
 0x274   :  { %10099 = vmatpush3.bf16.msra.mxu0 %v11091_v34  ;;  %v11130_v34 = vld [vmem:[%s14040_s1 + $0x14f0] sm:$0xff]  }
 0x275   :  { %10121 = vmatpush3.bf16.msra.mxu1 %v11092_v37  ;;  %10100 = vmatprep.subr.bf16.mxu0 %v11093_v40  ;;  %v11133_v37 = vld [vmem:[%s14040_s1 + $0x1478] sm:$0xff]  }
 0x276   :  { %v9798_v23 = vpop.f32.mrb[48].mxu0  ;;  %10122 = vmatprep.subr.bf16.mxu1 %v11094_v42  ;;  %v11136_v40 = vld [vmem:[%s14040_s1 + $0x14b8] sm:$0xff]  }
 0x277   :  { %v9820_v25 = vpop.f32.mrb[48].mxu1  ;;  %v9799_v27 = vpop.f32.mrb[49].mxu0  ;;  %v110_v42 = vld [vmem:[%s14041_s0 + $0x298] sm:$0xff] }
 0x278   :  { %v9800_v29 = vadd.f32 %v9799_v27, %v9798_v23  ;;  %v9821_v30 = vpop.f32.mrb[49].mxu1  ;;  %v9801_v33 = vpop.f32.mrb[50].mxu0  ;;  %10101 = vmatpush3.bf16.msra.mxu0 %v11095_v43  ;;  %v107_v43 = vld [vmem:[%s14041_s0 + $0x280] sm:$0xff] }
 0x279   :  { %v9822_v32 = vadd.f32 %v9821_v30, %v9820_v25  ;;  %v9823_v36 = vpop.f32.mrb[50].mxu1  ;;  %v9802_v38 = vpop.f32.mrb[51].mxu0  ;;  %10123 = vmatpush3.bf16.msra.mxu1 %v11096_v44  ;;  %10102 = vmatprep.subr.bf16.mxu0 %v11097_v45  ;;  %v11124_v25 = vld [vmem:[%s14040_s1 + $0x14a0] sm:$0xff]   ;;  %v11126_v30 = vld [vmem:[%s14040_s1 + $0x14e8] sm:$0xff]   ;;  %v11129_v33 = vld [vmem:[%s14040_s1 + $0x1470] sm:$0xff]   ;;  %v206_v45 = vpack.c.bf16 %v110_v42, %v110_v42 }
 0x27a   :  { %v7365_v35 = vadd.f32 %v9800_v29, %v13316_v51  ;;  %v9824_v41 = vpop.f32.mrb[51].mxu1  ;;  %10124 = vmatprep.subr.bf16.mxu1 %v11098_v46  ;;  %v11103_v51 = vld [vmem:[%s14040_s1 + $0x1338] sm:$0xff]   ;;  %v11132_v36 = vld [vmem:[%s14040_s1 + $0x14b0] sm:$0xff]   ;;  %v203_v46 = vpack.c.bf16 %v107_v43, %v107_v43  ;;  %v11174_v42 = vld [vmem:[%s14040_s1 + $0x16c8] sm:$0xff]  }
 0x27b   :  { %v11134_v38 = vld [vmem:[%s14040_s1 + $0x14f8] sm:$0xff]   ;;  %v108_v41 = vld [vmem:[%s14041_s0 + $0x288] sm:$0xff] }
 0x27c   :  { %v13427_v39 = vadd.f32 %v9822_v32, %v7365_v35  ;;  %10103 = vmatpush3.bf16.msra.mxu0 %v11099_v47  ;;  %v11128_v32 = vld [vmem:[%s14040_s1 + $0x14a8] sm:$0xff]   ;;  %v11131_v35 = vld [vmem:[%s14040_s1 + $0x1430] sm:$0xff]   ;;  %v204_v44 = vpack.c.bf16 %v108_v41, %v108_v41 }
 0x27d   :  { %10125 = vmatpush3.bf16.msra.mxu1 %v11100_v48  ;;  %10104 = vmatprep.subr.bf16.mxu0 %v11101_v49  ;;  %v109_v47 = vld [vmem:[%s14041_s0 + $0x290] sm:$0xff]  ;;  %v11137_v49 = vld [vmem:[%s14040_s1 + $0x1540] sm:$0xff]   ;;  %v11173_v41 = vld [vmem:[%s14040_s1 + $0x1648] sm:$0xff]  }
 0x27e   :  { %10126 = vmatprep.subr.bf16.mxu1 %v11102_v50  ;;  %v205_v48 = vpack.c.bf16 %v109_v47, %v109_v47  ;;  %v11138_v50 = vld [vmem:[%s14040_s1 + $0x15c0] sm:$0xff]   ;;  %v11175_v43 = vld [vmem:[%s14040_s1 + $0x1608] sm:$0xff]   ;;  %v11179_v47 = vld [vmem:[%s14040_s1 + $0x1610] sm:$0xff]  }
 0x280   :  { %10105 = vmatpush3.bf16.msra.mxu0 %v11103_v51  ;;  %v11139_v51 = vld [vmem:[%s14040_s1 + $0x1500] sm:$0xff]  }
 0x281   :  { %10127 = vmatpush3.bf16.msra.mxu1 %v11104_v52  ;;  %10134 = vmatprep.subr.bf16.mxu0 %v11105_v61  ;;  %v11140_v52 = vld [vmem:[%s14040_s1 + $0x1580] sm:$0xff]   ;;  %v11149_v61 = vld [vmem:[%s14040_s1 + $0x1558] sm:$0xff]  }
 0x282   :  { %10156 = vmatprep.subr.bf16.mxu1 %v11106_v62  ;;  %v11150_v62 = vld [vmem:[%s14040_s1 + $0x15d8] sm:$0xff]  }
 0x283   :  { %7923 = vmatmul.mubr.bf16.vlgmr.msra.gmra.mrb[76].mxu0 %v199_v59  ;;  %v11147_v59 = vld [vmem:[%s14040_s1 + $0x1510] sm:$0xff]  }
 0x284   :  { %7963 = vmatmul.mubr.bf16.vlgmr.msra.gmra.mrb[76].mxu1 %v201_v60  ;;  %10135 = vmatpush3.bf16.msra.mxu0 %v11107_v63  ;;  %v11148_v60 = vld [vmem:[%s14040_s1 + $0x1590] sm:$0xff]  }
 0x285   :  { %10157 = vmatpush3.bf16.msra.mxu1 %v11108_v0  ;;  %10136 = vmatprep.subr.bf16.mxu0 %v11109_v1  ;;  %v11151_v0 = vld [vmem:[%s14040_s1 + $0x1518] sm:$0xff]  }
 0x286   :  { %10158 = vmatprep.subr.bf16.mxu1 %v11110_v2  ;;  %8002 = vmatprep.mubr.bf16.mxu0 %v204_v44  ;;  %v11152_v2 = vld [vmem:[%s14040_s1 + $0x1598] sm:$0xff]   ;;  %v11176_v44 = vld [vmem:[%s14040_s1 + $0x1688] sm:$0xff]  }
 0x287   :  { %8042 = vmatprep.mubr.bf16.mxu1 %v206_v45  ;;  %v11177_v45 = vld [vmem:[%s14040_s1 + $0x1650] sm:$0xff]  }
 0x288   :  { %10137 = vmatpush3.bf16.msra.mxu0 %v11111_v3 }
 0x289   :  { %10159 = vmatpush3.bf16.msra.mxu1 %v11112_v4  ;;  %10138 = vmatprep.subr.bf16.mxu0 %v11113_v5  ;;  %v11153_v4 = vld [vmem:[%s14040_s1 + $0x1560] sm:$0xff]  }
 0x28a   :  { %10160 = vmatprep.subr.bf16.mxu1 %v11114_v6 }
 0x28c   :  { %10139 = vmatpush3.bf16.msra.mxu0 %v11115_v7  ;;  %v11154_v7 = vld [vmem:[%s14040_s1 + $0x15e0] sm:$0xff]  }
 0x28d   :  { %10161 = vmatpush3.bf16.msra.mxu1 %v11116_v8  ;;  %10140 = vmatprep.subr.bf16.mxu0 %v11117_v9 }
 0x28e   :  { %10162 = vmatprep.subr.bf16.mxu1 %v11118_v10  ;;  %v11155_v10 = vld [vmem:[%s14040_s1 + $0x1520] sm:$0xff]  }
 0x290   :  { %10141 = vmatpush3.bf16.msra.mxu0 %v11119_v12 }
 0x291   :  { %10163 = vmatpush3.bf16.msra.mxu1 %v11120_v14  ;;  %10142 = vmatprep.subr.bf16.mxu0 %v11121_v16  ;;  %v11157_v16 = vld [vmem:[%s14040_s1 + $0x1568] sm:$0xff]  }
 0x292   :  { %10164 = vmatprep.subr.bf16.mxu1 %v11122_v19  ;;  %v11159_v19 = vld [vmem:[%s14040_s1 + $0x1528] sm:$0xff]  }
 0x294   :  { %10143 = vmatpush3.bf16.msra.mxu0 %v11123_v22  ;;  %v11162_v22 = vld [vmem:[%s14040_s1 + $0x15f0] sm:$0xff]  }
 0x295   :  { %10165 = vmatpush3.bf16.msra.mxu1 %v11124_v25  ;;  %10144 = vmatprep.subr.bf16.mxu0 %v11125_v28  ;;  %v11165_v25 = vld [vmem:[%s14040_s1 + $0x1578] sm:$0xff]  }
 0x296   :  { %v9842_v11 = vpop.f32.mrb[52].mxu0  ;;  %10166 = vmatprep.subr.bf16.mxu1 %v11126_v30  ;;  %v11168_v28 = vld [vmem:[%s14040_s1 + $0x15b8] sm:$0xff]  }
 0x297   :  { %v9864_v13 = vpop.f32.mrb[52].mxu1  ;;  %v9843_v15 = vpop.f32.mrb[53].mxu0  ;;  %v114_v30 = vld [vmem:[%s14041_s0 + $0x2b8] sm:$0xff] }
 0x298   :  { %v9844_v17 = vadd.f32 %v9843_v15, %v9842_v11  ;;  %v9865_v18 = vpop.f32.mrb[53].mxu1  ;;  %v9845_v21 = vpop.f32.mrb[54].mxu0  ;;  %10145 = vmatpush3.bf16.msra.mxu0 %v11127_v31 }
 0x299   :  { %v9866_v20 = vadd.f32 %v9865_v18, %v9864_v13  ;;  %v9867_v24 = vpop.f32.mrb[54].mxu1  ;;  %v9846_v26 = vpop.f32.mrb[55].mxu0  ;;  %10167 = vmatpush3.bf16.msra.mxu1 %v11128_v32  ;;  %10146 = vmatprep.subr.bf16.mxu0 %v11129_v33  ;;  %v11156_v13 = vld [vmem:[%s14040_s1 + $0x15a0] sm:$0xff]   ;;  %v11158_v18 = vld [vmem:[%s14040_s1 + $0x15e8] sm:$0xff]   ;;  %v11161_v21 = vld [vmem:[%s14040_s1 + $0x1570] sm:$0xff]   ;;  %v210_v32 = vpack.c.bf16 %v114_v30, %v114_v30 }
 0x29a   :  { %v7445_v23 = vadd.f32 %v9844_v17, %v13427_v39  ;;  %v9868_v29 = vpop.f32.mrb[55].mxu1  ;;  %10168 = vmatprep.subr.bf16.mxu1 %v11130_v34  ;;  %v11135_v39 = vld [vmem:[%s14040_s1 + $0x1438] sm:$0xff]   ;;  %v11164_v24 = vld [vmem:[%s14040_s1 + $0x15b0] sm:$0xff]   ;;  %v111_v33 = vld [vmem:[%s14041_s0 + $0x2a0] sm:$0xff] }
 0x29b   :  { %v11166_v26 = vld [vmem:[%s14040_s1 + $0x15f8] sm:$0xff]   ;;  %v112_v29 = vld [vmem:[%s14041_s0 + $0x2a8] sm:$0xff]  ;;  %v113_v34 = vld [vmem:[%s14041_s0 + $0x2b0] sm:$0xff] }
 0x29c   :  { %v13538_v27 = vadd.f32 %v9866_v20, %v7445_v23  ;;  %10147 = vmatpush3.bf16.msra.mxu0 %v11131_v35  ;;  %v11160_v20 = vld [vmem:[%s14040_s1 + $0x15a8] sm:$0xff]   ;;  %v11163_v23 = vld [vmem:[%s14040_s1 + $0x1530] sm:$0xff]   ;;  %v208_v31 = vpack.c.bf16 %v112_v29, %v112_v29  ;;  %v207_v35 = vpack.c.bf16 %v111_v33, %v111_v33 }
 0x29d   :  { %10169 = vmatpush3.bf16.msra.mxu1 %v11132_v36  ;;  %10148 = vmatprep.subr.bf16.mxu0 %v11133_v37  ;;  %v209_v36 = vpack.c.bf16 %v113_v34, %v113_v34  ;;  %v11169_v37 = vld [vmem:[%s14040_s1 + $0x1640] sm:$0xff]   ;;  %v11205_v29 = vld [vmem:[%s14040_s1 + $0x1748] sm:$0xff]   ;;  %v11209_v33 = vld [vmem:[%s14040_s1 + $0x1750] sm:$0xff]  }
 0x29e   :  { %10170 = vmatprep.subr.bf16.mxu1 %v11134_v38  ;;  %v11170_v38 = vld [vmem:[%s14040_s1 + $0x16c0] sm:$0xff]   ;;  %v11206_v30 = vld [vmem:[%s14040_s1 + $0x17c8] sm:$0xff]   ;;  %v11210_v34 = vld [vmem:[%s14040_s1 + $0x17d0] sm:$0xff]  }
 0x2a0   :  { %10149 = vmatpush3.bf16.msra.mxu0 %v11135_v39  ;;  %v11171_v39 = vld [vmem:[%s14040_s1 + $0x1600] sm:$0xff]  }
 0x2a1   :  { %10171 = vmatpush3.bf16.msra.mxu1 %v11136_v40  ;;  %10178 = vmatprep.subr.bf16.mxu0 %v11137_v49  ;;  %v11172_v40 = vld [vmem:[%s14040_s1 + $0x1680] sm:$0xff]   ;;  %v11181_v49 = vld [vmem:[%s14040_s1 + $0x1658] sm:$0xff]  }
 0x2a2   :  { %10200 = vmatprep.subr.bf16.mxu1 %v11138_v50  ;;  %v11182_v50 = vld [vmem:[%s14040_s1 + $0x16d8] sm:$0xff]  }
 0x2a3   :  { %8003 = vmatmul.mubr.bf16.vlgmr.msra.gmra.mrb[80].mxu0 %v203_v46  ;;  %v11178_v46 = vld [vmem:[%s14040_s1 + $0x16d0] sm:$0xff]  }
 0x2a4   :  { %8043 = vmatmul.mubr.bf16.vlgmr.msra.gmra.mrb[80].mxu1 %v205_v48  ;;  %10179 = vmatpush3.bf16.msra.mxu0 %v11139_v51  ;;  %v11180_v48 = vld [vmem:[%s14040_s1 + $0x1690] sm:$0xff]  }
 0x2a5   :  { %10201 = vmatpush3.bf16.msra.mxu1 %v11140_v52  ;;  %10180 = vmatprep.subr.bf16.mxu0 %v11141_v53  ;;  %v11183_v52 = vld [vmem:[%s14040_s1 + $0x1618] sm:$0xff]  }
 0x2a6   :  { %10202 = vmatprep.subr.bf16.mxu1 %v11142_v54  ;;  %8082 = vmatprep.mubr.bf16.mxu0 %v208_v31  ;;  %v11184_v54 = vld [vmem:[%s14040_s1 + $0x1698] sm:$0xff]   ;;  %v11207_v31 = vld [vmem:[%s14040_s1 + $0x1708] sm:$0xff]  }
 0x2a7   :  { %8122 = vmatprep.mubr.bf16.mxu1 %v210_v32  ;;  %v11208_v32 = vld [vmem:[%s14040_s1 + $0x1788] sm:$0xff]  }
 0x2a8   :  { %10181 = vmatpush3.bf16.msra.mxu0 %v11143_v55 }
 0x2a9   :  { %10203 = vmatpush3.bf16.msra.mxu1 %v11144_v56  ;;  %10182 = vmatprep.subr.bf16.mxu0 %v11145_v57  ;;  %v11185_v56 = vld [vmem:[%s14040_s1 + $0x1660] sm:$0xff]  }
 0x2aa   :  { %10204 = vmatprep.subr.bf16.mxu1 %v11146_v58 }
 0x2ac   :  { %10183 = vmatpush3.bf16.msra.mxu0 %v11147_v59  ;;  %v11186_v59 = vld [vmem:[%s14040_s1 + $0x16e0] sm:$0xff]  }
 0x2ad   :  { %10205 = vmatpush3.bf16.msra.mxu1 %v11148_v60  ;;  %10184 = vmatprep.subr.bf16.mxu0 %v11149_v61 }
 0x2ae   :  { %10206 = vmatprep.subr.bf16.mxu1 %v11150_v62  ;;  %v11187_v62 = vld [vmem:[%s14040_s1 + $0x1620] sm:$0xff]  }
 0x2b0   :  { %10185 = vmatpush3.bf16.msra.mxu0 %v11151_v0 }
 0x2b1   :  { %10207 = vmatpush3.bf16.msra.mxu1 %v11152_v2  ;;  %10186 = vmatprep.subr.bf16.mxu0 %v11153_v4  ;;  %v11189_v4 = vld [vmem:[%s14040_s1 + $0x1668] sm:$0xff]  }
 0x2b2   :  { %10208 = vmatprep.subr.bf16.mxu1 %v11154_v7  ;;  %v11191_v7 = vld [vmem:[%s14040_s1 + $0x1628] sm:$0xff]  }
 0x2b4   :  { %10187 = vmatpush3.bf16.msra.mxu0 %v11155_v10  ;;  %v11194_v10 = vld [vmem:[%s14040_s1 + $0x16f0] sm:$0xff]  }
 0x2b5   :  { %10209 = vmatpush3.bf16.msra.mxu1 %v11156_v13  ;;  %10188 = vmatprep.subr.bf16.mxu0 %v11157_v16  ;;  %v11197_v13 = vld [vmem:[%s14040_s1 + $0x1678] sm:$0xff]  }
 0x2b6   :  { %v9886_v63 = vpop.f32.mrb[56].mxu0  ;;  %10210 = vmatprep.subr.bf16.mxu1 %v11158_v18  ;;  %v11200_v16 = vld [vmem:[%s14040_s1 + $0x16b8] sm:$0xff]  }
 0x2b7   :  { %v9908_v1 = vpop.f32.mrb[56].mxu1  ;;  %v9887_v3 = vpop.f32.mrb[57].mxu0 }
 0x2b8   :  { %v9888_v5 = vadd.f32 %v9887_v3, %v9886_v63  ;;  %v9909_v6 = vpop.f32.mrb[57].mxu1  ;;  %v9889_v9 = vpop.f32.mrb[58].mxu0  ;;  %10189 = vmatpush3.bf16.msra.mxu0 %v11159_v19  ;;  %v118_v19 = vld [vmem:[%s14041_s0 + $0x2d8] sm:$0xff] }
 0x2b9   :  { %v9910_v8 = vadd.f32 %v9909_v6, %v9908_v1  ;;  %v9911_v12 = vpop.f32.mrb[58].mxu1  ;;  %v9890_v14 = vpop.f32.mrb[59].mxu0  ;;  %10211 = vmatpush3.bf16.msra.mxu1 %v11160_v20  ;;  %10190 = vmatprep.subr.bf16.mxu0 %v11161_v21  ;;  %v11188_v1 = vld [vmem:[%s14040_s1 + $0x16a0] sm:$0xff]   ;;  %v11190_v6 = vld [vmem:[%s14040_s1 + $0x16e8] sm:$0xff]   ;;  %v11193_v9 = vld [vmem:[%s14040_s1 + $0x1670] sm:$0xff]  }
 0x2ba   :  { %v7525_v11 = vadd.f32 %v9888_v5, %v13538_v27  ;;  %v9912_v17 = vpop.f32.mrb[59].mxu1  ;;  %10212 = vmatprep.subr.bf16.mxu1 %v11162_v22  ;;  %v11167_v27 = vld [vmem:[%s14040_s1 + $0x1538] sm:$0xff]   ;;  %v11196_v12 = vld [vmem:[%s14040_s1 + $0x16b0] sm:$0xff]   ;;  %v115_v20 = vld [vmem:[%s14041_s0 + $0x2c0] sm:$0xff]  ;;  %v214_v22 = vpack.c.bf16 %v118_v19, %v118_v19 }
 0x2bb   :  { %v11198_v14 = vld [vmem:[%s14040_s1 + $0x16f8] sm:$0xff]   ;;  %v116_v17 = vld [vmem:[%s14041_s0 + $0x2c8] sm:$0xff]  ;;  %v117_v21 = vld [vmem:[%s14041_s0 + $0x2d0] sm:$0xff] }
 0x2bc   :  { %v13649_v15 = vadd.f32 %v9910_v8, %v7525_v11  ;;  %10191 = vmatpush3.bf16.msra.mxu0 %v11163_v23  ;;  %v11192_v8 = vld [vmem:[%s14040_s1 + $0x16a8] sm:$0xff]   ;;  %v11195_v11 = vld [vmem:[%s14040_s1 + $0x1630] sm:$0xff]   ;;  %v212_v18 = vpack.c.bf16 %v116_v17, %v116_v17  ;;  %v211_v23 = vpack.c.bf16 %v115_v20, %v115_v20 }
 0x2bd   :  { %10213 = vmatpush3.bf16.msra.mxu1 %v11164_v24  ;;  %10192 = vmatprep.subr.bf16.mxu0 %v11165_v25  ;;  %v213_v24 = vpack.c.bf16 %v117_v21, %v117_v21  ;;  %v11201_v25 = vld [vmem:[%s14040_s1 + $0x1740] sm:$0xff]  }
 0x2be   :  { %10214 = vmatprep.subr.bf16.mxu1 %v11166_v26  ;;  %v11202_v26 = vld [vmem:[%s14040_s1 + $0x17c0] sm:$0xff]  }
 0x2c0   :  { %10193 = vmatpush3.bf16.msra.mxu0 %v11167_v27  ;;  %v11203_v27 = vld [vmem:[%s14040_s1 + $0x1700] sm:$0xff]  }
 0x2c1   :  { %10215 = vmatpush3.bf16.msra.mxu1 %v11168_v28  ;;  %10222 = vmatprep.subr.bf16.mxu0 %v11169_v37  ;;  %v11204_v28 = vld [vmem:[%s14040_s1 + $0x1780] sm:$0xff]   ;;  %v11213_v37 = vld [vmem:[%s14040_s1 + $0x1758] sm:$0xff]  }
 0x2c2   :  { %10244 = vmatprep.subr.bf16.mxu1 %v11170_v38  ;;  %v11214_v38 = vld [vmem:[%s14040_s1 + $0x17d8] sm:$0xff]  }
 0x2c3   :  { %8083 = vmatmul.mubr.bf16.vlgmr.msra.gmra.mrb[84].mxu0 %v207_v35  ;;  %v11211_v35 = vld [vmem:[%s14040_s1 + $0x1710] sm:$0xff]  }
 0x2c4   :  { %8123 = vmatmul.mubr.bf16.vlgmr.msra.gmra.mrb[84].mxu1 %v209_v36  ;;  %10223 = vmatpush3.bf16.msra.mxu0 %v11171_v39  ;;  %v11212_v36 = vld [vmem:[%s14040_s1 + $0x1790] sm:$0xff]  }
 0x2c5   :  { %10245 = vmatpush3.bf16.msra.mxu1 %v11172_v40  ;;  %10224 = vmatprep.subr.bf16.mxu0 %v11173_v41  ;;  %v11215_v40 = vld [vmem:[%s14040_s1 + $0x1718] sm:$0xff]  }
 0x2c6   :  { %10246 = vmatprep.subr.bf16.mxu1 %v11174_v42  ;;  %8162 = vmatprep.mubr.bf16.mxu0 %v212_v18  ;;  %v11216_v42 = vld [vmem:[%s14040_s1 + $0x1798] sm:$0xff]  }
 0x2c7   :  { %8202 = vmatprep.mubr.bf16.mxu1 %v214_v22 }
 0x2c8   :  { %10225 = vmatpush3.bf16.msra.mxu0 %v11175_v43 }
 0x2c9   :  { %10247 = vmatpush3.bf16.msra.mxu1 %v11176_v44  ;;  %10226 = vmatprep.subr.bf16.mxu0 %v11177_v45  ;;  %v11217_v44 = vld [vmem:[%s14040_s1 + $0x1760] sm:$0xff]  }
 0x2ca   :  { %10248 = vmatprep.subr.bf16.mxu1 %v11178_v46 }
 0x2cc   :  { %10227 = vmatpush3.bf16.msra.mxu0 %v11179_v47  ;;  %v11218_v47 = vld [vmem:[%s14040_s1 + $0x17e0] sm:$0xff]  }
 0x2cd   :  { %10249 = vmatpush3.bf16.msra.mxu1 %v11180_v48  ;;  %10228 = vmatprep.subr.bf16.mxu0 %v11181_v49 }
 0x2ce   :  { %10250 = vmatprep.subr.bf16.mxu1 %v11182_v50  ;;  %v11219_v50 = vld [vmem:[%s14040_s1 + $0x1720] sm:$0xff]  }
 0x2d0   :  { %10229 = vmatpush3.bf16.msra.mxu0 %v11183_v52 }
 0x2d1   :  { %10251 = vmatpush3.bf16.msra.mxu1 %v11184_v54  ;;  %10230 = vmatprep.subr.bf16.mxu0 %v11185_v56  ;;  %v11221_v56 = vld [vmem:[%s14040_s1 + $0x1768] sm:$0xff]  }
 0x2d2   :  { %10252 = vmatprep.subr.bf16.mxu1 %v11186_v59  ;;  %v11223_v59 = vld [vmem:[%s14040_s1 + $0x1728] sm:$0xff]  }
 0x2d4   :  { %10231 = vmatpush3.bf16.msra.mxu0 %v11187_v62  ;;  %v11226_v62 = vld [vmem:[%s14040_s1 + $0x17f0] sm:$0xff]  }
 0x2d5   :  { %10253 = vmatpush3.bf16.msra.mxu1 %v11188_v1  ;;  %10232 = vmatprep.subr.bf16.mxu0 %v11189_v4  ;;  %v11229_v1 = vld [vmem:[%s14040_s1 + $0x1778] sm:$0xff]  }
 0x2d6   :  { %v9930_v51 = vpop.f32.mrb[60].mxu0  ;;  %10254 = vmatprep.subr.bf16.mxu1 %v11190_v6  ;;  %v11232_v4 = vld [vmem:[%s14040_s1 + $0x17b8] sm:$0xff]  }
 0x2d7   :  { %v9952_v53 = vpop.f32.mrb[60].mxu1  ;;  %v9931_v55 = vpop.f32.mrb[61].mxu0  ;;  %v122_v6 = vld [vmem:[%s14041_s0 + $0x2f8] sm:$0xff] }
 0x2d8   :  { %v9932_v57 = vadd.f32 %v9931_v55, %v9930_v51  ;;  %v9953_v58 = vpop.f32.mrb[61].mxu1  ;;  %v9933_v61 = vpop.f32.mrb[62].mxu0  ;;  %10233 = vmatpush3.bf16.msra.mxu0 %v11191_v7  ;;  %v119_v7 = vld [vmem:[%s14041_s0 + $0x2e0] sm:$0xff] }
 0x2d9   :  { %v9954_v60 = vadd.f32 %v9953_v58, %v9952_v53  ;;  %v9955_v0 = vpop.f32.mrb[62].mxu1  ;;  %v9934_v2 = vpop.f32.mrb[63].mxu0  ;;  %10255 = vmatpush3.bf16.msra.mxu1 %v11192_v8  ;;  %10234 = vmatprep.subr.bf16.mxu0 %v11193_v9  ;;  %v11220_v53 = vld [vmem:[%s14040_s1 + $0x17a0] sm:$0xff]   ;;  %v11222_v58 = vld [vmem:[%s14040_s1 + $0x17e8] sm:$0xff]   ;;  %v11225_v61 = vld [vmem:[%s14040_s1 + $0x1770] sm:$0xff]   ;;  %v218_v9 = vpack.c.bf16 %v122_v6, %v122_v6 }
 0x2da   :  { %v7605_v63 = vadd.f32 %v9932_v57, %v13649_v15  ;;  %v9956_v5 = vpop.f32.mrb[63].mxu1  ;;  %10256 = vmatprep.subr.bf16.mxu1 %v11194_v10  ;;  %v11199_v15 = vld [vmem:[%s14040_s1 + $0x1638] sm:$0xff]   ;;  %v11228_v0 = vld [vmem:[%s14040_s1 + $0x17b0] sm:$0xff]   ;;  %v215_v10 = vpack.c.bf16 %v119_v7, %v119_v7 }
 0x2db   :  { %v11230_v2 = vld [vmem:[%s14040_s1 + $0x17f8] sm:$0xff]   ;;  %v120_v5 = vld [vmem:[%s14041_s0 + $0x2e8] sm:$0xff]  ;;  %v8305_v7 = vld [vmem:[%s14043_s3 + $0x70] sm:$0xff] }
 0x2dc   :  { %v13760_v3 = vadd.f32 %v9954_v60, %v7605_v63  ;;  %10235 = vmatpush3.bf16.msra.mxu0 %v11195_v11  ;;  %v11224_v60 = vld [vmem:[%s14040_s1 + $0x17a8] sm:$0xff]   ;;  %v11227_v63 = vld [vmem:[%s14040_s1 + $0x1730] sm:$0xff]   ;;  %v216_v8 = vpack.c.bf16 %v120_v5, %v120_v5 }
 0x2dd   :  { %10257 = vmatpush3.bf16.msra.mxu1 %v11196_v12  ;;  %10236 = vmatprep.subr.bf16.mxu0 %v11197_v13  ;;  %v121_v11 = vld [vmem:[%s14041_s0 + $0x2f0] sm:$0xff]  ;;  %v8304_v5 = vld [vmem:[%s14043_s3 + $0x68] sm:$0xff] }
 0x2de   :  { %10258 = vmatprep.subr.bf16.mxu1 %v11198_v14  ;;  %v217_v12 = vpack.c.bf16 %v121_v11, %v121_v11  ;;  %v8385_v11 = vld [vmem:[%s14044_s5] sm:$0xff] }
 0x2e0   :  { %10237 = vmatpush3.bf16.msra.mxu0 %v11199_v15 }
 0x2e1   :  { %10259 = vmatpush3.bf16.msra.mxu1 %v11200_v16  ;;  %10266 = vmatprep.subr.bf16.mxu0 %v11201_v25 }
 0x2e2   :  { %10288 = vmatprep.subr.bf16.mxu1 %v11202_v26 }
 0x2e3   :  { %8163 = vmatmul.mubr.bf16.vlgmr.msra.gmra.mrb[88].mxu0 %v211_v23 }
 0x2e4   :  { %8203 = vmatmul.mubr.bf16.vlgmr.msra.gmra.mrb[88].mxu1 %v213_v24  ;;  %10267 = vmatpush3.bf16.msra.mxu0 %v11203_v27 }
 0x2e5   :  { %10289 = vmatpush3.bf16.msra.mxu1 %v11204_v28  ;;  %10268 = vmatprep.subr.bf16.mxu0 %v11205_v29 }
 0x2e6   :  { %10290 = vmatprep.subr.bf16.mxu1 %v11206_v30  ;;  %8242 = vmatprep.mubr.bf16.mxu0 %v216_v8  ;;  %v8306_v8 = vld [vmem:[%s14043_s3 + $0x78] sm:$0xff] }
 0x2e7   :  { %8282 = vmatprep.mubr.bf16.mxu1 %v218_v9  ;;  %v10436_v9 = vpack.c.bf16 %v8306_v8, %v8305_v7 }
 0x2e8   :  { %10269 = vmatpush3.bf16.msra.mxu0 %v11207_v31 }
 0x2e9   :  { %10291 = vmatpush3.bf16.msra.mxu1 %v11208_v32  ;;  %10270 = vmatprep.subr.bf16.mxu0 %v11209_v33 }
 0x2ea   :  { %10292 = vmatprep.subr.bf16.mxu1 %v11210_v34 }
 0x2ec   :  { %10271 = vmatpush3.bf16.msra.mxu0 %v11211_v35 }
 0x2ed   :  { %10293 = vmatpush3.bf16.msra.mxu1 %v11212_v36  ;;  %10272 = vmatprep.subr.bf16.mxu0 %v11213_v37  ;;  %v11233_v37 = vmov 0.0|0.0  }
 0x2ee   :  { %10294 = vmatprep.subr.bf16.mxu1 %v11214_v38  ;;  %v8291_v38 = vld [vmem:[%s14043_s3] sm:$0xff] }
 0x2f0   :  { %10273 = vmatpush3.bf16.msra.mxu0 %v11215_v40  ;;  %v8293_v40 = vld [vmem:[%s14043_s3 + $0x10] sm:$0xff] }
 0x2f1   :  { %10295 = vmatpush3.bf16.msra.mxu1 %v11216_v42  ;;  %10274 = vmatprep.subr.bf16.mxu0 %v11217_v44  ;;  %v8294_v42 = vld [vmem:[%s14043_s3 + $0x18] sm:$0xff]  ;;  %v8295_v44 = vld [vmem:[%s14043_s3 + $0x20] sm:$0xff] }
 0x2f2   :  { %10296 = vmatprep.subr.bf16.mxu1 %v11218_v47  ;;  %v8297_v47 = vld [vmem:[%s14043_s3 + $0x30] sm:$0xff] }
 0x2f4   :  { %10275 = vmatpush3.bf16.msra.mxu0 %v11219_v50  ;;  %v8299_v50 = vld [vmem:[%s14043_s3 + $0x40] sm:$0xff] }
 0x2f5   :  { %10297 = vmatpush3.bf16.msra.mxu1 %v11220_v53  ;;  %10276 = vmatprep.subr.bf16.mxu0 %v11221_v56  ;;  %v8301_v53 = vld [vmem:[%s14043_s3 + $0x50] sm:$0xff] }
 0x2f6   :  { %v9974_v39 = vpop.f32.mrb[64].mxu0  ;;  %10298 = vmatprep.subr.bf16.mxu1 %v11222_v58 }
 0x2f7   :  { %v9996_v41 = vpop.f32.mrb[64].mxu1  ;;  %v9975_v43 = vpop.f32.mrb[65].mxu0 }
 0x2f8   :  { %v9976_v45 = vadd.f32 %v9975_v43, %v9974_v39  ;;  %v9997_v46 = vpop.f32.mrb[65].mxu1  ;;  %v9977_v49 = vpop.f32.mrb[66].mxu0  ;;  %10277 = vmatpush3.bf16.msra.mxu0 %v11223_v59  ;;  %v8292_v39 = vld [vmem:[%s14043_s3 + $0x8] sm:$0xff]  ;;  %v10418_v43 = vpack.c.bf16 %v8294_v42, %v8293_v40  ;;  %v8397_v40 = vld [vmem:[%s14044_s5 + $0x60] sm:$0xff] }
 0x2f9   :  { %v9998_v48 = vadd.f32 %v9997_v46, %v9996_v41  ;;  %v9999_v52 = vpop.f32.mrb[66].mxu1  ;;  %v9978_v54 = vpop.f32.mrb[67].mxu0  ;;  %10299 = vmatpush3.bf16.msra.mxu1 %v11224_v60  ;;  %10278 = vmatprep.subr.bf16.mxu0 %v11225_v61  ;;  %v10415_v41 = vpack.c.bf16 %v8292_v39, %v8291_v38 }
 0x2fa   :  { %v7685_v51 = vadd.f32 %v9976_v45, %v13760_v3  ;;  %v10000_v57 = vpop.f32.mrb[67].mxu1  ;;  %10300 = vmatprep.subr.bf16.mxu1 %v11226_v62  ;;  %v11231_v3 = vld [vmem:[%s14040_s1 + $0x1738] sm:$0xff]   ;;  %v8296_v45 = vld [vmem:[%s14043_s3 + $0x28] sm:$0xff] }
 0x2fb   :  { %v10421_v46 = vpack.c.bf16 %v8296_v45, %v8295_v44  ;;  %v8302_v54 = vld [vmem:[%s14043_s3 + $0x58] sm:$0xff] }
 0x2fc   :  { %v7725_v55 = vadd.f32 %v9998_v48, %v7685_v51  ;;  %10279 = vmatpush3.bf16.msra.mxu0 %v11227_v63  ;;  %v8298_v48 = vld [vmem:[%s14043_s3 + $0x38] sm:$0xff]  ;;  %v8300_v51 = vld [vmem:[%s14043_s3 + $0x48] sm:$0xff] }
 0x2fd   :  { %10301 = vmatpush3.bf16.msra.mxu1 %v11228_v0  ;;  %10280 = vmatprep.subr.bf16.mxu0 %v11229_v1  ;;  %v10424_v49 = vpack.c.bf16 %v8298_v48, %v8297_v47  ;;  %v10427_v52 = vpack.c.bf16 %v8300_v51, %v8299_v50 }
 0x2fe   :  { %10302 = vmatprep.subr.bf16.mxu1 %v11230_v2 }
 0x300   :  { %10281 = vmatpush3.bf16.msra.mxu0 %v11231_v3 }
 0x301   :  { %10303 = vmatpush3.bf16.msra.mxu1 %v11232_v4  ;;  %10414 = vmatprep.subr.bf16.mxu0 %v11233_v37  ;;  %v8303_v4 = vld [vmem:[%s14043_s3 + $0x60] sm:$0xff] }
 0x302   :  { %10438 = vmatprep.subr.bf16.mxu1 %v11233_v37  ;;  %v10433_v6 = vpack.c.bf16 %v8304_v5, %v8303_v4 }
 0x303   :  { %8243 = vmatmul.mubr.bf16.vlgmr.msra.gmra.mrb[92].mxu0 %v215_v10  ;;  %v11235_v10 = vmov 0.0  }
 0x304   :  { %8283 = vmatmul.mubr.bf16.vlgmr.msra.gmra.mrb[92].mxu1 %v217_v12  ;;  %10416 = vmatpush3.bf16.msra.mxu0 %v10415_v41  ;;  %v8386_v12 = vld [vmem:[%s14044_s5 + $0x8] sm:$0xff] }
 0x305   :  { %10417 = vmatprep.subr.bf16.mxu0 %v11233_v37  ;;  %10376 = vmatprep.mubr.msk.f32.mxu0 %vm11234_vm0, %v11235_v10  ;;  %v8398_v41 = vld [vmem:[%s14044_s5 + $0x68] sm:$0xff] }
 0x306   :  { %10411 = vmatprep.mubr.msk.f32.mxu1 %vm11234_vm0, %v11235_v10  ;;  %v10457_v44 = vpack.c.bf16 %v8398_v41, %v8397_v40 }
 0x308   :  { %10419 = vmatpush3.bf16.msra.mxu0 %v10418_v43 }
 0x309   :  { %10420 = vmatprep.subr.bf16.mxu0 %v11233_v37 }
 0x30c   :  { %10422 = vmatpush3.bf16.msra.mxu0 %v10421_v46 }
 0x30d   :  { %10423 = vmatprep.subr.bf16.mxu0 %v11233_v37 }
 0x310   :  { %10425 = vmatpush3.bf16.msra.mxu0 %v10424_v49 }
 0x311   :  { %10426 = vmatprep.subr.bf16.mxu0 %v11233_v37 }
 0x314   :  { %10428 = vmatpush3.bf16.msra.mxu0 %v10427_v52 }
 0x315   :  { %10429 = vmatprep.subr.bf16.mxu0 %v11233_v37 }
 0x316   :  { %v10018_v13 = vpop.f32.mrb[68].mxu0 }
 0x317   :  { %v10040_v14 = vpop.f32.mrb[68].mxu1  ;;  %v10019_v15 = vpop.f32.mrb[69].mxu0 }
 0x318   :  { %v10041_v16 = vpop.f32.mrb[69].mxu1  ;;  %v10020_v17 = vadd.f32 %v10019_v15, %v10018_v13  ;;  %v10021_v19 = vpop.f32.mrb[70].mxu0  ;;  %v8387_v13 = vld [vmem:[%s14044_s5 + $0x10] sm:$0xff]  ;;  %v8388_v15 = vld [vmem:[%s14044_s5 + $0x18] sm:$0xff] }
 0x319   :  { %v10042_v18 = vadd.f32 %v10041_v16, %v10040_v14  ;;  %v10043_v20 = vpop.f32.mrb[70].mxu1  ;;  %v10022_v21 = vpop.f32.mrb[71].mxu0  ;;  %v10439_v14 = vpack.c.bf16 %v8386_v12, %v8385_v11  ;;  %v10442_v16 = vpack.c.bf16 %v8388_v15, %v8387_v13 }
 0x31a   :  { %v10044_v22 = vpop.f32.mrb[71].mxu1  ;;  %v7765_v23 = vadd.f32 %v10020_v17, %v7725_v55  ;;  %v10430_v55 = vpack.c.bf16 %v8302_v54, %v8301_v53  ;;  %v8389_v17 = vld [vmem:[%s14044_s5 + $0x20] sm:$0xff]  ;;  %v8391_v20 = vld [vmem:[%s14044_s5 + $0x30] sm:$0xff]  ;;  %v8392_v21 = vld [vmem:[%s14044_s5 + $0x38] sm:$0xff] }
 0x31b   :  { %10440 = vmatpush3.bf16.msra.mxu1 %v10439_v14  ;;  %v10448_v22 = vpack.c.bf16 %v8392_v21, %v8391_v20  ;;  %v9252_v20 = vld [vmem:[%s14045_s4] ss:$0 sm:$0xff] }
 0x31c   :  { %v7805_v24 = vadd.f32 %v10042_v18, %v7765_v23  ;;  %10431 = vmatpush3.bf16.msra.mxu0 %v10430_v55  ;;  %10441 = vmatprep.subr.bf16.mxu1 %v11233_v37  ;;  %v8390_v18 = vld [vmem:[%s14044_s5 + $0x28] sm:$0xff]  ;;  %v8393_v23 = vld [vmem:[%s14044_s5 + $0x40] sm:$0xff] }
 0x31d   :  { %10432 = vmatprep.subr.bf16.mxu0 %v11233_v37  ;;  %v10445_v19 = vpack.c.bf16 %v8390_v18, %v8389_v17  ;;  %v8399_v17 = vld [vmem:[%s14044_s5 + $0x70] sm:$0xff]  ;;  %v8400_v18 = vld [vmem:[%s14044_s5 + $0x78] sm:$0xff] }
 0x31f   :  { %10443 = vmatpush3.bf16.msra.mxu1 %v10442_v16 }
 0x320   :  { %10434 = vmatpush3.bf16.msra.mxu0 %v10433_v6  ;;  %10444 = vmatprep.subr.bf16.mxu1 %v11233_v37 }
 0x321   :  { %10435 = vmatprep.subr.bf16.mxu0 %v11233_v37 }
 0x323   :  { %10446 = vmatpush3.bf16.msra.mxu1 %v10445_v19  ;;  %v10460_v19 = vpack.c.bf16 %v8400_v18, %v8399_v17 }
 0x324   :  { %10437 = vmatpush3.bf16.msra.mxu0 %v10436_v9  ;;  %10447 = vmatprep.subr.bf16.mxu1 %v11233_v37 }
 0x327   :  { %10449 = vmatpush3.bf16.msra.mxu1 %v10448_v22 }
 0x328   :  { %10450 = vmatprep.subr.bf16.mxu1 %v11233_v37 }
 0x336   :  { %v10062_v25 = vpop.f32.mrb[72].mxu0 }
 0x337   :  { %v10084_v26 = vpop.f32.mrb[72].mxu1  ;;  %v10063_v27 = vpop.f32.mrb[73].mxu0 }
 0x338   :  { %v10064_v28 = vadd.f32 %v10063_v27, %v10062_v25  ;;  %v10085_v29 = vpop.f32.mrb[73].mxu1  ;;  %v10065_v30 = vpop.f32.mrb[74].mxu0  ;;  %v8396_v27 = vld [vmem:[%s14044_s5 + $0x58] sm:$0xff] }
 0x339   :  { %v10086_v31 = vadd.f32 %v10085_v29, %v10084_v26  ;;  %v10087_v32 = vpop.f32.mrb[74].mxu1  ;;  %v10066_v33 = vpop.f32.mrb[75].mxu0  ;;  %v8395_v26 = vld [vmem:[%s14044_s5 + $0x50] sm:$0xff] }
 0x33a   :  { %v7845_v34 = vadd.f32 %v10064_v28, %v7805_v24  ;;  %v10088_v35 = vpop.f32.mrb[75].mxu1  ;;  %v8394_v24 = vld [vmem:[%s14044_s5 + $0x48] sm:$0xff] }
 0x33b   :  { %v10451_v25 = vpack.c.bf16 %v8394_v24, %v8393_v23 }
 0x33c   :  { %v7885_v36 = vadd.f32 %v10086_v31, %v7845_v34 }
 0x33d   :  { %10452 = vmatpush3.bf16.msra.mxu1 %v10451_v25  ;;  %v9253_v25 = vld [vmem:[%s14046_s6] ss:$0 sm:$0xff] }
 0x33e   :  { %10453 = vmatprep.subr.bf16.mxu1 %v11233_v37 }
 0x356   :  { %v10106_v56 = vpop.f32.mrb[76].mxu0 }
 0x357   :  { %v10128_v57 = vpop.f32.mrb[76].mxu1  ;;  %v10107_v58 = vpop.f32.mrb[77].mxu0 }
 0x358   :  { %v10108_v59 = vadd.f32 %v10107_v58, %v10106_v56  ;;  %v10129_v60 = vpop.f32.mrb[77].mxu1  ;;  %v10109_v61 = vpop.f32.mrb[78].mxu0 }
 0x359   :  { %v10130_v62 = vadd.f32 %v10129_v60, %v10128_v57  ;;  %v10131_v63 = vpop.f32.mrb[78].mxu1  ;;  %v10110_v0 = vpop.f32.mrb[79].mxu0 }
 0x35a   :  { %v7925_v1 = vadd.f32 %v10108_v59, %v7885_v36  ;;  %v10132_v2 = vpop.f32.mrb[79].mxu1  ;;  %v10454_v36 = vpack.c.bf16 %v8396_v27, %v8395_v26 }
 0x35c   :  { %v7965_v3 = vadd.f32 %v10130_v62, %v7925_v1  ;;  %10455 = vmatpush3.bf16.msra.mxu1 %v10454_v36 }
 0x35d   :  { %10456 = vmatprep.subr.bf16.mxu1 %v11233_v37 }
 0x360   :  { %10458 = vmatpush3.bf16.msra.mxu1 %v10457_v44 }
 0x361   :  { %10459 = vmatprep.subr.bf16.mxu1 %v11233_v37 }
 0x364   :  { %10461 = vmatpush3.bf16.msra.mxu1 %v10460_v19 }
 0x376   :  { %v10150_v28 = vpop.f32.mrb[80].mxu0 }
 0x377   :  { %v10172_v29 = vpop.f32.mrb[80].mxu1  ;;  %v10151_v30 = vpop.f32.mrb[81].mxu0 }
 0x378   :  { %v10173_v31 = vpop.f32.mrb[81].mxu1  ;;  %v10152_v32 = vadd.f32 %v10151_v30, %v10150_v28  ;;  %v10153_v34 = vpop.f32.mrb[82].mxu0 }
 0x379   :  { %v10174_v33 = vadd.f32 %v10173_v31, %v10172_v29  ;;  %v10175_v35 = vpop.f32.mrb[82].mxu1  ;;  %v10154_v38 = vpop.f32.mrb[83].mxu0 }
 0x37a   :  { %v10176_v39 = vpop.f32.mrb[83].mxu1  ;;  %v8005_v42 = vadd.f32 %v10152_v32, %v7965_v3 }
 0x37c   :  { %v8045_v43 = vadd.f32 %v10174_v33, %v8005_v42 }
 0x396   :  { %v10194_v45 = vpop.f32.mrb[84].mxu0 }
 0x397   :  { %v10216_v46 = vpop.f32.mrb[84].mxu1  ;;  %v10195_v47 = vpop.f32.mrb[85].mxu0 }
 0x398   :  { %v10196_v48 = vadd.f32 %v10195_v47, %v10194_v45  ;;  %v10217_v49 = vpop.f32.mrb[85].mxu1  ;;  %v10197_v50 = vpop.f32.mrb[86].mxu0 }
 0x399   :  { %v10218_v51 = vadd.f32 %v10217_v49, %v10216_v46  ;;  %v10219_v52 = vpop.f32.mrb[86].mxu1  ;;  %v10198_v53 = vpop.f32.mrb[87].mxu0 }
 0x39a   :  { %v8085_v54 = vadd.f32 %v10196_v48, %v8045_v43  ;;  %v10220_v55 = vpop.f32.mrb[87].mxu1 }
 0x39c   :  { %v8125_v56 = vadd.f32 %v10218_v51, %v8085_v54 }
 0x3b6   :  { %v10238_v57 = vpop.f32.mrb[88].mxu0 }
 0x3b7   :  { %v10260_v58 = vpop.f32.mrb[88].mxu1  ;;  %v10239_v59 = vpop.f32.mrb[89].mxu0 }
 0x3b8   :  { %v10240_v60 = vadd.f32 %v10239_v59, %v10238_v57  ;;  %v10261_v61 = vpop.f32.mrb[89].mxu1  ;;  %v10241_v62 = vpop.f32.mrb[90].mxu0 }
 0x3b9   :  { %v10262_v63 = vadd.f32 %v10261_v61, %v10260_v58  ;;  %v10263_v37 = vpop.f32.mrb[90].mxu1  ;;  %v10242_v0 = vpop.f32.mrb[91].mxu0 }
 0x3ba   :  { %v8165_v1 = vadd.f32 %v10240_v60, %v8125_v56  ;;  %v10264_v2 = vpop.f32.mrb[91].mxu1 }
 0x3bc   :  { %v8205_v3 = vadd.f32 %v10262_v63, %v8165_v1 }
 0x3d6   :  { %v10282_v4 = vpop.f32.mrb[92].mxu0 }
 0x3d7   :  { %v10304_v5 = vpop.f32.mrb[92].mxu1  ;;  %v10283_v6 = vpop.f32.mrb[93].mxu0 }
 0x3d8   :  { %v10305_v7 = vpop.f32.mrb[93].mxu1  ;;  %v10284_v8 = vadd.f32 %v10283_v6, %v10282_v4  ;;  %v10285_v10 = vpop.f32.mrb[94].mxu0 }
 0x3d9   :  { %v10306_v9 = vadd.f32 %v10305_v7, %v10304_v5  ;;  %v10307_v11 = vpop.f32.mrb[94].mxu1  ;;  %v10286_v12 = vpop.f32.mrb[95].mxu0 }
 0x3da   :  { %v10308_v13 = vpop.f32.mrb[95].mxu1  ;;  %v8245_v14 = vadd.f32 %v10284_v8, %v8205_v3 }
 0x3dc   :  { %v8285_v15 = vadd.f32 %v10306_v9, %v8245_v14 }
 0x3de   :  { %v8290_v16 = vmax.f32 %v8285_v15, 0.0 }
 0x3e0   :  { %10377 = vmatmul.mubr.f32.vlgmr.msra.gmra.mrb[96].mxu0 %v8290_v16 }
 0x4b3   :  { %v8380_v21 = vpop.f32.mrb[96].mxu0 }
 0x4b4   :  { %v8381_v22 = vadd.f32 %v9252_v20, %v8380_v21  ;;  %v10378_v23 = vpop.f32.mrb[97].mxu0 }
 0x4b6   :  { %v8384_v24 = vmax.f32 %v8381_v22, 0.0 }
 0x4b8   :  { %10412 = vmatmul.mubr.f32.vlgmr.msra.gmra.mrb[96].mxu1 %v8384_v24 }
 0x58b   :  { %v8474_v26 = vpop.f32.mrb[96].mxu1 }
 0x58c   :  { %v8475_v27 = vadd.f32 %v9253_v25, %v8474_v26  ;;  %v10413_v28 = vpop.f32.mrb[97].mxu1 }
 0x58e   :  { %8478 = vst [vmem:[%s14047_s7] sm:$0xff] %v8475_v27 }

</bundles_post_ra>
